<compile_context>
chip_gen: v5e
topology: v5e:2x2
jax: 0.10.0
libtpu: 0.0.40
codegen_flags: <defaults>
</compile_context>

<pallas_src>
import math

import jax
import jax.numpy as jnp
from jax.experimental import pallas as pl
from jax.experimental.pallas import tpu as pltpu


# ----------------------------------------------------------------------------
# Fused kernel: 4x (conv + bias + ReLU) for B_BLK batch elements per grid step.
# ----------------------------------------------------------------------------
def _make_encoder_kernel(b_blk, sizes, cout):
    s1, s2, s3, s4 = sizes  # per-layer (square) output spatial sizes

    def conv3_relu(h, w_ref, b_ref, so):
        # h: (b, si, si, cin) bf16.  w_ref: (9*cin, cout) bf16.  b_ref: (1, cout) f32.
        b, si, _, cin = h.shape
        taps = [jax.lax.slice(h, (0, kh, kw, 0), (b, kh + so, kw + so, cin))
                for kh in range(3) for kw in range(3)]
        # im2col patch matrix; column order (kh, kw, cin) matches the
        # wrapper-side w.reshape(9*cin, cout).  Taps are already bf16, so the
        # concat/reshape relayout moves half the bytes of the f32 version.
        patches = jnp.concatenate(taps, axis=-1).reshape(b * so * so, 9 * cin)
        acc = jnp.dot(patches, w_ref[...],
                      preferred_element_type=jnp.float32)   # single MXU matmul
        return jnp.maximum(acc + b_ref[...], 0.0)            # (b*so*so, cout) f32

    def kernel(x_ref, w1_ref, b1_ref, w2_ref, b2_ref, w3_ref, b3_ref,
               w4_ref, b4_ref, o_ref):
        # ---- layer 1: im2col was hoisted to the wrapper -> bare MXU matmul.
        k1 = x_ref.shape[-1]
        p1 = x_ref[...].reshape(b_blk * s1 * s1, k1).astype(jnp.bfloat16)
        h = jnp.maximum(
            jnp.dot(p1, w1_ref[...], preferred_element_type=jnp.float32)
            + b1_ref[...], 0.0)
        h = h.astype(jnp.bfloat16).reshape(b_blk, s1, s1, cout)
        # ---- layers 2..4: 3x3 stride-1 VALID convs, batch-stacked im2col.
        h = conv3_relu(h, w2_ref, b2_ref, s2).astype(jnp.bfloat16)
        h = h.reshape(b_blk, s2, s2, cout)
        h = conv3_relu(h, w3_ref, b3_ref, s3).astype(jnp.bfloat16)
        h = h.reshape(b_blk, s3, s3, cout)
        h = conv3_relu(h, w4_ref, b4_ref, s4)                 # (b*s4*s4, cout) f32
        # ---- PyTorch NCHW flatten: per element order (c, h, w); store one
        # lane-dense (B_BLK, repr_dim) slab.
        h = jnp.transpose(h.reshape(b_blk, s4 * s4, cout), (0, 2, 1))
        o_ref[0] = h.reshape(b_blk, cout * s4 * s4).astype(o_ref.dtype)

    return kernel


def _pick_b_blk(n, cap=8):
    """Largest divisor of n that is <= cap, preferring a grid length >= 2 so the
    batch axis can shard across both TensorCores on megacore parts (v7x)."""
    cap = max(1, min(cap, n if n < 2 else n // 2))
    for b in range(cap, 0, -1):
        if n % b == 0:
            return b
    return 1


def encoder_pallas(x1, prepped, *, b_blk_cap=8):
    """x1: wrapper-built layer-1 patch tensor (N, h1*h1, 16*C) f32 (normalized)."""
    (w1m, b1, w2m, b2, w3m, b3, w4m, b4) = prepped
    N, M1, K1 = x1.shape
    s1 = math.isqrt(M1)
    assert s1 * s1 == M1, "square spatial input expected"
    s2, s3, s4 = s1 - 2, s1 - 4, s1 - 6
    cout = w4m.shape[-1]
    repr_dim = cout * s4 * s4

    b_blk = _pick_b_blk(N, b_blk_cap)
    grid_n = N // b_blk
    kernel = _make_encoder_kernel(b_blk, (s1, s2, s3, s4), cout)

    def full(shape):                 # whole-array block, constant index map
        nd = len(shape)
        return pl.BlockSpec(shape, lambda g, _nd=nd: (0,) * _nd)

    out = pl.pallas_call(
        kernel,
        out_shape=jax.ShapeDtypeStruct((grid_n, b_blk, repr_dim), jnp.float32),
        grid=(grid_n,),
        in_specs=[
            pl.BlockSpec((b_blk, M1, K1), lambda g: (g, 0, 0)),
            full(w1m.shape), full(b1.shape),
            full(w2m.shape), full(b2.shape),
            full(w3m.shape), full(b3.shape),
            full(w4m.shape), full(b4.shape),
        ],
        out_specs=pl.BlockSpec((1, b_blk, repr_dim), lambda g: (g, 0, 0)),
        compiler_params=pltpu.CompilerParams(
            dimension_semantics=("parallel",),          # batch across TCs
            vmem_limit_bytes=48 * 1024 * 1024),         # > default 32 MiB, < v7x 64 MiB
    )(x1, w1m, b1, w2m, b2, w3m, b3, w4m, b4)
    return out.reshape(N, repr_dim)


# ----------------------------------------------------------------------------
# Parameter init + static wrapper-side preprocessing of the weights.
# ----------------------------------------------------------------------------
def init_encoder_params(key, in_channels):
    """(w, b) per layer, HWIO weights. Strides (2,1,1,1) are fixed by the arch."""
    cfg = [(in_channels, 32, 3), (32, 32, 3), (32, 32, 3), (32, 32, 3)]
    params = []
    for cin, cout, k in cfg:
        key, wk, bk = jax.random.split(key, 3)
        fan_in = cin * k * k
        w = jax.random.normal(wk, (k, k, cin, cout), jnp.float32) / jnp.sqrt(fan_in)
        b = 0.1 * jax.random.normal(bk, (cout,), jnp.float32)
        params.append((w, b))
    return params


def prepare_encoder_params(params):
    """One-time static weight prep:
      * rewrite the stride-2 3x3 layer 1 as a stride-1 2x2 conv over
        space-to-depth channels,
      * flatten every layer to an im2col (K*K*Cin, Cout) matrix,
      * cast weight matrices to bf16 for the MXU (biases / accumulation stay f32).
    """
    (w1, b1), (w2, b2), (w3, b3), (w4, b4) = params
    k, _, c, cout = w1.shape                               # (3, 3, C, 32)

    # Space-to-depth: x2[i, j, rh*2C + rw*C + c] = x[2i+rh, 2j+rw, c].
    # Stride-2 3x3 conv == stride-1 2x2 conv with taps (qh, qw) and weights
    # w1s[qh, qw, rh, rw, c] = w1[2qh+rh, 2qw+rw, c] (zero where 2q+r > 2).
    w1s = jnp.zeros((2, 2, 2, 2, c, cout), jnp.float32)
    for kh in range(k):
        for kw in range(k):
            qh, rh = divmod(kh, 2)
            qw, rw = divmod(kw, 2)
            w1s = w1s.at[qh, qw, rh, rw].set(w1[kh, kw])
    w1m = w1s.reshape(2 * 2 * 4 * c, cout)                 # (16*C, 32)

    def im2col_w(w):                                       # row order (kh, kw, cin)
        return w.reshape(-1, w.shape[-1])

    bf16 = lambda w: w.astype(jnp.bfloat16)
    return (bf16(w1m), b1.reshape(1, cout),
            bf16(im2col_w(w2)), b2.reshape(1, cout),
            bf16(im2col_w(w3)), b3.reshape(1, cout),
            bf16(im2col_w(w4)), b4.reshape(1, cout))


# ----------------------------------------------------------------------------
# Forward pass (Pallas) and pure-JAX reference.
# ----------------------------------------------------------------------------
@jax.jit
def encoder_forward(obs_nchw, prepped):
    """Pallas Encoder.forward. obs_nchw: (N, C, H, W) f32 raw pixels in [0, 255]."""
    N, C, H, W = obs_nchw.shape
    assert H == W and H % 2 == 0
    H2 = H // 2
    h1 = H2 - 1                      # == floor((H-3)/2)+1 for even H (stride-2 3x3 VALID)
    # Normalization + space-to-depth + layer-1 im2col, all fused into one small
    # XLA copy/gather; the kernel then sees layer 1 as a bare matmul and keeps
    # every downstream activation VMEM-resident.
    x = jnp.transpose(obs_nchw, (0, 2, 3, 1)) / 255.0 - 0.5          # NHWC, normalized
    x2 = x.reshape(N, H2, 2, H2, 2, C)
    x2 = jnp.transpose(x2, (0, 1, 3, 2, 4, 5)).reshape(N, H2, H2, 4 * C)
    taps = [x2[:, qh:qh + h1, qw:qw + h1, :] for qh in (0, 1) for qw in (0, 1)]
    x1 = jnp.concatenate(taps, axis=-1).reshape(N, h1 * h1, 16 * C)
    return encoder_pallas(x1, prepped)


def encoder_reference(obs_nchw, params):
    """Pure-JAX reference mirroring the PyTorch module exactly."""
    x = jnp.transpose(obs_nchw, (0, 2, 3, 1)) / 255.0 - 0.5
    strides = (2, 1, 1, 1)
    for (w, b), s in zip(params, strides):
        x = jax.lax.conv_general_dilated(
            x, w, window_strides=(s, s), padding="VALID",
            dimension_numbers=("NHWC", "HWIO", "NHWC"),
            precision=jax.lax.Precision.HIGHEST)
        x = jax.nn.relu(x + b)
    x = jnp.transpose(x, (0, 3, 1, 2))                              # NCHW
    return x.reshape(x.shape[0], -1)


if __name__ == "__main__":
    key = jax.random.PRNGKey(0)
    k1, k2, k3, k4 = jax.random.split(key, 4)

    # ---- small demo shape consistent with the module: batch=2, C=4, 24x24 --
    batch, channels, spatial = 2, 4, 24
    obs = jax.random.uniform(
        k1, (batch, channels, spatial, spatial),
        dtype=jnp.float32, minval=0.0, maxval=255.0)
    params = init_encoder_params(k2, channels)
    prepped = prepare_encoder_params(params)

    h = jax.block_until_ready(encoder_forward(obs, prepped))
    h_ref = encoder_reference(obs, params)
    assert h.shape == h_ref.shape, (h.shape, h_ref.shape)
    # Tolerance loosened because matmul inputs are bf16 (f32 accumulation).
    assert jnp.allclose(h, h_ref, atol=5e-2, rtol=5e-2), float(
        jnp.max(jnp.abs(h - h_ref)))

    # ---- the module's real obs_shape[1] == 84 branch (batch-blocked grid) --
    batch84 = 4
    obs84 = jax.random.uniform(
        k3, (batch84, channels, 84, 84),
        dtype=jnp.float32, minval=0.0, maxval=255.0)
    params84 = init_encoder_params(k4, channels)
    prepped84 = prepare_encoder_params(params84)

    h84 = jax.block_until_ready(encoder_forward(obs84, prepped84))
    h84_ref = encoder_reference(obs84, params84)
    assert h84.shape == (batch84, 32 * 35 * 35), h84.shape      # repr_dim = 39200
    assert jnp.allclose(h84, h84_ref, atol=5e-2, rtol=5e-2), float(
        jnp.max(jnp.abs(h84 - h84_ref)))

    print("KERNEL_OK")
</pallas_src>

<mosaic_0001>
module attributes {stable_mosaic.version = 11 : i64} {
  func.func @kernel(%arg0: i32, %arg1: memref<1x121x64xf32, #tpu.memory_space<vmem>>, %arg2: memref<64x32xbf16, #tpu.memory_space<vmem>>, %arg3: memref<1x32xf32, #tpu.memory_space<vmem>>, %arg4: memref<288x32xbf16, #tpu.memory_space<vmem>>, %arg5: memref<1x32xf32, #tpu.memory_space<vmem>>, %arg6: memref<288x32xbf16, #tpu.memory_space<vmem>>, %arg7: memref<1x32xf32, #tpu.memory_space<vmem>>, %arg8: memref<288x32xbf16, #tpu.memory_space<vmem>>, %arg9: memref<1x32xf32, #tpu.memory_space<vmem>>, %arg10: memref<1x1x800xf32, #tpu.memory_space<vmem>>) attributes {dimension_semantics = [#tpu.dimension_semantics<parallel>], iteration_bounds = array<i64: 2>, scalar_prefetch = 0 : i64, scratch_operands = 0 : i64, tpu.core_type = #tpu.core_type<tc>, window_params = [{transform_indices = @transform_0, window_bounds = array<i64: 1, 121, 64>}, {pipeline_mode = #tpu.pipeline_mode<synchronous>, transform_indices = @transform_1, window_bounds = array<i64: 64, 32>}, {pipeline_mode = #tpu.pipeline_mode<synchronous>, transform_indices = @transform_2, window_bounds = array<i64: 1, 32>}, {pipeline_mode = #tpu.pipeline_mode<synchronous>, transform_indices = @transform_3, window_bounds = array<i64: 288, 32>}, {pipeline_mode = #tpu.pipeline_mode<synchronous>, transform_indices = @transform_4, window_bounds = array<i64: 1, 32>}, {pipeline_mode = #tpu.pipeline_mode<synchronous>, transform_indices = @transform_5, window_bounds = array<i64: 288, 32>}, {pipeline_mode = #tpu.pipeline_mode<synchronous>, transform_indices = @transform_6, window_bounds = array<i64: 1, 32>}, {pipeline_mode = #tpu.pipeline_mode<synchronous>, transform_indices = @transform_7, window_bounds = array<i64: 288, 32>}, {pipeline_mode = #tpu.pipeline_mode<synchronous>, transform_indices = @transform_8, window_bounds = array<i64: 1, 32>}, {transform_indices = @transform_9, window_bounds = array<i64: 1, 1, 800>}]} {
    %c0 = arith.constant 0 : index
    %c0_0 = arith.constant 0 : index
    %c0_1 = arith.constant 0 : index
    %0 = vector.load %arg1[%c0, %c0_0, %c0_1] : memref<1x121x64xf32, #tpu.memory_space<vmem>>, vector<1x121x64xf32>
    %1 = vector.shape_cast %0 : vector<1x121x64xf32> to vector<121x64xf32>
    %2 = arith.truncf %1 : vector<121x64xf32> to vector<121x64xbf16>
    %c0_2 = arith.constant 0 : index
    %c0_3 = arith.constant 0 : index
    %3 = vector.load %arg2[%c0_2, %c0_3] : memref<64x32xbf16, #tpu.memory_space<vmem>>, vector<64x32xbf16>
    %cst = arith.constant dense<0.000000e+00> : vector<121x32xf32>
    %4 = tpu.matmul %2, %3, %cst {dimension_numbers = #tpu.dot_dimension_numbers<[1], [0], [0], [1], [0, 0, 1, 1], [], []>} : vector<121x64xbf16>, vector<64x32xbf16>, vector<121x32xf32> -> vector<121x32xf32>
    %c0_4 = arith.constant 0 : index
    %c0_5 = arith.constant 0 : index
    %5 = vector.load %arg3[%c0_4, %c0_5] : memref<1x32xf32, #tpu.memory_space<vmem>>, vector<1x32xf32>
    %6 = vector.broadcast %5 : vector<1x32xf32> to vector<121x32xf32>
    %7 = arith.addf %4, %6 : vector<121x32xf32>
    %cst_6 = arith.constant 0.000000e+00 : f32
    %8 = vector.broadcast %cst_6 : f32 to vector<121x32xf32>
    %9 = arith.maximumf %7, %8 : vector<121x32xf32>
    %10 = arith.truncf %9 : vector<121x32xf32> to vector<121x32xbf16>
    %11 = vector.shape_cast %10 : vector<121x32xbf16> to vector<1x11x11x32xbf16>
    %12 = vector.extract_strided_slice %11 {offsets = [0, 0, 0, 0], sizes = [1, 9, 9, 32], strides = [1, 1, 1, 1]} : vector<1x11x11x32xbf16> to vector<1x9x9x32xbf16>
    %13 = vector.extract_strided_slice %11 {offsets = [0, 0, 1, 0], sizes = [1, 9, 9, 32], strides = [1, 1, 1, 1]} : vector<1x11x11x32xbf16> to vector<1x9x9x32xbf16>
    %14 = vector.extract_strided_slice %11 {offsets = [0, 0, 2, 0], sizes = [1, 9, 9, 32], strides = [1, 1, 1, 1]} : vector<1x11x11x32xbf16> to vector<1x9x9x32xbf16>
    %15 = vector.extract_strided_slice %11 {offsets = [0, 1, 0, 0], sizes = [1, 9, 9, 32], strides = [1, 1, 1, 1]} : vector<1x11x11x32xbf16> to vector<1x9x9x32xbf16>
    %16 = vector.extract_strided_slice %11 {offsets = [0, 1, 1, 0], sizes = [1, 9, 9, 32], strides = [1, 1, 1, 1]} : vector<1x11x11x32xbf16> to vector<1x9x9x32xbf16>
    %17 = vector.extract_strided_slice %11 {offsets = [0, 1, 2, 0], sizes = [1, 9, 9, 32], strides = [1, 1, 1, 1]} : vector<1x11x11x32xbf16> to vector<1x9x9x32xbf16>
    %18 = vector.extract_strided_slice %11 {offsets = [0, 2, 0, 0], sizes = [1, 9, 9, 32], strides = [1, 1, 1, 1]} : vector<1x11x11x32xbf16> to vector<1x9x9x32xbf16>
    %19 = vector.extract_strided_slice %11 {offsets = [0, 2, 1, 0], sizes = [1, 9, 9, 32], strides = [1, 1, 1, 1]} : vector<1x11x11x32xbf16> to vector<1x9x9x32xbf16>
    %20 = vector.extract_strided_slice %11 {offsets = [0, 2, 2, 0], sizes = [1, 9, 9, 32], strides = [1, 1, 1, 1]} : vector<1x11x11x32xbf16> to vector<1x9x9x32xbf16>
    %21 = tpu.concatenate %12, %13, %14, %15, %16, %17, %18, %19, %20 in 3 : vector<1x9x9x32xbf16>, vector<1x9x9x32xbf16>, vector<1x9x9x32xbf16>, vector<1x9x9x32xbf16>, vector<1x9x9x32xbf16>, vector<1x9x9x32xbf16>, vector<1x9x9x32xbf16>, vector<1x9x9x32xbf16>, vector<1x9x9x32xbf16> -> vector<1x9x9x288xbf16>
    %22 = vector.shape_cast %21 : vector<1x9x9x288xbf16> to vector<81x288xbf16>
    %c0_7 = arith.constant 0 : index
    %c0_8 = arith.constant 0 : index
    %23 = vector.load %arg4[%c0_7, %c0_8] : memref<288x32xbf16, #tpu.memory_space<vmem>>, vector<288x32xbf16>
    %cst_9 = arith.constant dense<0.000000e+00> : vector<81x32xf32>
    %24 = tpu.matmul %22, %23, %cst_9 {dimension_numbers = #tpu.dot_dimension_numbers<[1], [0], [0], [1], [0, 0, 1, 1], [], []>} : vector<81x288xbf16>, vector<288x32xbf16>, vector<81x32xf32> -> vector<81x32xf32>
    %c0_10 = arith.constant 0 : index
    %c0_11 = arith.constant 0 : index
    %25 = vector.load %arg5[%c0_10, %c0_11] : memref<1x32xf32, #tpu.memory_space<vmem>>, vector<1x32xf32>
    %26 = vector.broadcast %25 : vector<1x32xf32> to vector<81x32xf32>
    %27 = arith.addf %24, %26 : vector<81x32xf32>
    %cst_12 = arith.constant 0.000000e+00 : f32
    %28 = vector.broadcast %cst_12 : f32 to vector<81x32xf32>
    %29 = arith.maximumf %27, %28 : vector<81x32xf32>
    %30 = arith.truncf %29 : vector<81x32xf32> to vector<81x32xbf16>
    %31 = vector.shape_cast %30 : vector<81x32xbf16> to vector<1x9x9x32xbf16>
    %32 = vector.extract_strided_slice %31 {offsets = [0, 0, 0, 0], sizes = [1, 7, 7, 32], strides = [1, 1, 1, 1]} : vector<1x9x9x32xbf16> to vector<1x7x7x32xbf16>
    %33 = vector.extract_strided_slice %31 {offsets = [0, 0, 1, 0], sizes = [1, 7, 7, 32], strides = [1, 1, 1, 1]} : vector<1x9x9x32xbf16> to vector<1x7x7x32xbf16>
    %34 = vector.extract_strided_slice %31 {offsets = [0, 0, 2, 0], sizes = [1, 7, 7, 32], strides = [1, 1, 1, 1]} : vector<1x9x9x32xbf16> to vector<1x7x7x32xbf16>
    %35 = vector.extract_strided_slice %31 {offsets = [0, 1, 0, 0], sizes = [1, 7, 7, 32], strides = [1, 1, 1, 1]} : vector<1x9x9x32xbf16> to vector<1x7x7x32xbf16>
    %36 = vector.extract_strided_slice %31 {offsets = [0, 1, 1, 0], sizes = [1, 7, 7, 32], strides = [1, 1, 1, 1]} : vector<1x9x9x32xbf16> to vector<1x7x7x32xbf16>
    %37 = vector.extract_strided_slice %31 {offsets = [0, 1, 2, 0], sizes = [1, 7, 7, 32], strides = [1, 1, 1, 1]} : vector<1x9x9x32xbf16> to vector<1x7x7x32xbf16>
    %38 = vector.extract_strided_slice %31 {offsets = [0, 2, 0, 0], sizes = [1, 7, 7, 32], strides = [1, 1, 1, 1]} : vector<1x9x9x32xbf16> to vector<1x7x7x32xbf16>
    %39 = vector.extract_strided_slice %31 {offsets = [0, 2, 1, 0], sizes = [1, 7, 7, 32], strides = [1, 1, 1, 1]} : vector<1x9x9x32xbf16> to vector<1x7x7x32xbf16>
    %40 = vector.extract_strided_slice %31 {offsets = [0, 2, 2, 0], sizes = [1, 7, 7, 32], strides = [1, 1, 1, 1]} : vector<1x9x9x32xbf16> to vector<1x7x7x32xbf16>
    %41 = tpu.concatenate %32, %33, %34, %35, %36, %37, %38, %39, %40 in 3 : vector<1x7x7x32xbf16>, vector<1x7x7x32xbf16>, vector<1x7x7x32xbf16>, vector<1x7x7x32xbf16>, vector<1x7x7x32xbf16>, vector<1x7x7x32xbf16>, vector<1x7x7x32xbf16>, vector<1x7x7x32xbf16>, vector<1x7x7x32xbf16> -> vector<1x7x7x288xbf16>
    %42 = vector.shape_cast %41 : vector<1x7x7x288xbf16> to vector<49x288xbf16>
    %c0_13 = arith.constant 0 : index
    %c0_14 = arith.constant 0 : index
    %43 = vector.load %arg6[%c0_13, %c0_14] : memref<288x32xbf16, #tpu.memory_space<vmem>>, vector<288x32xbf16>
    %cst_15 = arith.constant dense<0.000000e+00> : vector<49x32xf32>
    %44 = tpu.matmul %42, %43, %cst_15 {dimension_numbers = #tpu.dot_dimension_numbers<[1], [0], [0], [1], [0, 0, 1, 1], [], []>} : vector<49x288xbf16>, vector<288x32xbf16>, vector<49x32xf32> -> vector<49x32xf32>
    %c0_16 = arith.constant 0 : index
    %c0_17 = arith.constant 0 : index
    %45 = vector.load %arg7[%c0_16, %c0_17] : memref<1x32xf32, #tpu.memory_space<vmem>>, vector<1x32xf32>
    %46 = vector.broadcast %45 : vector<1x32xf32> to vector<49x32xf32>
    %47 = arith.addf %44, %46 : vector<49x32xf32>
    %cst_18 = arith.constant 0.000000e+00 : f32
    %48 = vector.broadcast %cst_18 : f32 to vector<49x32xf32>
    %49 = arith.maximumf %47, %48 : vector<49x32xf32>
    %50 = arith.truncf %49 : vector<49x32xf32> to vector<49x32xbf16>
    %51 = vector.shape_cast %50 : vector<49x32xbf16> to vector<1x7x7x32xbf16>
    %52 = vector.extract_strided_slice %51 {offsets = [0, 0, 0, 0], sizes = [1, 5, 5, 32], strides = [1, 1, 1, 1]} : vector<1x7x7x32xbf16> to vector<1x5x5x32xbf16>
    %53 = vector.extract_strided_slice %51 {offsets = [0, 0, 1, 0], sizes = [1, 5, 5, 32], strides = [1, 1, 1, 1]} : vector<1x7x7x32xbf16> to vector<1x5x5x32xbf16>
    %54 = vector.extract_strided_slice %51 {offsets = [0, 0, 2, 0], sizes = [1, 5, 5, 32], strides = [1, 1, 1, 1]} : vector<1x7x7x32xbf16> to vector<1x5x5x32xbf16>
    %55 = vector.extract_strided_slice %51 {offsets = [0, 1, 0, 0], sizes = [1, 5, 5, 32], strides = [1, 1, 1, 1]} : vector<1x7x7x32xbf16> to vector<1x5x5x32xbf16>
    %56 = vector.extract_strided_slice %51 {offsets = [0, 1, 1, 0], sizes = [1, 5, 5, 32], strides = [1, 1, 1, 1]} : vector<1x7x7x32xbf16> to vector<1x5x5x32xbf16>
    %57 = vector.extract_strided_slice %51 {offsets = [0, 1, 2, 0], sizes = [1, 5, 5, 32], strides = [1, 1, 1, 1]} : vector<1x7x7x32xbf16> to vector<1x5x5x32xbf16>
    %58 = vector.extract_strided_slice %51 {offsets = [0, 2, 0, 0], sizes = [1, 5, 5, 32], strides = [1, 1, 1, 1]} : vector<1x7x7x32xbf16> to vector<1x5x5x32xbf16>
    %59 = vector.extract_strided_slice %51 {offsets = [0, 2, 1, 0], sizes = [1, 5, 5, 32], strides = [1, 1, 1, 1]} : vector<1x7x7x32xbf16> to vector<1x5x5x32xbf16>
    %60 = vector.extract_strided_slice %51 {offsets = [0, 2, 2, 0], sizes = [1, 5, 5, 32], strides = [1, 1, 1, 1]} : vector<1x7x7x32xbf16> to vector<1x5x5x32xbf16>
    %61 = tpu.concatenate %52, %53, %54, %55, %56, %57, %58, %59, %60 in 3 : vector<1x5x5x32xbf16>, vector<1x5x5x32xbf16>, vector<1x5x5x32xbf16>, vector<1x5x5x32xbf16>, vector<1x5x5x32xbf16>, vector<1x5x5x32xbf16>, vector<1x5x5x32xbf16>, vector<1x5x5x32xbf16>, vector<1x5x5x32xbf16> -> vector<1x5x5x288xbf16>
    %62 = vector.shape_cast %61 : vector<1x5x5x288xbf16> to vector<25x288xbf16>
    %c0_19 = arith.constant 0 : index
    %c0_20 = arith.constant 0 : index
    %63 = vector.load %arg8[%c0_19, %c0_20] : memref<288x32xbf16, #tpu.memory_space<vmem>>, vector<288x32xbf16>
    %cst_21 = arith.constant dense<0.000000e+00> : vector<25x32xf32>
    %64 = tpu.matmul %62, %63, %cst_21 {dimension_numbers = #tpu.dot_dimension_numbers<[1], [0], [0], [1], [0, 0, 1, 1], [], []>} : vector<25x288xbf16>, vector<288x32xbf16>, vector<25x32xf32> -> vector<25x32xf32>
    %c0_22 = arith.constant 0 : index
    %c0_23 = arith.constant 0 : index
    %65 = vector.load %arg9[%c0_22, %c0_23] : memref<1x32xf32, #tpu.memory_space<vmem>>, vector<1x32xf32>
    %66 = vector.broadcast %65 : vector<1x32xf32> to vector<25x32xf32>
    %67 = arith.addf %64, %66 : vector<25x32xf32>
    %cst_24 = arith.constant 0.000000e+00 : f32
    %68 = vector.broadcast %cst_24 : f32 to vector<25x32xf32>
    %69 = arith.maximumf %67, %68 : vector<25x32xf32>
    %70 = vector.shape_cast %69 : vector<25x32xf32> to vector<1x25x32xf32>
    %71 = tpu.transpose %70, [0, 2, 1] : vector<1x25x32xf32> -> vector<1x32x25xf32>
    %72 = vector.shape_cast %71 : vector<1x32x25xf32> to vector<1x800xf32>
    %c0_25 = arith.constant 0 : index
    %c0_26 = arith.constant 0 : index
    %c0_27 = arith.constant 0 : index
    %73 = vector.load %arg10[%c0_25, %c0_26, %c0_27] : memref<1x1x800xf32, #tpu.memory_space<vmem>>, vector<1x1x800xf32>
    %74 = vector.shape_cast %73 : vector<1x1x800xf32> to vector<1x800xf32>
    %75 = vector.shape_cast %72 : vector<1x800xf32> to vector<1x1x800xf32>
    tpu.vector_store %arg10[%c0_25, %c0_26, %c0_27], %75 {strides = array<i32>} : memref<1x1x800xf32, #tpu.memory_space<vmem>>, vector<1x1x800xf32>,
    return
  }
  func.func @transform_0(%arg0: i32) -> (i32, i32, i32) {
    %c0_i32 = arith.constant 0 : i32
    %c0_i32_0 = arith.constant 0 : i32
    %c0_i32_1 = arith.constant 0 : i32
    return %arg0, %c0_i32, %c0_i32_0 : i32, i32, i32
  }
  func.func @transform_1(%arg0: i32) -> (i32, i32) {
    %c0_i32 = arith.constant 0 : i32
    %c0_i32_0 = arith.constant 0 : i32
    %c0_i32_1 = arith.constant 0 : i32
    return %c0_i32, %c0_i32_0 : i32, i32
  }
  func.func @transform_2(%arg0: i32) -> (i32, i32) {
    %c0_i32 = arith.constant 0 : i32
    %c0_i32_0 = arith.constant 0 : i32
    %c0_i32_1 = arith.constant 0 : i32
    return %c0_i32, %c0_i32_0 : i32, i32
  }
  func.func @transform_3(%arg0: i32) -> (i32, i32) {
    %c0_i32 = arith.constant 0 : i32
    %c0_i32_0 = arith.constant 0 : i32
    %c0_i32_1 = arith.constant 0 : i32
    return %c0_i32, %c0_i32_0 : i32, i32
  }
  func.func @transform_4(%arg0: i32) -> (i32, i32) {
    %c0_i32 = arith.constant 0 : i32
    %c0_i32_0 = arith.constant 0 : i32
    %c0_i32_1 = arith.constant 0 : i32
    return %c0_i32, %c0_i32_0 : i32, i32
  }
  func.func @transform_5(%arg0: i32) -> (i32, i32) {
    %c0_i32 = arith.constant 0 : i32
    %c0_i32_0 = arith.constant 0 : i32
    %c0_i32_1 = arith.constant 0 : i32
    return %c0_i32, %c0_i32_0 : i32, i32
  }
  func.func @transform_6(%arg0: i32) -> (i32, i32) {
    %c0_i32 = arith.constant 0 : i32
    %c0_i32_0 = arith.constant 0 : i32
    %c0_i32_1 = arith.constant 0 : i32
    return %c0_i32, %c0_i32_0 : i32, i32
  }
  func.func @transform_7(%arg0: i32) -> (i32, i32) {
    %c0_i32 = arith.constant 0 : i32
    %c0_i32_0 = arith.constant 0 : i32
    %c0_i32_1 = arith.constant 0 : i32
    return %c0_i32, %c0_i32_0 : i32, i32
  }
  func.func @transform_8(%arg0: i32) -> (i32, i32) {
    %c0_i32 = arith.constant 0 : i32
    %c0_i32_0 = arith.constant 0 : i32
    %c0_i32_1 = arith.constant 0 : i32
    return %c0_i32, %c0_i32_0 : i32, i32
  }
  func.func @transform_9(%arg0: i32) -> (i32, i32, i32) {
    %c0_i32 = arith.constant 0 : i32
    %c0_i32_0 = arith.constant 0 : i32
    %c0_i32_1 = arith.constant 0 : i32
    return %arg0, %c0_i32, %c0_i32_0 : i32, i32, i32
  }
}

</mosaic_0001>

<bundles_post_ra>
// kernel: encoder_forward.1
= control target key start
LH: loop header
LB: loop body
LE: loop exit
PB: predicated region body
PF: predicated region fallthrough
CT: control target
= control target key end

     0   :  { %s6235_s30 = smov 0   ;;  %s9417_s0 = inlined_call_operand.vmem [shape: f32[2,121,64], index: 0, kind: input, shape index: {}]   ;;  %s9418_s1 = inlined_call_operand.vmem [shape: bf16[64,32], index: 1, kind: input, shape index: {}]   ;;  %s9419_s2 = inlined_call_operand.vmem [shape: f32[1,32], index: 2, kind: input, shape index: {}]   ;;  %s9420_s3 = inlined_call_operand.vmem [shape: bf16[288,32], index: 3, kind: input, shape index: {}]   ;;  %s9421_s4 = inlined_call_operand.vmem [shape: f32[1,32], index: 4, kind: input, shape index: {}]   ;;  %s9422_s5 = inlined_call_operand.vmem [shape: bf16[288,32], index: 5, kind: input, shape index: {}]   ;;  %s9423_s6 = inlined_call_operand.vmem [shape: f32[1,32], index: 6, kind: input, shape index: {}]   ;;  %s9424_s7 = inlined_call_operand.vmem [shape: bf16[288,32], index: 7, kind: input, shape index: {}]   ;;  %s9425_s8 = inlined_call_operand.vmem [shape: f32[1,32], index: 8, kind: input, shape index: {}]   ;;  %s9426_s9 = inlined_call_operand.vmem [shape: f32[2,1,800], index: 9, kind: output, shape index: {}]  }
   0x1 LB: > { %s5635_s10 = sadd.s32 4294967295, %s6147_s30   ;;  %p5639_p0 = scmp.ge.s32.totalorder %s6147_s30, 1  ;;  %s6147_s30 = sphi %s6235_s30, %s19_s30  }
   0x2   : > { %p287_p1 = scmp.lt.s32.totalorder %s6147_s30, 3 }
   0x4   : > { %p288_p2 = pnand %p5639_p0, %p287_p1 }
   0x6   : > { %291 = sbr.rel (%p288_p2) target bundleno = 3296 (0xce0), region = 56 }
   0xb   : > { %v6035_v0 = vld [vmem:[%s9418_s1 + $0x18] sm:$0xff]  ;;  %p322_p3 = scmp.lt.s32.totalorder %s5635_s10, 1  ;;  %v6034_v1 = vld [vmem:[%s9418_s1 + $0x10] sm:$0xff]  ;;  %v6033_v2 = vld [vmem:[%s9418_s1 + $0x8] sm:$0xff]  ;;  %vm392_vm0 = vcmask 523264   ;;  %vm530_vm1 = vcmask 1040384  }
   0xc   : > { %421 = vmatpush.bf16.msra.mxu0 %v6035_v0  ;;  %v6032_v3 = vld [vmem:[%s9418_s1] sm:$0xff]  ;;  %vm535_vm2 = vcmask 1041409   ;;  %vm539_vm3 = vcmask 1042434   ;;  %vm543_vm4 = vcmask 1043459   ;;  %s6149_s25 = smov 32   ;;  %s6150_s26 = smov 64  }
   0xd   : > { %s9906_s10 = smov (!%p322_p3, %s5635_s10), 1  ;;  %v6290_v28 = vld [vmem:[%s9419_s2] ss:$0 sm:$0xff]  ;;  %s6151_s27 = smov 96   ;;  %vm1811_vm5 = vcmask 261120   ;;  %vm1848_vm6 = vcmask 785408  }
   0xe   : > { %s6031_s15 = sshll.u32 %s9906_s10, 7  ;;  %vm1969_vm7 = vcmask 1044484   ;;  %vm1971_vm8 = vcmask 1045508   ;;  %vm1955_vm9 = vcmask 1042433   ;;  %vm1950_vm10 = vcmask 1041408   ;;  %s6154_s23 = smov 25  }
   0xf   : > { %s6258_s20 = scalar_lea.vmem %s9417_s0, %s6031_s15  ;;  %vm1960_vm11 = vcmask 1043458   ;;  %vm1965_vm12 = vcmask 1044483   ;;  %vm5218_vm13 = vcmask 1047556   ;;  %s6155_s24 = smov 50   ;;  %vm5494_vm14 = vcmask 203776  }
  0x10   : > { %422 = vmatpush.bf16.msra.mxu0 %v6034_v1  ;;  %v332_v4 = vld [vmem:[%s6258_s20] sm:$0xff]  ;;  %v333_v5 = vld [vmem:[%s6258_s20 + $0x8] sm:$0xff]  ;;  %v334_v7 = vld [vmem:[%s6258_s20 + $0x10] sm:$0xff]  ;;  %s6156_s28 = smov 75   ;;  %s6157_s29 = smov 100   ;;  %vm5496_vm15 = vcmask 408576  }
  0x11   : > { %v348_v6 = vpack.c.bf16 %v333_v5, %v332_v4  ;;  %v335_v8 = vld [vmem:[%s6258_s20 + $0x18] sm:$0xff]  ;;  %v336_v10 = vld [vmem:[%s6258_s20 + $0x20] sm:$0xff]  ;;  %v337_v11 = vld [vmem:[%s6258_s20 + $0x28] sm:$0xff]  ;;  %s6158_s11 = smov 125   ;;  %s6159_s12 = smov 22  }
  0x12   : > { %v349_v9 = vpack.c.bf16 %v335_v8, %v334_v7  ;;  %v350_v12 = vpack.c.bf16 %v337_v11, %v336_v10  ;;  %v338_v13 = vld [vmem:[%s6258_s20 + $0x30] sm:$0xff]  ;;  %v339_v14 = vld [vmem:[%s6258_s20 + $0x38] sm:$0xff]  ;;  %v340_v16 = vld [vmem:[%s6258_s20 + $0x40] sm:$0xff]  ;;  %s6161_s13 = smov 72   ;;  %s6162_s14 = smov 97  }
  0x13   : > { %v351_v15 = vpack.c.bf16 %v339_v14, %v338_v13  ;;  %v341_v17 = vld [vmem:[%s6258_s20 + $0x48] sm:$0xff]  ;;  %v342_v19 = vld [vmem:[%s6258_s20 + $0x50] sm:$0xff]  ;;  %v343_v20 = vld [vmem:[%s6258_s20 + $0x58] sm:$0xff]  ;;  %s6163_s15 = smov 122   ;;  %s6166_s16 = smov 44  }
  0x14   : > { %423 = vmatpush.bf16.msra.mxu0 %v6033_v2  ;;  %v352_v18 = vpack.c.bf16 %v341_v17, %v340_v16  ;;  %v353_v21 = vpack.c.bf16 %v343_v20, %v342_v19  ;;  %v344_v22 = vld [vmem:[%s6258_s20 + $0x60] sm:$0xff]  ;;  %v345_v23 = vld [vmem:[%s6258_s20 + $0x68] sm:$0xff]  ;;  %v346_v25 = vld [vmem:[%s6258_s20 + $0x70] sm:$0xff]  ;;  %s6167_s17 = smov 69   ;;  %s6168_s18 = smov 94  }
  0x15   : > { %v354_v24 = vpack.c.bf16 %v345_v23, %v344_v22  ;;  %v347_v26 = vld [vmem:[%s6258_s20 + $0x78] sm:$0x1]  ;;  %s6169_s19 = smov 119   ;;  %s6170_s20 = smov 16  }
  0x16   : > { %v355_v27 = vpack.c.bf16 %v347_v26, %v346_v25  ;;  %s6171_s21 = smov 41   ;;  %s6172_s22 = smov 66  }
  0x18   : > { %424 = vmatpush.bf16.msra.mxu0 %v6032_v3 }
  0x1b   : > { %5658 = vmatmul.msk.bf16.vlgmr.msra.gmra.mxu0 %vm392_vm0, %v348_v6 }
  0x2b   : > { %5659 = vmatmul.msk.bf16.gmra.mxu0 %vm392_vm0, %v349_v9 }
  0x3b   : > { %5660 = vmatmul.msk.bf16.gmra.mxu0 %vm392_vm0, %v350_v12 }
  0x4b   : > { %5661 = vmatmul.msk.bf16.gmra.mxu0 %vm392_vm0, %v351_v15 }
  0x5b   : > { %5662 = vmatmul.msk.bf16.gmra.mxu0 %vm392_vm0, %v352_v18 }
  0x6b   : > { %5663 = vmatmul.msk.bf16.gmra.mxu0 %vm392_vm0, %v353_v21 }
  0x7b   : > { %5664 = vmatmul.msk.bf16.gmra.mxu0 %vm392_vm0, %v354_v24 }
  0x8b   : > { %5665 = vmatmul.msk.bf16.gmra.mxu0 %vm392_vm0, %v355_v27 }
  0x98   : > { %v426_v29 = vpop.f32.mrf.mxu0 }
  0x99   : > { %v427_v30 = vadd.f32 %v6290_v28, %v426_v29 }
  0x9b   : > { %v466_v31 = vmax.f32 %v427_v30, 0.0 }
  0x9d   : > { %v482_v32 = vpack.c.bf16 %v466_v31, %v466_v31 }
  0x9f   : > { %v514_v33 = vrot.slane %v482_v32, 3 }
  0xa0   : > { %v428_v34 = vpop.f32.mrf.mxu0 }
  0xa1   : > { %v6294_v35 = vsel %vm530_vm1, %v482_v32, %v514_v33  ;;  %v536_v36 = vsel %vm535_vm2, %v482_v32, %v514_v33  ;;  %v540_v37 = vsel %vm539_vm3, %v482_v32, %v514_v33  ;;  %v544_v38 = vsel %vm543_vm4, %v482_v32, %v514_v33 }
  0xa2   : > { %v6299_v39 = vrot.slane %v536_v36, 1  ;;  %v6301_v40 = vrot.slane %v540_v37, 2  ;;  %v6303_v41 = vrot.slane %v544_v38, 3  ;;  %900 = vst [vmem:[#allocation1] ss:$9 sm:$0xff] %v6294_v35  ;;  %v429_v42 = vadd.f32 %v6290_v28, %v428_v34 }
  0xa4   : > { %903 = vst [vmem:[#allocation1 + $0x1] ss:$9 sm:$0xff] %v6299_v39  ;;  %v467_v43 = vmax.f32 %v429_v42, 0.0 }
  0xa5   : > { %906 = vst [vmem:[#allocation1 + $0x2] ss:$9 sm:$0xff] %v6301_v40 }
  0xa6   : > { %909 = vst [vmem:[#allocation1 + $0x3] ss:$9 sm:$0xff] %v6303_v41  ;;  %v483_v44 = vpack.c.bf16 %v467_v43, %v467_v43 }
  0xa8   : > { %v431_v45 = vpop.f32.mrf.mxu0  ;;  %v515_v46 = vrot.slane %v483_v44, 3 }
  0xa9   : > { %v432_v47 = vadd.f32 %v6290_v28, %v431_v45 }
  0xaa   : > { %v6312_v48 = vsel %vm530_vm1, %v483_v44, %v515_v46  ;;  %v6315_v49 = vsel %vm535_vm2, %v483_v44, %v515_v46  ;;  %v554_v50 = vsel %vm539_vm3, %v483_v44, %v515_v46  ;;  %v557_v52 = vsel %vm543_vm4, %v483_v44, %v515_v46 }
  0xab   : > { %v9427_v51 = vrot.slane %v6315_v49, 1  ;;  %v741_v53 = vunpack.i.l.s16 %v6312_v48  ;;  %v6321_v54 = vrot.slane %v554_v50, 2  ;;  %v468_v55 = vmax.f32 %v432_v47, 0.0 }
  0xac   : > { %v6323_v56 = vrot.slane %v557_v52, 3 }
  0xad   : > { %912 = vst [vmem:[#allocation1 + $0x4] ss:$9 sm:$0xff] %v741_v53  ;;  %v484_v57 = vpack.c.bf16 %v468_v55, %v468_v55  ;;  %v744_v58 = vunpack.i.h.s16 %v9427_v51  ;;  %v746_v60 = vunpack.i.h.s16 %v6321_v54 }
  0xae   : > { %v748_v2 = vunpack.i.h.s16 %v6323_v56 }
  0xaf   : > { %v516_v61 = vrot.slane %v484_v57, 3  ;;  %v6338_v3 = vpack.i.b16 %v6321_v54, %v744_v58  ;;  %v6344_v6 = vpack.i.b16 %v6323_v56, %v746_v60 }
  0xb0   : > { %v433_v59 = vpop.f32.mrf.mxu0 }
  0xb1   : > { %v434_v62 = vadd.f32 %v6290_v28, %v433_v59  ;;  %v6330_v63 = vsel %vm530_vm1, %v484_v57, %v516_v61  ;;  %v564_v0 = vsel %vm535_vm2, %v484_v57, %v516_v61  ;;  %v6334_v1 = vsel %vm539_vm3, %v484_v57, %v516_v61  ;;  %9586 = vst [vmem:[#allocation2_spill] sm:$0xff] %v6338_v3 }
  0xb2   : > { %v6340_v4 = vrot.slane %v564_v0, 1  ;;  %v750_v5 = vunpack.i.h.s16 %v6330_v63  ;;  %v6349_v8 = vpack.i.b16 %v6330_v63, %v748_v2  ;;  %v570_v17 = vsel %vm543_vm4, %v484_v57, %v516_v61 }
  0xb3   : > { %v469_v9 = vmax.f32 %v434_v62, 0.0  ;;  %v6368_v22 = vrot.slane %v570_v17, 3 }
  0xb4   : > { %v6346_v7 = vld [vmem:[#allocation1] sm:$0xff]  ;;  %v6353_v10 = vunpack.i.h.s16 %v6340_v4  ;;  %v6357_v11 = vpack.i.b16 %v6340_v4, %v750_v5 }
  0xb5   : > { %9587 = vst [vmem:[#allocation3_spill] sm:$0xff] %v6346_v7  ;;  %v485_v12 = vpack.c.bf16 %v469_v9, %v469_v9 }
  0xb6   : > { %915 = vst [vmem:[#allocation1] ss:$9 sm:$0xff] %v6338_v3 }
  0xb7   : > { %917 = vst [vmem:[#allocation1 + $0x1] ss:$9 sm:$0xff] %v6344_v6  ;;  %v517_v14 = vrot.slane %v485_v12, 3 }
  0xb8   : > { %919 = vst [vmem:[#allocation1 + $0x2] ss:$9 sm:$0xff] %v6349_v8  ;;  %v436_v13 = vpop.f32.mrf.mxu0 }
  0xb9   : > { %921 = vst [vmem:[#allocation1 + $0x3] ss:$9 sm:$0xff] %v6357_v11  ;;  %v437_v15 = vadd.f32 %v6290_v28, %v436_v13  ;;  %v583_v16 = vsel %vm543_vm4, %v485_v12, %v517_v14  ;;  %v577_v20 = vsel %vm535_vm2, %v485_v12, %v517_v14  ;;  %v580_v23 = vsel %vm539_vm3, %v485_v12, %v517_v14 }
  0xba   : > { %923 = vst [vmem:[#allocation1 + $0x4] ss:$9 sm:$0xff] %v6353_v10  ;;  %v6365_v19 = vrot.slane %v583_v16, 3  ;;  %v6376_v29 = vsel %vm530_vm1, %v485_v12, %v517_v14  ;;  %v6378_v30 = vrot.slane %v577_v20, 1  ;;  %v6383_v32 = vrot.slane %v580_v23, 2 }
  0xbb   : > { %v470_v18 = vmax.f32 %v437_v15, 0.0 }
  0xbc   : > { %9588 = vst [vmem:[#allocation4_spill] sm:$0xff] %v6365_v19  ;;  %v6381_v31 = vunpack.i.l.s16 %v6365_v19 }
  0xbd   : > { %v486_v21 = vpack.c.bf16 %v470_v18, %v470_v18 }
  0xbe   : > { %9590 = vst [vmem:[#allocation6_spill] sm:$0xff] %v6381_v31 }
  0xbf   : > { %v518_v26 = vrot.slane %v486_v21, 3 }
  0xc0   : > { %v438_v24 = vpop.f32.mrf.mxu0 }
  0xc1   : > { %v6371_v25 = vld [vmem:[#allocation1] sm:$0xff]  ;;  %v439_v27 = vadd.f32 %v6290_v28, %v438_v24  ;;  %v6387_v33 = vsel %vm530_vm1, %v486_v21, %v518_v26  ;;  %v590_v34 = vsel %vm535_vm2, %v486_v21, %v518_v26  ;;  %v593_v36 = vsel %vm539_vm3, %v486_v21, %v518_v26 }
  0xc2   : > { %9589 = vst [vmem:[#allocation5_spill] sm:$0xff] %v6371_v25  ;;  %v6392_v37 = vrot.slane %v590_v34, 1  ;;  %v6394_v38 = vrot.slane %v593_v36, 2  ;;  %v596_v42 = vsel %vm543_vm4, %v486_v21, %v518_v26  ;;  %v766_v44 = vunpack.i.h.s16 %v6387_v33 }
  0xc3   : > { %926 = vst [vmem:[#allocation1] ss:$9 sm:$0xff] %v6368_v22  ;;  %v471_v43 = vmax.f32 %v439_v27, 0.0  ;;  %v6400_v45 = vrot.slane %v596_v42, 3 }
  0xc4   : > { %928 = vst [vmem:[#allocation1 + $0x1] ss:$9 sm:$0xff] %v6376_v29  ;;  %v768_v46 = vunpack.i.h.s16 %v6392_v37  ;;  %v770_v50 = vunpack.i.h.s16 %v6394_v38  ;;  %v6406_v57 = vpack.i.b16 %v6392_v37, %v766_v44 }
  0xc5   : > { %930 = vst [vmem:[#allocation1 + $0x2] ss:$9 sm:$0xff] %v6378_v30  ;;  %v487_v47 = vpack.c.bf16 %v471_v43, %v471_v43  ;;  %v772_v61 = vunpack.i.h.s16 %v6400_v45 }
  0xc6   : > { %9591 = vst [vmem:[#allocation7_spill] sm:$0xff] %v6392_v37  ;;  %v6409_v58 = vpack.i.b16 %v6394_v38, %v768_v46  ;;  %v6419_v62 = vpack.i.b16 %v6400_v45, %v770_v50 }
  0xc7   : > { %9592 = vst [vmem:[#allocation8_spill] sm:$0xff] %v6394_v38  ;;  %v519_v53 = vrot.slane %v487_v47, 3 }
  0xc8   : > { %932 = vst [vmem:[#allocation1 + $0x3] ss:$9 sm:$0xff] %v6383_v32  ;;  %v441_v52 = vpop.f32.mrf.mxu0 }
  0xc9   : > { %934 = vst [vmem:[#allocation1 + $0x4] ss:$9 sm:$0xff] %v6381_v31  ;;  %v442_v55 = vadd.f32 %v6290_v28, %v441_v52  ;;  %v6412_v59 = vsel %vm530_vm1, %v487_v47, %v519_v53  ;;  %v6415_v60 = vsel %vm535_vm2, %v487_v47, %v519_v53  ;;  %v606_v17 = vsel %vm539_vm3, %v487_v47, %v519_v53 }
  0xca   : > { %9593 = vst [vmem:[#allocation9_spill] sm:$0xff] %v6400_v45  ;;  %v6424_v2 = vpack.i.b16 %v6412_v59, %v772_v61  ;;  %v6428_v9 = vunpack.i.h.s16 %v6412_v59  ;;  %v609_v20 = vsel %vm543_vm4, %v487_v47, %v519_v53  ;;  %v6441_v26 = vrot.slane %v606_v17, 2 }
  0xcb   : > { %9594 = vst [vmem:[#allocation10_spill] sm:$0xff] %v6406_v57  ;;  %v472_v5 = vmax.f32 %v442_v55, 0.0  ;;  %v6443_v34 = vrot.slane %v609_v20, 3 }
  0xcc   : > { %9595 = vst [vmem:[#allocation11_spill] sm:$0xff] %v6412_v59 }
  0xcd   : > { %9596 = vst [vmem:[#allocation12_spill] sm:$0xff] %v6419_v62  ;;  %v488_v12 = vpack.c.bf16 %v472_v5, %v472_v5 }
  0xce   : > { %9598 = vst [vmem:[#allocation14_spill] sm:$0xff] %v6424_v2 }
  0xcf   : > { %9599 = vst [vmem:[#allocation15_spill] sm:$0xff] %v6428_v9  ;;  %v520_v14 = vrot.slane %v488_v12, 3 }
  0xd0   : > { %v6421_v0 = vld [vmem:[#allocation1] sm:$0xff]  ;;  %v443_v13 = vpop.f32.mrf.mxu0  ;;  %9601 = vst [vmem:[#allocation17_spill] sm:$0xff] %v6441_v26 }
  0xd1   : > { %9597 = vst [vmem:[#allocation13_spill] sm:$0xff] %v6421_v0  ;;  %v444_v15 = vadd.f32 %v6290_v28, %v443_v13  ;;  %v619_v16 = vsel %vm539_vm3, %v488_v12, %v520_v14  ;;  %v616_v21 = vsel %vm535_vm2, %v488_v12, %v520_v14  ;;  %v6456_v47 = vsel %vm530_vm1, %v488_v12, %v520_v14 }
  0xd2   : > { %937 = vst [vmem:[#allocation1] ss:$9 sm:$0xff] %v6406_v57  ;;  %v6439_v23 = vrot.slane %v619_v16, 2  ;;  %v6447_v42 = vrot.slane %v616_v21, 1  ;;  %v6459_v50 = vsel %vm543_vm4, %v488_v12, %v520_v14 }
  0xd3   : > { %939 = vst [vmem:[#allocation1 + $0x1] ss:$9 sm:$0xff] %v6409_v58  ;;  %v473_v18 = vmax.f32 %v444_v15, 0.0  ;;  %v9428_v15 = vrot.slane %v6459_v50, 3 }
  0xd4   : > { %941 = vst [vmem:[#allocation1 + $0x2] ss:$9 sm:$0xff] %v6419_v62  ;;  %v6452_v46 = vunpack.i.l.s16 %v6439_v23 }
  0xd5   : > { %943 = vst [vmem:[#allocation1 + $0x3] ss:$9 sm:$0xff] %v6424_v2  ;;  %v489_v24 = vpack.c.bf16 %v473_v18, %v473_v18 }
  0xd6   : > { %945 = vst [vmem:[#allocation1 + $0x4] ss:$9 sm:$0xff] %v6428_v9 }
  0xd7   : > { %9600 = vst [vmem:[#allocation16_spill] sm:$0xff] %v6439_v23  ;;  %v521_v43 = vrot.slane %v489_v24, 3 }
  0xd8   : > { %v446_v27 = vpop.f32.mrf.mxu0  ;;  %9603 = vst [vmem:[#allocation19_spill] sm:$0xff] %v6452_v46 }
  0xd9   : > { %v447_v44 = vadd.f32 %v6290_v28, %v446_v27  ;;  %9604 = vst [vmem:[#allocation20_spill] sm:$0xff] %v6459_v50  ;;  %v629_v52 = vsel %vm535_vm2, %v489_v24, %v521_v43  ;;  %v632_v53 = vsel %vm539_vm3, %v489_v24, %v521_v43  ;;  %v6465_v55 = vsel %vm530_vm1, %v489_v24, %v521_v43 }
  0xda   : > { %9605 = vst [vmem:[#allocation21_spill] sm:$0xff] %v6465_v55  ;;  %v6467_v61 = vrot.slane %v629_v52, 1  ;;  %v6470_v5 = vrot.slane %v632_v53, 2  ;;  %v635_v12 = vsel %vm543_vm4, %v489_v24, %v521_v43  ;;  %v790_v14 = vunpack.i.h.s16 %v6465_v55 }
  0xdb   : > { %v474_v13 = vmax.f32 %v447_v44, 0.0  ;;  %v788_v44 = vunpack.i.h.s16 %v9428_v15  ;;  %v6481_v52 = vrot.slane %v635_v12, 3 }
  0xdc   : > { %9606 = vst [vmem:[#allocation22_spill] sm:$0xff] %v6467_v61  ;;  %v792_v17 = vunpack.i.h.s16 %v6467_v61  ;;  %v794_v20 = vunpack.i.h.s16 %v6470_v5  ;;  %v6484_v53 = vpack.i.b16 %v6467_v61, %v790_v14 }
  0xdd   : > { %v6445_v36 = vld [vmem:[#allocation1] sm:$0xff]  ;;  %9607 = vst [vmem:[#allocation23_spill] sm:$0xff] %v6470_v5  ;;  %v490_v16 = vpack.c.bf16 %v474_v13, %v474_v13  ;;  %v6490_v43 = vpack.i.b16 %v6465_v55, %v788_v44  ;;  %v6502_v12 = vunpack.i.h.s16 %v6481_v52 }
  0xde   : > { %9602 = vst [vmem:[#allocation18_spill] sm:$0xff] %v6445_v36  ;;  %v6493_v13 = vpack.i.b16 %v6470_v5, %v792_v17 }
  0xdf   : > { %948 = vst [vmem:[#allocation1] ss:$9 sm:$0xff] %v6441_v26  ;;  %v522_v21 = vrot.slane %v490_v16, 3 }
  0xe0   : > { %950 = vst [vmem:[#allocation1 + $0x1] ss:$9 sm:$0xff] %v6443_v34  ;;  %v448_v18 = vpop.f32.mrf.mxu0 }
  0xe1   : > { %952 = vst [vmem:[#allocation1 + $0x2] ss:$9 sm:$0xff] %v6456_v47  ;;  %v449_v27 = vadd.f32 %v6290_v28, %v448_v18  ;;  %v6487_v24 = vsel %vm530_vm1, %v490_v16, %v522_v21  ;;  %v6498_v18 = vpack.i.b16 %v6481_v52, %v794_v20  ;;  %v645_v25 = vsel %vm539_vm3, %v490_v16, %v522_v21 }
  0xe2   : > { %954 = vst [vmem:[#allocation1 + $0x3] ss:$9 sm:$0xff] %v6447_v42  ;;  %v6517_v57 = vrot.slane %v645_v25, 2 }
  0xe3   : > { %956 = vst [vmem:[#allocation1 + $0x4] ss:$9 sm:$0xff] %v6452_v46  ;;  %v475_v15 = vmax.f32 %v449_v27, 0.0  ;;  %v642_v27 = vsel %vm535_vm2, %v490_v16, %v522_v21 }
  0xe4   : > { %9608 = vst [vmem:[#allocation24_spill] sm:$0xff] %v6481_v52 }
  0xe5   : > { %9609 = vst [vmem:[#allocation25_spill] sm:$0xff] %v6484_v53  ;;  %v491_v14 = vpack.c.bf16 %v475_v15, %v475_v15  ;;  %v648_v15 = vsel %vm543_vm4, %v490_v16, %v522_v21 }
  0xe6   : > { %9610 = vst [vmem:[#allocation26_spill] sm:$0xff] %v6490_v43 }
  0xe7   : > { %9611 = vst [vmem:[#allocation27_spill] sm:$0xff] %v6493_v13  ;;  %v523_v17 = vrot.slane %v491_v14, 3 }
  0xe8   : > { %9613 = vst [vmem:[#allocation29_spill] sm:$0xff] %v6498_v18  ;;  %v451_v44 = vpop.f32.mrf.mxu0 }
  0xe9   : > { %9614 = vst [vmem:[#allocation30_spill] sm:$0xff] %v6502_v12  ;;  %v655_v20 = vsel %vm535_vm2, %v491_v14, %v523_v17  ;;  %v6522_v31 = vsel %vm539_vm3, %v491_v14, %v523_v17 }
  0xea   : > { %v6495_v51 = vld [vmem:[#allocation1] sm:$0xff]  ;;  %v6512_v36 = vrot.slane %v655_v20, 1  ;;  %9618 = vst [vmem:[#allocation34_spill] sm:$0xff] %v6522_v31  ;;  %v9453_v21 = vrot.slane %v6522_v31, 2  ;;  %v661_v20 = vsel %vm543_vm4, %v491_v14, %v523_v17 }
  0xeb   : > { %9612 = vst [vmem:[#allocation28_spill] sm:$0xff] %v6495_v51  ;;  %v452_v51 = vadd.f32 %v6290_v28, %v451_v44 }
  0xec   : > { %959 = vst [vmem:[#allocation1] ss:$9 sm:$0xff] %v6490_v43  ;;  %v6515_v43 = vrot.slane %v642_v27, 1 }
  0xed   : > { %961 = vst [vmem:[#allocation1 + $0x1] ss:$9 sm:$0xff] %v6484_v53  ;;  %v476_v7 = vmax.f32 %v452_v51, 0.0  ;;  %v6528_v51 = vsel %vm530_vm1, %v491_v14, %v523_v17  ;;  %v810_v53 = vunpack.i.h.s16 %v9453_v21 }
  0xee   : > { %963 = vst [vmem:[#allocation1 + $0x2] ss:$9 sm:$0xff] %v6493_v13  ;;  %v6549_v13 = vrot.slane %v661_v20, 3 }
  0xef   : > { %965 = vst [vmem:[#allocation1 + $0x3] ss:$9 sm:$0xff] %v6498_v18  ;;  %v492_v0 = vpack.c.bf16 %v476_v7, %v476_v7  ;;  %v6524_v18 = vrot.slane %v648_v15, 3  ;;  %v6531_v7 = vunpack.i.l.s16 %v6512_v36 }
  0xf0   : > { %967 = vst [vmem:[#allocation1 + $0x4] ss:$9 sm:$0xff] %v6502_v12  ;;  %v453_v46 = vpop.f32.mrf.mxu0 }
  0xf1   : > { %9615 = vst [vmem:[#allocation31_spill] sm:$0xff] %v6512_v36  ;;  %v524_v3 = vrot.slane %v492_v0, 3 }
  0xf2   : > { %9616 = vst [vmem:[#allocation32_spill] sm:$0xff] %v6515_v43 }
  0xf3   : > { %9619 = vst [vmem:[#allocation35_spill] sm:$0xff] %v6531_v7  ;;  %v668_v25 = vsel %vm535_vm2, %v492_v0, %v524_v3  ;;  %v6536_v16 = vsel %vm543_vm4, %v492_v0, %v524_v3  ;;  %v6543_v27 = vsel %vm530_vm1, %v492_v0, %v524_v3  ;;  %v671_v12 = vsel %vm539_vm3, %v492_v0, %v524_v3 }
  0xf4   : > { %9620 = vst [vmem:[#allocation36_spill] sm:$0xff] %v6543_v27  ;;  %v6545_v15 = vrot.slane %v668_v25, 1  ;;  %v814_v14 = vunpack.i.h.s16 %v6543_v27  ;;  %v6557_v25 = vrot.slane %v671_v12, 2 }
  0xf5   : > { %9622 = vst [vmem:[#allocation38_spill] sm:$0xff] %v6549_v13 }
  0xf6   : > { %9621 = vst [vmem:[#allocation37_spill] sm:$0xff] %v6545_v15  ;;  %v816_v50 = vunpack.i.h.s16 %v6545_v15  ;;  %v6564_v3 = vpack.i.b16 %v6545_v15, %v814_v14  ;;  %v6576_v12 = vunpack.i.h.s16 %v6557_v25 }
  0xf7   : > { %v6519_v44 = vld [vmem:[#allocation1] sm:$0xff]  ;;  %9623 = vst [vmem:[#allocation39_spill] sm:$0xff] %v6557_v25 }
  0xf8   : > { %9617 = vst [vmem:[#allocation33_spill] sm:$0xff] %v6519_v44  ;;  %v454_v44 = vadd.f32 %v6290_v28, %v453_v46  ;;  %v456_v17 = vpop.f32.mrf.mxu0  ;;  %v6561_v46 = vpack.i.b16 %v6549_v13, %v810_v53  ;;  %v6572_v21 = vpack.i.b16 %v6557_v25, %v816_v50 }
  0xf9   : > { %970 = vst [vmem:[#allocation1] ss:$9 sm:$0xff] %v6515_v43  ;;  %v457_v2 = vadd.f32 %v6290_v28, %v456_v17 }
  0xfa   : > { %972 = vst [vmem:[#allocation1 + $0x1] ss:$9 sm:$0xff] %v6517_v57  ;;  %v477_v62 = vmax.f32 %v454_v44, 0.0 }
  0xfb   : > { %974 = vst [vmem:[#allocation1 + $0x2] ss:$9 sm:$0xff] %v6524_v18  ;;  %v478_v17 = vmax.f32 %v457_v2, 0.0 }
  0xfc   : > { %976 = vst [vmem:[#allocation1 + $0x3] ss:$9 sm:$0xff] %v6528_v51  ;;  %v493_v44 = vpack.c.bf16 %v477_v62, %v477_v62 }
  0xfd   : > { %978 = vst [vmem:[#allocation1 + $0x4] ss:$9 sm:$0xff] %v6531_v7  ;;  %v812_v7 = vunpack.i.h.s16 %v6549_v13  ;;  %v494_v53 = vpack.c.bf16 %v478_v17, %v478_v17 }
  0xfe   : > { %9624 = vst [vmem:[#allocation40_spill] sm:$0xff] %v6561_v46 }
  0xff   : > { %9625 = vst [vmem:[#allocation41_spill] sm:$0xff] %v6564_v3  ;;  %v6569_v20 = vpack.i.b16 %v6543_v27, %v812_v7  ;;  %v526_v14 = vrot.slane %v494_v53, 3  ;;  %v525_v7 = vrot.slane %v493_v44, 3 }
 0x100   : > { %9628 = vst [vmem:[#allocation44_spill] sm:$0xff] %v6572_v21 }
 0x101   : > { %9627 = vst [vmem:[#allocation43_spill] sm:$0xff] %v6569_v20  ;;  %v6583_v50 = vsel %vm535_vm2, %v494_v53, %v526_v14  ;;  %v6586_v2 = vsel %vm539_vm3, %v494_v53, %v526_v14  ;;  %v681_v62 = vsel %vm535_vm2, %v493_v44, %v525_v7  ;;  %v684_v17 = vsel %vm539_vm3, %v493_v44, %v525_v7 }
 0x102   : > { %9629 = vst [vmem:[#allocation45_spill] sm:$0xff] %v6576_v12 }
 0x103   : > { %9630 = vst [vmem:[#allocation46_spill] sm:$0xff] %v6583_v50  ;;  %v6602_v50 = vrot.slane %v681_v62, 1 }
 0x104   : > { %v6566_v0 = vld [vmem:[#allocation1] sm:$0xff]  ;;  %9631 = vst [vmem:[#allocation47_spill] sm:$0xff] %v6586_v2  ;;  %v6604_v2 = vrot.slane %v684_v17, 2 }
 0x105   : > { %9626 = vst [vmem:[#allocation42_spill] sm:$0xff] %v6566_v0  ;;  %v6589_v0 = vsel %vm543_vm4, %v494_v53, %v526_v14 }
 0x106   : > { %981 = vst [vmem:[#allocation1] ss:$9 sm:$0xff] %v6561_v46  ;;  %v6594_v46 = vsel %vm530_vm1, %v494_v53, %v526_v14  ;;  %v736_v53 = vunpack.i.h.s16 %v6299_v39  ;;  %v738_v14 = vunpack.i.h.s16 %v6301_v40 }
 0x107   : > { %983 = vst [vmem:[#allocation1 + $0x1] ss:$9 sm:$0xff] %v6569_v20 }
 0x108   : > { %985 = vst [vmem:[#allocation1 + $0x2] ss:$9 sm:$0xff] %v6564_v3  ;;  %v5683_v62 = vpack.i.b16 %v6301_v40, %v736_v53 }
 0x109   : > { %987 = vst [vmem:[#allocation1 + $0x3] ss:$9 sm:$0xff] %v6572_v21  ;;  %v687_v21 = vsel %vm543_vm4, %v493_v44, %v525_v7 }
 0x10a   : > { %989 = vst [vmem:[#allocation1 + $0x4] ss:$9 sm:$0xff] %v6576_v12  ;;  %v6600_v12 = vsel %vm530_vm1, %v493_v44, %v525_v7  ;;  %v6610_v20 = vrot.slane %v687_v21, 3  ;;  %v734_v44 = vunpack.i.h.s16 %v6294_v35  ;;  %v740_v21 = vunpack.i.h.s16 %v6303_v41 }
 0x10b   : > { %9632 = vst [vmem:[#allocation48_spill] sm:$0xff] %v6589_v0  ;;  %v6608_v0 = vunpack.i.l.s16 %v6594_v46  ;;  %v742_v35 = vunpack.i.h.s16 %v6312_v48 }
 0x10c   : > { %9633 = vst [vmem:[#allocation49_spill] sm:$0xff] %v6594_v46  ;;  %v5682_v7 = vpack.i.b16 %v6299_v39, %v734_v44  ;;  %v5685_v31 = vpack.i.b16 %v6312_v48, %v740_v21 }
 0x10d   : > { %9635 = vst [vmem:[#allocation51_spill] sm:$0xff] %v6600_v12 }
 0x10e   : > { %9636 = vst [vmem:[#allocation52_spill] sm:$0xff] %v6602_v50 }
 0x10f   : > { %9637 = vst [vmem:[#allocation53_spill] sm:$0xff] %v6604_v2 }
 0x110   : > { %9638 = vst [vmem:[#allocation54_spill] sm:$0xff] %v6608_v0 }
 0x111   : > { %v6597_v3 = vld [vmem:[#allocation1] sm:$0xff]  ;;  %9639 = vst [vmem:[#allocation55_spill] sm:$0xff] %v6610_v20 }
 0x112   : > { %9634 = vst [vmem:[#allocation50_spill] sm:$0xff] %v6597_v3  ;;  %v5684_v3 = vpack.i.b16 %v6303_v41, %v738_v14  ;;  %v762_v14 = vunpack.i.h.s16 %v6383_v32 }
 0x113   : > { %992 = vst [vmem:[#allocation1] ss:$9 sm:$0xff] %v6600_v12 }
 0x114   : > { %994 = vst [vmem:[#allocation1 + $0x1] ss:$9 sm:$0xff] %v6602_v50 }
 0x115   : > { %996 = vst [vmem:[#allocation1 + $0x2] ss:$9 sm:$0xff] %v6604_v2 }
 0x116   : > { %998 = vst [vmem:[#allocation1 + $0x3] ss:$9 sm:$0xff] %v6610_v20 }
 0x117   : > { %1000 = vst [vmem:[#allocation1 + $0x4] ss:$9 sm:$0xff] %v6608_v0  ;;  %v6628_v0 = vrot.slane %v6334_v1, 2  ;;  %v756_v1 = vunpack.i.h.s16 %v6368_v22 }
 0x119   : > { %v9467_v53 = vunpack.i.l.s16 %v6628_v0 }
 0x11e   : > { %v6622_v17 = vld [vmem:[#allocation1] sm:$0xff] }
 0x11f   : > { %9640 = vst [vmem:[#allocation56_spill] sm:$0xff] %v6622_v17  ;;  %v6660_v17 = vunpack.i.h.s16 %v6365_v19 }
 0x120   : > { %1048 = vst [vmem:[#allocation1] ss:$9 sm:$0xff] %v5682_v7  ;;  %v6644_v7 = vpack.i.b16 %v6376_v29, %v756_v1 }
 0x121   : > { %1051 = vst [vmem:[#allocation1 + $0x1] ss:$9 sm:$0xff] %v5683_v62 }
 0x122   : > { %1054 = vst [vmem:[#allocation1 + $0x2] ss:$9 sm:$0xff] %v5684_v3  ;;  %v760_v3 = vunpack.i.h.s16 %v6378_v30 }
 0x123   : > { %1057 = vst [vmem:[#allocation1 + $0x3] ss:$9 sm:$0xff] %v5685_v31  ;;  %v758_v31 = vunpack.i.h.s16 %v6376_v29 }
 0x124   : > { %1060 = vst [vmem:[#allocation1 + $0x4] ss:$9 sm:$0xff] %v742_v35  ;;  %v6652_v35 = vpack.i.b16 %v6383_v32, %v760_v3 }
 0x125   : > { %v6647_v62 = vpack.i.b16 %v6378_v30, %v758_v31  ;;  %9643 = vst [vmem:[#allocation59_spill] sm:$0xff] %v6660_v17  ;;  %v6666_v31 = vrot.slane %v6415_v60, 1  ;;  %v782_v60 = vunpack.i.h.s16 %v6456_v47 }
 0x126   : > { %9641 = vst [vmem:[#allocation57_spill] sm:$0xff] %v6652_v35 }
 0x127   : > { %v6673_v3 = vunpack.i.l.s16 %v6666_v31 }
 0x129   : > { %9644 = vst [vmem:[#allocation60_spill] sm:$0xff] %v6673_v3 }
 0x12b   : > { %v6630_v44 = vld [vmem:[#allocation1] sm:$0xff] }
 0x12c   : > { %1064 = vst [vmem:[#allocation1] ss:$9 sm:$0xff] %v6321_v54  ;;  %1159 = vrot.lane.b32.xlu1 %v6630_v44, %s6149_s25 }
 0x12d   : > { %1066 = vst [vmem:[#allocation1 + $0x1] ss:$9 sm:$0xff] %v6323_v56 }
 0x12e   : > { %1068 = vst [vmem:[#allocation1 + $0x2] ss:$9 sm:$0xff] %v6330_v63 }
 0x12f   : > { %1070 = vst [vmem:[#allocation1 + $0x3] ss:$9 sm:$0xff] %v6340_v4 }
 0x130   : > { %1072 = vst [vmem:[#allocation1 + $0x4] ss:$9 sm:$0xff] %v9467_v53  ;;  %v6656_v53 = vpack.i.b16 %v6365_v19, %v762_v14  ;;  %v778_v14 = vunpack.i.h.s16 %v6441_v26 }
 0x132   : > { %9642 = vst [vmem:[#allocation58_spill] sm:$0xff] %v6656_v53 }
 0x137   : > { %v6649_v21 = vld [vmem:[#allocation1] sm:$0xff] }
 0x138   : > { %1076 = vst [vmem:[#allocation1] ss:$9 sm:$0xff] %v6644_v7  ;;  %1161 = vrot.lane.b32.xlu1 %v6649_v21, %s6149_s25  ;;  %v9684_v21 = vld [vmem:[#allocation43_spill] sm:$0xff] }
 0x139   : > { %1078 = vst [vmem:[#allocation1 + $0x1] ss:$9 sm:$0xff] %v6647_v62 }
 0x13a   : > { %1080 = vst [vmem:[#allocation1 + $0x2] ss:$9 sm:$0xff] %v6652_v35 }
 0x13b   : > { %1082 = vst [vmem:[#allocation1 + $0x3] ss:$9 sm:$0xff] %v6656_v53  ;;  %v784_v53 = vunpack.i.h.s16 %v6447_v42 }
 0x13c   : > { %1084 = vst [vmem:[#allocation1 + $0x4] ss:$9 sm:$0xff] %v6660_v17  ;;  %v780_v17 = vunpack.i.h.s16 %v6443_v34 }
 0x143   : > { %v6668_v1 = vld [vmem:[#allocation1] sm:$0xff] }
 0x144   : > { %1088 = vst [vmem:[#allocation1] ss:$9 sm:$0xff] %v6392_v37  ;;  %v6683_v37 = vpack.i.b16 %v6443_v34, %v778_v14  ;;  %v458_v14 = vpop.f32.mrf.mxu0  ;;  %1163 = vrot.lane.b32.xlu1 %v6668_v1, %s6149_s25  ;;  %v9690_v1 = vld [vmem:[#allocation46_spill] sm:$0xff] }
 0x145   : > { %1090 = vst [vmem:[#allocation1 + $0x1] ss:$9 sm:$0xff] %v6394_v38  ;;  %v6686_v38 = vpack.i.b16 %v6456_v47, %v780_v17 }
 0x146   : > { %1092 = vst [vmem:[#allocation1 + $0x2] ss:$9 sm:$0xff] %v6400_v45  ;;  %v6699_v45 = vunpack.i.h.s16 %v6439_v23 }
 0x147   : > { %1094 = vst [vmem:[#allocation1 + $0x3] ss:$9 sm:$0xff] %v6412_v59  ;;  %v6691_v59 = vpack.i.b16 %v6447_v42, %v782_v60  ;;  %v459_v60 = vadd.f32 %v6290_v28, %v458_v14  ;;  %v804_v28 = vunpack.i.h.s16 %v6524_v18 }
 0x148   : > { %1096 = vst [vmem:[#allocation1 + $0x4] ss:$9 sm:$0xff] %v6673_v3  ;;  %v6695_v3 = vpack.i.b16 %v6439_v23, %v784_v53  ;;  %v6709_v53 = vunpack.i.l.s16 %v6487_v24 }
 0x149   : > { %9645 = vst [vmem:[#allocation61_spill] sm:$0xff] %v6683_v37 }
 0x14a   : > { %9646 = vst [vmem:[#allocation62_spill] sm:$0xff] %v6686_v38 }
 0x14b   : > { %9647 = vst [vmem:[#allocation63_spill] sm:$0xff] %v6691_v59 }
 0x14c   : > { %9648 = vst [vmem:[#allocation64_spill] sm:$0xff] %v6695_v3 }
 0x14d   : > { %9649 = vst [vmem:[#allocation65_spill] sm:$0xff] %v6699_v45 }
 0x14e   : > { %9650 = vst [vmem:[#allocation66_spill] sm:$0xff] %v6709_v53 }
 0x14f   : > { %v6688_v35 = vld [vmem:[#allocation1] sm:$0xff] }
 0x150   : > { %1100 = vst [vmem:[#allocation1] ss:$9 sm:$0xff] %v6683_v37  ;;  %1165 = vrot.lane.b32.xlu2 %v6688_v35, %s6149_s25  ;;  %v9680_v35 = vld [vmem:[#allocation34_spill] sm:$0xff] }
 0x151   : > { %1102 = vst [vmem:[#allocation1 + $0x1] ss:$9 sm:$0xff] %v6686_v38  ;;  %v806_v38 = vunpack.i.h.s16 %v6528_v51 }
 0x152   : > { %1104 = vst [vmem:[#allocation1 + $0x2] ss:$9 sm:$0xff] %v6691_v59 }
 0x153   : > { %1106 = vst [vmem:[#allocation1 + $0x3] ss:$9 sm:$0xff] %v6695_v3  ;;  %v479_v3 = vmax.f32 %v459_v60, 0.0 }
 0x154   : > { %1108 = vst [vmem:[#allocation1 + $0x4] ss:$9 sm:$0xff] %v6699_v45  ;;  %v800_v45 = vunpack.i.h.s16 %v6515_v43 }
 0x155   : > { %v6716_v59 = vpack.c.bf16 %v479_v3, %v479_v3 }
 0x15b   : > { %v6704_v17 = vld [vmem:[#allocation1] sm:$0xff] }
 0x15c   : > { %1112 = vst [vmem:[#allocation1] ss:$9 sm:$0xff] %v6465_v55  ;;  %v802_v55 = vunpack.i.h.s16 %v6517_v57  ;;  %1167 = vrot.lane.b32.xlu1 %v6704_v17, %s6149_s25 }
 0x15d   : > { %1114 = vst [vmem:[#allocation1 + $0x1] ss:$9 sm:$0xff] %v6467_v61  ;;  %v6720_v61 = vrot.slane %v6716_v59, 3 }
 0x15e   : > { %1116 = vst [vmem:[#allocation1 + $0x2] ss:$9 sm:$0xff] %v6470_v5  ;;  %v6724_v5 = vpack.i.b16 %v6517_v57, %v800_v45  ;;  %v6738_v60 = vpack.i.b16 %v6524_v18, %v802_v55  ;;  %v6743_v45 = vpack.i.b16 %v6528_v51, %v804_v28  ;;  %v6757_v55 = vrot.slane %v6536_v16, 3 }
 0x15f   : > { %1118 = vst [vmem:[#allocation1 + $0x3] ss:$9 sm:$0xff] %v6481_v52  ;;  %v6730_v14 = vsel %vm539_vm3, %v6716_v59, %v6720_v61  ;;  %v6735_v3 = vsel %vm543_vm4, %v6716_v59, %v6720_v61  ;;  %v6747_v52 = vpack.i.b16 %v6512_v36, %v806_v38  ;;  %v824_v16 = vunpack.i.h.s16 %v6602_v50 }
 0x160   : > { %1120 = vst [vmem:[#allocation1 + $0x4] ss:$9 sm:$0xff] %v6709_v53  ;;  %v6764_v38 = vunpack.i.l.s16 %v6757_v55 }
 0x161   : > { %9651 = vst [vmem:[#allocation67_spill] sm:$0xff] %v6724_v5 }
 0x162   : > { %9652 = vst [vmem:[#allocation68_spill] sm:$0xff] %v6730_v14  ;;  %v6751_v14 = vunpack.i.h.s16 %v6512_v36 }
 0x163   : > { %9653 = vst [vmem:[#allocation69_spill] sm:$0xff] %v6735_v3  ;;  %v826_v3 = vunpack.i.h.s16 %v6604_v2 }
 0x164   : > { %9655 = vst [vmem:[#allocation71_spill] sm:$0xff] %v6751_v14 }
 0x165   : > { %9657 = vst [vmem:[#allocation73_spill] sm:$0xff] %v6764_v38 }
 0x167   : > { %v6740_v53 = vld [vmem:[#allocation1] sm:$0xff] }
 0x168   : > { %9654 = vst [vmem:[#allocation70_spill] sm:$0xff] %v6740_v53  ;;  %v822_v53 = vunpack.i.h.s16 %v6600_v12 }
 0x169   : > { %1124 = vst [vmem:[#allocation1] ss:$9 sm:$0xff] %v6724_v5 }
 0x16a   : > { %1126 = vst [vmem:[#allocation1 + $0x1] ss:$9 sm:$0xff] %v6738_v60 }
 0x16b   : > { %1128 = vst [vmem:[#allocation1 + $0x2] ss:$9 sm:$0xff] %v6743_v45 }
 0x16c   : > { %1130 = vst [vmem:[#allocation1 + $0x3] ss:$9 sm:$0xff] %v6747_v52 }
 0x16d   : > { %1132 = vst [vmem:[#allocation1 + $0x4] ss:$9 sm:$0xff] %v6751_v14 }
 0x174   : > { %v6759_v28 = vld [vmem:[#allocation1] sm:$0xff] }
 0x175   : > { %9656 = vst [vmem:[#allocation72_spill] sm:$0xff] %v6759_v28  ;;  %v6773_v28 = vpack.i.b16 %v6602_v50, %v822_v53  ;;  %v6790_v53 = vunpack.i.h.s16 %v6594_v46 }
 0x176   : > { %1136 = vst [vmem:[#allocation1] ss:$9 sm:$0xff] %v6549_v13  ;;  %v828_v13 = vunpack.i.h.s16 %v6610_v20 }
 0x177   : > { %1138 = vst [vmem:[#allocation1 + $0x1] ss:$9 sm:$0xff] %v6543_v27  ;;  %v6776_v27 = vpack.i.b16 %v6604_v2, %v824_v16 }
 0x178   : > { %1140 = vst [vmem:[#allocation1 + $0x2] ss:$9 sm:$0xff] %v6545_v15 }
 0x179   : > { %1142 = vst [vmem:[#allocation1 + $0x3] ss:$9 sm:$0xff] %v6557_v25  ;;  %v6782_v25 = vpack.i.b16 %v6610_v20, %v826_v3 }
 0x17a   : > { %1144 = vst [vmem:[#allocation1 + $0x4] ss:$9 sm:$0xff] %v6764_v38  ;;  %v6786_v38 = vpack.i.b16 %v6594_v46, %v828_v13  ;;  %v9662_v13 = vrot.slane %v6315_v49, 1  ;;  %v6831_v49 = vpack.i.b16 %v6666_v31, %v6428_v9 }
 0x17b   : > { %9660 = vst [vmem:[#allocation76_spill] sm:$0xff] %v6790_v53 }
 0x17c   : > { %9659 = vst [vmem:[#allocation75_spill] sm:$0xff] %v6786_v38  ;;  %v743_v3 = vunpack.i.l.s16 %v9662_v13  ;;  %v9666_v13 = vld [vmem:[#allocation12_spill] sm:$0xff] }
 0x17d   : > { %9665 = vst [vmem:[#allocation80_spill] sm:$0xff] %v6831_v49 }
 0x181   : > { %v6779_v14 = vld [vmem:[#allocation1] sm:$0xff] }
 0x182   : > { %9658 = vst [vmem:[#allocation74_spill] sm:$0xff] %v6779_v14 }
 0x183   : > { %1148 = vst [vmem:[#allocation1] ss:$9 sm:$0xff] %v6773_v28 }
 0x184   : > { %1150 = vst [vmem:[#allocation1 + $0x1] ss:$9 sm:$0xff] %v6776_v27 }
 0x185   : > { %1152 = vst [vmem:[#allocation1 + $0x2] ss:$9 sm:$0xff] %v6782_v25 }
 0x186   : > { %1154 = vst [vmem:[#allocation1 + $0x3] ss:$9 sm:$0xff] %v6786_v38 }
 0x187   : > { %1156 = vst [vmem:[#allocation1 + $0x4] ss:$9 sm:$0xff] %v6790_v53  ;;  %v6808_v53 = vpack.i.b16 %v6628_v0, %v6353_v10 }
 0x189   : > { %9663 = vst [vmem:[#allocation78_spill] sm:$0xff] %v6808_v53 }
 0x18e   : > { %v6795_v16 = vld [vmem:[#allocation1] sm:$0xff] }
 0x18f   : > { %9661 = vst [vmem:[#allocation77_spill] sm:$0xff] %v6795_v16  ;;  %v9669_v16 = vld [vmem:[#allocation20_spill] sm:$0xff] }
 0x190   : > { %1195 = vst [vmem:[#allocation1] ss:$9 sm:$0xff] %v6299_v39  ;;  %v9515_v39 = vunpack.i.h.s16 %v6628_v0 }
 0x191   : > { %1197 = vst [vmem:[#allocation1 + $0x1] ss:$9 sm:$0xff] %v6301_v40 }
 0x192   : > { %1199 = vst [vmem:[#allocation1 + $0x2] ss:$9 sm:$0xff] %v6303_v41  ;;  %v6821_v41 = vunpack.i.l.s16 %v6387_v33  ;;  %v9668_v33 = vld [vmem:[#allocation14_spill] sm:$0xff] }
 0x193   : > { %1202 = vst [vmem:[#allocation1 + $0x3] ss:$9 sm:$0xff] %v6312_v48 }
 0x194   : > { %1205 = vst [vmem:[#allocation1 + $0x4] ss:$9 sm:$0xff] %v743_v3  ;;  %v6835_v3 = vunpack.i.h.s16 %v6666_v31 }
 0x195   : > { %9664 = vst [vmem:[#allocation79_spill] sm:$0xff] %v6821_v41 }
 0x196   : > { %9667 = vst [vmem:[#allocation12_spill] sm:$0xff] %v6835_v3 }
 0x19b   : > { %v6803_v14 = vld [vmem:[#allocation1] sm:$0xff] }
 0x19c   : > { %1208 = vst [vmem:[#allocation1] ss:$9 sm:$0xff] %v6344_v6  ;;  %1280 = vrot.lane.b32.xlu1 %v6803_v14, %s6150_s26 }
 0x19d   : > { %1209 = vst [vmem:[#allocation1 + $0x1] ss:$9 sm:$0xff] %v6349_v8 }
 0x19e   : > { %1210 = vst [vmem:[#allocation1 + $0x2] ss:$9 sm:$0xff] %v6357_v11 }
 0x19f   : > { %1212 = vst [vmem:[#allocation1 + $0x3] ss:$9 sm:$0xff] %v6808_v53 }
 0x1a0   : > { %1214 = vst [vmem:[#allocation1 + $0x4] ss:$9 sm:$0xff] %v9515_v39 }
 0x1a7   : > { %v6816_v40 = vld [vmem:[#allocation1] sm:$0xff] }
 0x1a8   : > { %1217 = vst [vmem:[#allocation1] ss:$9 sm:$0xff] %v6376_v29  ;;  %1282 = vrot.lane.b32.xlu2 %v6816_v40, %s6150_s26  ;;  %v9697_v40 = vld [vmem:[#allocation19_spill] sm:$0xff] }
 0x1a9   : > { %1218 = vst [vmem:[#allocation1 + $0x1] ss:$9 sm:$0xff] %v6378_v30 }
 0x1aa   : > { %1219 = vst [vmem:[#allocation1 + $0x2] ss:$9 sm:$0xff] %v6383_v32 }
 0x1ab   : > { %1221 = vst [vmem:[#allocation1 + $0x3] ss:$9 sm:$0xff] %v6365_v19 }
 0x1ac   : > { %1223 = vst [vmem:[#allocation1 + $0x4] ss:$9 sm:$0xff] %v6821_v41  ;;  %v9670_v41 = vrot.slane %v9669_v16, 3  ;;  %v9674_v16 = vld [vmem:[#allocation30_spill] sm:$0xff] }
 0x1ae   : > { %v6846_v19 = vunpack.i.l.s16 %v9670_v41  ;;  %v6860_v41 = vpack.i.b16 %v6487_v24, %v9674_v16 }
 0x1b0   : > { %9671 = vst [vmem:[#allocation14_spill] sm:$0xff] %v6846_v19 }
 0x1b3   : > { %v6826_v48 = vld [vmem:[#allocation1] sm:$0xff] }
 0x1b4   : > { %1226 = vst [vmem:[#allocation1] ss:$9 sm:$0xff] %v6409_v58  ;;  %1284 = vrot.lane.b32.xlu1 %v6826_v48, %s6150_s26  ;;  %v9700_v48 = vld [vmem:[#allocation35_spill] sm:$0xff] }
 0x1b5   : > { %1227 = vst [vmem:[#allocation1 + $0x1] ss:$9 sm:$0xff] %v9666_v13 }
 0x1b6   : > { %1228 = vst [vmem:[#allocation1 + $0x2] ss:$9 sm:$0xff] %v9668_v33 }
 0x1b7   : > { %1230 = vst [vmem:[#allocation1 + $0x3] ss:$9 sm:$0xff] %v6831_v49  ;;  %v9676_v49 = vld [vmem:[#allocation27_spill] sm:$0xff] }
 0x1b8   : > { %1232 = vst [vmem:[#allocation1 + $0x4] ss:$9 sm:$0xff] %v6835_v3  ;;  %v9673_v3 = vld [vmem:[#allocation25_spill] sm:$0xff] }
 0x1b9   : > { %9675 = vst [vmem:[#allocation25_spill] sm:$0xff] %v6860_v41 }
 0x1bf   : > { %v6840_v39 = vld [vmem:[#allocation1] sm:$0xff] }
 0x1c0   : > { %1235 = vst [vmem:[#allocation1] ss:$9 sm:$0xff] %v6443_v34  ;;  %1286 = vrot.lane.b32.xlu2 %v6840_v39, %s6150_s26 }
 0x1c1   : > { %1236 = vst [vmem:[#allocation1 + $0x1] ss:$9 sm:$0xff] %v6456_v47 }
 0x1c2   : > { %1237 = vst [vmem:[#allocation1 + $0x2] ss:$9 sm:$0xff] %v6447_v42 }
 0x1c3   : > { %1239 = vst [vmem:[#allocation1 + $0x3] ss:$9 sm:$0xff] %v6439_v23  ;;  %v6864_v23 = vunpack.i.h.s16 %v6487_v24 }
 0x1c4   : > { %1241 = vst [vmem:[#allocation1 + $0x4] ss:$9 sm:$0xff] %v6846_v19  ;;  %v9678_v19 = vld [vmem:[#allocation29_spill] sm:$0xff] }
 0x1c5   : > { %9677 = vst [vmem:[#allocation27_spill] sm:$0xff] %v6864_v23 }
 0x1cb   : > { %v6851_v31 = vld [vmem:[#allocation1] sm:$0xff] }
 0x1cc   : > { %9672 = vst [vmem:[#allocation20_spill] sm:$0xff] %v6851_v31  ;;  %v9681_v31 = vrot.slane %v9680_v35, 2  ;;  %v9687_v35 = vld [vmem:[#allocation41_spill] sm:$0xff] }
 0x1cd   : > { %1244 = vst [vmem:[#allocation1] ss:$9 sm:$0xff] %v9673_v3 }
 0x1ce   : > { %1245 = vst [vmem:[#allocation1 + $0x1] ss:$9 sm:$0xff] %v9676_v49  ;;  %v6877_v53 = vunpack.i.l.s16 %v9681_v31 }
 0x1cf   : > { %1246 = vst [vmem:[#allocation1 + $0x2] ss:$9 sm:$0xff] %v9678_v19 }
 0x1d0   : > { %1248 = vst [vmem:[#allocation1 + $0x3] ss:$9 sm:$0xff] %v6860_v41 }
 0x1d1   : > { %1250 = vst [vmem:[#allocation1 + $0x4] ss:$9 sm:$0xff] %v6864_v23  ;;  %v9689_v23 = vld [vmem:[#allocation44_spill] sm:$0xff] }
 0x1d2   : > { %9682 = vst [vmem:[#allocation34_spill] sm:$0xff] %v6877_v53 }
 0x1d8   : > { %v6871_v44 = vld [vmem:[#allocation1] sm:$0xff] }
 0x1d9   : > { %9679 = vst [vmem:[#allocation29_spill] sm:$0xff] %v6871_v44  ;;  %v9685_v44 = vld [vmem:[#allocation45_spill] sm:$0xff] }
 0x1da   : > { %1253 = vst [vmem:[#allocation1] ss:$9 sm:$0xff] %v6517_v57  ;;  %v6891_v31 = vpack.i.b16 %v6757_v55, %v9685_v44 }
 0x1db   : > { %1254 = vst [vmem:[#allocation1 + $0x1] ss:$9 sm:$0xff] %v6524_v18 }
 0x1dc   : > { %1255 = vst [vmem:[#allocation1 + $0x2] ss:$9 sm:$0xff] %v6528_v51 }
 0x1dd   : > { %1257 = vst [vmem:[#allocation1 + $0x3] ss:$9 sm:$0xff] %v6512_v36  ;;  %v6895_v36 = vunpack.i.h.s16 %v6757_v55 }
 0x1de   : > { %1259 = vst [vmem:[#allocation1 + $0x4] ss:$9 sm:$0xff] %v6877_v53 }
 0x1df   : > { %9686 = vst [vmem:[#allocation43_spill] sm:$0xff] %v6891_v31 }
 0x1e0   : > { %9688 = vst [vmem:[#allocation41_spill] sm:$0xff] %v6895_v36 }
 0x1e5   : > { %v6884_v24 = vld [vmem:[#allocation1] sm:$0xff] }
 0x1e6   : > { %9683 = vst [vmem:[#allocation81_spill] sm:$0xff] %v6884_v24  ;;  %v696_v24 = vrot.slane %v9690_v1, 1 }
 0x1e7   : > { %1262 = vst [vmem:[#allocation1] ss:$9 sm:$0xff] %v9684_v21 }
 0x1e8   : > { %1263 = vst [vmem:[#allocation1 + $0x1] ss:$9 sm:$0xff] %v9687_v35  ;;  %v6905_v53 = vunpack.i.l.s16 %v696_v24 }
 0x1e9   : > { %1264 = vst [vmem:[#allocation1 + $0x2] ss:$9 sm:$0xff] %v9689_v23 }
 0x1ea   : > { %1266 = vst [vmem:[#allocation1 + $0x3] ss:$9 sm:$0xff] %v6891_v31  ;;  %v9694_v31 = vld [vmem:[#allocation2_spill] sm:$0xff] }
 0x1eb   : > { %1268 = vst [vmem:[#allocation1 + $0x4] ss:$9 sm:$0xff] %v6895_v36 }
 0x1ec   : > { %9692 = vst [vmem:[#allocation46_spill] sm:$0xff] %v6905_v53 }
 0x1f2   : > { %v6901_v17 = vld [vmem:[#allocation1] sm:$0xff] }
 0x1f3   : > { %9691 = vst [vmem:[#allocation44_spill] sm:$0xff] %v6901_v17 }
 0x1f4   : > { %1271 = vst [vmem:[#allocation1] ss:$9 sm:$0xff] %v6602_v50 }
 0x1f5   : > { %1272 = vst [vmem:[#allocation1 + $0x1] ss:$9 sm:$0xff] %v6604_v2 }
 0x1f6   : > { %1273 = vst [vmem:[#allocation1 + $0x2] ss:$9 sm:$0xff] %v6610_v20 }
 0x1f7   : > { %1275 = vst [vmem:[#allocation1 + $0x3] ss:$9 sm:$0xff] %v6594_v46 }
 0x1f8   : > { %1277 = vst [vmem:[#allocation1 + $0x4] ss:$9 sm:$0xff] %v6905_v53 }
 0x1ff   : > { %v6910_v55 = vld [vmem:[#allocation1] sm:$0xff] }
 0x200   : > { %9693 = vst [vmem:[#allocation82_spill] sm:$0xff] %v6910_v55  ;;  %v9695_v55 = vld [vmem:[#allocation6_spill] sm:$0xff] }
 0x201   : > { %1303 = vst [vmem:[#allocation1] ss:$9 sm:$0xff] %v9694_v31 }
 0x202   : > { %1305 = vst [vmem:[#allocation1 + $0x1] ss:$9 sm:$0xff] %v6344_v6 }
 0x203   : > { %1307 = vst [vmem:[#allocation1 + $0x2] ss:$9 sm:$0xff] %v6349_v8 }
 0x204   : > { %1309 = vst [vmem:[#allocation1 + $0x3] ss:$9 sm:$0xff] %v6357_v11 }
 0x205   : > { %1311 = vst [vmem:[#allocation1 + $0x4] ss:$9 sm:$0xff] %v6353_v10  ;;  %v9696_v10 = vld [vmem:[#allocation10_spill] sm:$0xff] }
 0x20c   : > { %v1312_v1 = vld [vmem:[#allocation1] sm:$0xff] }
 0x20d   : > { %1314 = vst [vmem:[#allocation1] ss:$9 sm:$0xff] %v6368_v22  ;;  %1375 = vrot.lane.b32.xlu2 %v1312_v1, %s6151_s27 }
 0x20e   : > { %1315 = vst [vmem:[#allocation1 + $0x1] ss:$9 sm:$0xff] %v6376_v29 }
 0x20f   : > { %1316 = vst [vmem:[#allocation1 + $0x2] ss:$9 sm:$0xff] %v6378_v30 }
 0x210   : > { %1317 = vst [vmem:[#allocation1 + $0x3] ss:$9 sm:$0xff] %v6383_v32 }
 0x211   : > { %1318 = vst [vmem:[#allocation1 + $0x4] ss:$9 sm:$0xff] %v9695_v55 }
 0x218   : > { %v1319_v31 = vld [vmem:[#allocation1] sm:$0xff] }
 0x219   : > { %1321 = vst [vmem:[#allocation1] ss:$9 sm:$0xff] %v9696_v10  ;;  %v9698_v10 = vld [vmem:[#allocation26_spill] sm:$0xff]  ;;  %1377 = vrot.lane.b32.xlu2 %v1319_v31, %s6151_s27  ;;  %v9718_v31 = vld [vmem:[#allocation7_spill] sm:$0xff] }
 0x21a   : > { %1322 = vst [vmem:[#allocation1 + $0x1] ss:$9 sm:$0xff] %v6409_v58 }
 0x21b   : > { %1323 = vst [vmem:[#allocation1 + $0x2] ss:$9 sm:$0xff] %v9666_v13 }
 0x21c   : > { %1324 = vst [vmem:[#allocation1 + $0x3] ss:$9 sm:$0xff] %v9668_v33 }
 0x21d   : > { %1325 = vst [vmem:[#allocation1 + $0x4] ss:$9 sm:$0xff] %v6428_v9 }
 0x224   : > { %v1326_v14 = vld [vmem:[#allocation1] sm:$0xff] }
 0x225   : > { %1328 = vst [vmem:[#allocation1] ss:$9 sm:$0xff] %v6441_v26  ;;  %v832_v26 = vunpack.i.h.s16 %v696_v24  ;;  %1379 = vrot.lane.b32.xlu2 %v1326_v14, %s6151_s27  ;;  %v9719_v14 = vld [vmem:[#allocation8_spill] sm:$0xff] }
 0x226   : > { %1329 = vst [vmem:[#allocation1 + $0x1] ss:$9 sm:$0xff] %v6443_v34 }
 0x227   : > { %1330 = vst [vmem:[#allocation1 + $0x2] ss:$9 sm:$0xff] %v6456_v47 }
 0x228   : > { %1331 = vst [vmem:[#allocation1 + $0x3] ss:$9 sm:$0xff] %v6447_v42 }
 0x229   : > { %1332 = vst [vmem:[#allocation1 + $0x4] ss:$9 sm:$0xff] %v9697_v40  ;;  %v9702_v40 = vld [vmem:[#allocation40_spill] sm:$0xff] }
 0x230   : > { %v1333_v17 = vld [vmem:[#allocation1] sm:$0xff] }
 0x231   : > { %1335 = vst [vmem:[#allocation1] ss:$9 sm:$0xff] %v9698_v10  ;;  %1381 = vrot.lane.b32.xlu2 %v1333_v17, %s6151_s27  ;;  %v9722_v17 = vld [vmem:[#allocation60_spill] sm:$0xff] }
 0x232   : > { %1336 = vst [vmem:[#allocation1 + $0x1] ss:$9 sm:$0xff] %v9673_v3 }
 0x233   : > { %1337 = vst [vmem:[#allocation1 + $0x2] ss:$9 sm:$0xff] %v9676_v49 }
 0x234   : > { %1338 = vst [vmem:[#allocation1 + $0x3] ss:$9 sm:$0xff] %v9678_v19 }
 0x235   : > { %1339 = vst [vmem:[#allocation1 + $0x4] ss:$9 sm:$0xff] %v9674_v16 }
 0x23c   : > { %v6945_v39 = vld [vmem:[#allocation1] sm:$0xff] }
 0x23d   : > { %9699 = vst [vmem:[#allocation2_spill] sm:$0xff] %v6945_v39 }
 0x23e   : > { %1342 = vst [vmem:[#allocation1] ss:$9 sm:$0xff] %v6515_v43  ;;  %v9706_v43 = vld [vmem:[#allocation48_spill] sm:$0xff] }
 0x23f   : > { %1343 = vst [vmem:[#allocation1 + $0x1] ss:$9 sm:$0xff] %v6517_v57  ;;  %v6970_v16 = vrot.slane %v9706_v43, 3 }
 0x240   : > { %1344 = vst [vmem:[#allocation1 + $0x2] ss:$9 sm:$0xff] %v6524_v18 }
 0x241   : > { %1345 = vst [vmem:[#allocation1 + $0x3] ss:$9 sm:$0xff] %v6528_v51  ;;  %v836_v43 = vunpack.i.h.s16 %v6970_v16 }
 0x242   : > { %1346 = vst [vmem:[#allocation1 + $0x4] ss:$9 sm:$0xff] %v9700_v48  ;;  %v9704_v48 = vld [vmem:[#allocation47_spill] sm:$0xff] }
 0x243   : > { %9707 = vst [vmem:[#allocation47_spill] sm:$0xff] %v6970_v16 }
 0x249   : > { %v6952_v10 = vld [vmem:[#allocation1] sm:$0xff] }
 0x24a   : > { %9701 = vst [vmem:[#allocation83_spill] sm:$0xff] %v6952_v10  ;;  %v6965_v10 = vrot.slane %v9704_v48, 2 }
 0x24b   : > { %1349 = vst [vmem:[#allocation1] ss:$9 sm:$0xff] %v9702_v40  ;;  %v9705_v40 = vld [vmem:[#allocation54_spill] sm:$0xff] }
 0x24c   : > { %1350 = vst [vmem:[#allocation1 + $0x1] ss:$9 sm:$0xff] %v9684_v21  ;;  %v834_v48 = vunpack.i.h.s16 %v6965_v10 }
 0x24d   : > { %1351 = vst [vmem:[#allocation1 + $0x2] ss:$9 sm:$0xff] %v9687_v35 }
 0x24e   : > { %1352 = vst [vmem:[#allocation1 + $0x3] ss:$9 sm:$0xff] %v9689_v23  ;;  %v6989_v24 = vpack.i.b16 %v6970_v16, %v834_v48  ;;  %v9720_v48 = vld [vmem:[#allocation9_spill] sm:$0xff] }
 0x24f   : > { %1353 = vst [vmem:[#allocation1 + $0x4] ss:$9 sm:$0xff] %v9685_v44 }
 0x256   : > { %v6959_v39 = vld [vmem:[#allocation1] sm:$0xff] }
 0x257   : > { %9703 = vst [vmem:[#allocation84_spill] sm:$0xff] %v6959_v39  ;;  %v6975_v39 = vsel %vm530_vm1, %v6716_v59, %v6720_v61 }
 0x258   : > { %1356 = vst [vmem:[#allocation1] ss:$9 sm:$0xff] %v6600_v12  ;;  %v707_v12 = vsel %vm535_vm2, %v6716_v59, %v6720_v61  ;;  %v838_v9 = vunpack.i.h.s16 %v6975_v39  ;;  %v6996_v59 = vpack.i.b16 %v6975_v39, %v836_v43  ;;  %v9721_v43 = vld [vmem:[#allocation11_spill] sm:$0xff] }
 0x259   : > { %1357 = vst [vmem:[#allocation1 + $0x1] ss:$9 sm:$0xff] %v6602_v50  ;;  %v6981_v44 = vrot.slane %v707_v12, 1 }
 0x25a   : > { %1358 = vst [vmem:[#allocation1 + $0x2] ss:$9 sm:$0xff] %v6604_v2 }
 0x25b   : > { %1359 = vst [vmem:[#allocation1 + $0x3] ss:$9 sm:$0xff] %v6610_v20  ;;  %v7003_v61 = vunpack.i.h.s16 %v6981_v44 }
 0x25c   : > { %1360 = vst [vmem:[#allocation1 + $0x4] ss:$9 sm:$0xff] %v9705_v40  ;;  %v6985_v40 = vpack.i.b16 %v6965_v10, %v832_v26  ;;  %v7000_v26 = vpack.i.b16 %v6981_v44, %v838_v9  ;;  %v9712_v9 = vunpack.i.l.s16 %v6628_v0 }
 0x25d   : > { %9709 = vst [vmem:[#allocation85_spill] sm:$0xff] %v6996_v59 }
 0x25e   : > { %9710 = vst [vmem:[#allocation86_spill] sm:$0xff] %v7000_v26 }
 0x263   : > { %v6991_v55 = vld [vmem:[#allocation1] sm:$0xff] }
 0x264   : > { %9708 = vst [vmem:[#allocation48_spill] sm:$0xff] %v6991_v55  ;;  %v9726_v55 = vld [vmem:[#allocation64_spill] sm:$0xff] }
 0x265   : > { %1364 = vst [vmem:[#allocation1] ss:$9 sm:$0xff] %v6985_v40 }
 0x266   : > { %1366 = vst [vmem:[#allocation1 + $0x1] ss:$9 sm:$0xff] %v6989_v24 }
 0x267   : > { %1368 = vst [vmem:[#allocation1 + $0x2] ss:$9 sm:$0xff] %v6996_v59 }
 0x268   : > { %1370 = vst [vmem:[#allocation1 + $0x3] ss:$9 sm:$0xff] %v7000_v26 }
 0x269   : > { %1372 = vst [vmem:[#allocation1 + $0x4] ss:$9 sm:$0xff] %v7003_v61 }
 0x270   : > { %v7009_v12 = vld [vmem:[#allocation1] sm:$0xff] }
 0x271   : > { %9711 = vst [vmem:[#allocation87_spill] sm:$0xff] %v7009_v12  ;;  %v9725_v12 = vld [vmem:[#allocation63_spill] sm:$0xff] }
 0x272   : > { %1398 = vst [vmem:[#allocation1] ss:$9 sm:$0xff] %v6321_v54  ;;  %v9714_v54 = vld [vmem:[#allocation57_spill] sm:$0xff] }
 0x273   : > { %1400 = vst [vmem:[#allocation1 + $0x1] ss:$9 sm:$0xff] %v6323_v56  ;;  %v9715_v56 = vld [vmem:[#allocation58_spill] sm:$0xff] }
 0x274   : > { %1402 = vst [vmem:[#allocation1 + $0x2] ss:$9 sm:$0xff] %v6330_v63  ;;  %v9716_v63 = vld [vmem:[#allocation59_spill] sm:$0xff] }
 0x275   : > { %1404 = vst [vmem:[#allocation1 + $0x3] ss:$9 sm:$0xff] %v6340_v4 }
 0x276   : > { %1406 = vst [vmem:[#allocation1 + $0x4] ss:$9 sm:$0xff] %v9712_v9 }
 0x27d   : > { %v7018_v1 = vld [vmem:[#allocation1] sm:$0xff] }
 0x27e   : > { %9713 = vst [vmem:[#allocation88_spill] sm:$0xff] %v7018_v1  ;;  %v9724_v1 = vld [vmem:[#allocation62_spill] sm:$0xff] }
 0x27f   : > { %1408 = vst [vmem:[#allocation1] ss:$9 sm:$0xff] %v6644_v7 }
 0x280   : > { %1409 = vst [vmem:[#allocation1 + $0x1] ss:$9 sm:$0xff] %v6647_v62 }
 0x281   : > { %1410 = vst [vmem:[#allocation1 + $0x2] ss:$9 sm:$0xff] %v9714_v54 }
 0x282   : > { %1411 = vst [vmem:[#allocation1 + $0x3] ss:$9 sm:$0xff] %v9715_v56 }
 0x283   : > { %1412 = vst [vmem:[#allocation1 + $0x4] ss:$9 sm:$0xff] %v9716_v63 }
 0x28a   : > { %v7026_v4 = vld [vmem:[#allocation1] sm:$0xff] }
 0x28b   : > { %9717 = vst [vmem:[#allocation57_spill] sm:$0xff] %v7026_v4  ;;  %v9727_v4 = vld [vmem:[#allocation65_spill] sm:$0xff] }
 0x28c   : > { %1414 = vst [vmem:[#allocation1] ss:$9 sm:$0xff] %v9718_v31 }
 0x28d   : > { %1415 = vst [vmem:[#allocation1 + $0x1] ss:$9 sm:$0xff] %v9719_v14  ;;  %v9729_v14 = vld [vmem:[#allocation21_spill] sm:$0xff] }
 0x28e   : > { %1416 = vst [vmem:[#allocation1 + $0x2] ss:$9 sm:$0xff] %v9720_v48  ;;  %v9730_v48 = vld [vmem:[#allocation22_spill] sm:$0xff] }
 0x28f   : > { %1417 = vst [vmem:[#allocation1 + $0x3] ss:$9 sm:$0xff] %v9721_v43  ;;  %v9731_v43 = vld [vmem:[#allocation23_spill] sm:$0xff] }
 0x290   : > { %1418 = vst [vmem:[#allocation1 + $0x4] ss:$9 sm:$0xff] %v9722_v17  ;;  %v9732_v17 = vld [vmem:[#allocation24_spill] sm:$0xff] }
 0x297   : > { %v7033_v9 = vld [vmem:[#allocation1] sm:$0xff] }
 0x298   : > { %9723 = vst [vmem:[#allocation58_spill] sm:$0xff] %v7033_v9  ;;  %v9733_v9 = vld [vmem:[#allocation66_spill] sm:$0xff] }
 0x299   : > { %1420 = vst [vmem:[#allocation1] ss:$9 sm:$0xff] %v6683_v37 }
 0x29a   : > { %1421 = vst [vmem:[#allocation1 + $0x1] ss:$9 sm:$0xff] %v9724_v1 }
 0x29b   : > { %1422 = vst [vmem:[#allocation1 + $0x2] ss:$9 sm:$0xff] %v9725_v12 }
 0x29c   : > { %1423 = vst [vmem:[#allocation1 + $0x3] ss:$9 sm:$0xff] %v9726_v55 }
 0x29d   : > { %1424 = vst [vmem:[#allocation1 + $0x4] ss:$9 sm:$0xff] %v9727_v4 }
 0x2a4   : > { %v7040_v31 = vld [vmem:[#allocation1] sm:$0xff] }
 0x2a5   : > { %9728 = vst [vmem:[#allocation59_spill] sm:$0xff] %v7040_v31  ;;  %v9735_v31 = vld [vmem:[#allocation71_spill] sm:$0xff] }
 0x2a6   : > { %1426 = vst [vmem:[#allocation1] ss:$9 sm:$0xff] %v9729_v14 }
 0x2a7   : > { %1427 = vst [vmem:[#allocation1 + $0x1] ss:$9 sm:$0xff] %v9730_v48  ;;  %v9737_v48 = vld [vmem:[#allocation38_spill] sm:$0xff] }
 0x2a8   : > { %1428 = vst [vmem:[#allocation1 + $0x2] ss:$9 sm:$0xff] %v9731_v43  ;;  %v9738_v43 = vld [vmem:[#allocation36_spill] sm:$0xff] }
 0x2a9   : > { %1429 = vst [vmem:[#allocation1 + $0x3] ss:$9 sm:$0xff] %v9732_v17 }
 0x2aa   : > { %1430 = vst [vmem:[#allocation1 + $0x4] ss:$9 sm:$0xff] %v9733_v9  ;;  %v9739_v9 = vld [vmem:[#allocation39_spill] sm:$0xff] }
 0x2b1   : > { %v7047_v37 = vld [vmem:[#allocation1] sm:$0xff] }
 0x2b2   : > { %9734 = vst [vmem:[#allocation62_spill] sm:$0xff] %v7047_v37  ;;  %v9740_v37 = vld [vmem:[#allocation73_spill] sm:$0xff] }
 0x2b3   : > { %1432 = vst [vmem:[#allocation1] ss:$9 sm:$0xff] %v6724_v5 }
 0x2b4   : > { %1433 = vst [vmem:[#allocation1 + $0x1] ss:$9 sm:$0xff] %v6738_v60 }
 0x2b5   : > { %1434 = vst [vmem:[#allocation1 + $0x2] ss:$9 sm:$0xff] %v6743_v45 }
 0x2b6   : > { %1435 = vst [vmem:[#allocation1 + $0x3] ss:$9 sm:$0xff] %v6747_v52 }
 0x2b7   : > { %1436 = vst [vmem:[#allocation1 + $0x4] ss:$9 sm:$0xff] %v9735_v31 }
 0x2be   : > { %v7054_v14 = vld [vmem:[#allocation1] sm:$0xff] }
 0x2bf   : > { %9736 = vst [vmem:[#allocation63_spill] sm:$0xff] %v7054_v14  ;;  %v9742_v14 = vld [vmem:[#allocation76_spill] sm:$0xff] }
 0x2c0   : > { %1438 = vst [vmem:[#allocation1] ss:$9 sm:$0xff] %v9737_v48  ;;  %v9743_v48 = vld [vmem:[#allocation68_spill] sm:$0xff] }
 0x2c1   : > { %1439 = vst [vmem:[#allocation1 + $0x1] ss:$9 sm:$0xff] %v9738_v43  ;;  %v7069_v43 = vrot.slane %v9743_v48, 2  ;;  %v9746_v48 = vld [vmem:[#allocation78_spill] sm:$0xff] }
 0x2c2   : > { %1440 = vst [vmem:[#allocation1 + $0x2] ss:$9 sm:$0xff] %v6545_v15 }
 0x2c3   : > { %1441 = vst [vmem:[#allocation1 + $0x3] ss:$9 sm:$0xff] %v9739_v9 }
 0x2c4   : > { %1442 = vst [vmem:[#allocation1 + $0x4] ss:$9 sm:$0xff] %v9740_v37 }
 0x2cb   : > { %v7061_v5 = vld [vmem:[#allocation1] sm:$0xff] }
 0x2cc   : > { %9741 = vst [vmem:[#allocation64_spill] sm:$0xff] %v7061_v5  ;;  %v9548_v5 = vunpack.i.l.s16 %v7069_v43 }
 0x2cd   : > { %1444 = vst [vmem:[#allocation1] ss:$9 sm:$0xff] %v6773_v28 }
 0x2ce   : > { %1445 = vst [vmem:[#allocation1 + $0x1] ss:$9 sm:$0xff] %v6776_v27 }
 0x2cf   : > { %1446 = vst [vmem:[#allocation1 + $0x2] ss:$9 sm:$0xff] %v6782_v25 }
 0x2d0   : > { %1447 = vst [vmem:[#allocation1 + $0x3] ss:$9 sm:$0xff] %v6786_v38 }
 0x2d1   : > { %1448 = vst [vmem:[#allocation1 + $0x4] ss:$9 sm:$0xff] %v9742_v14 }
 0x2d8   : > { %v7071_v15 = vld [vmem:[#allocation1] sm:$0xff] }
 0x2d9   : > { %9744 = vst [vmem:[#allocation65_spill] sm:$0xff] %v7071_v15  ;;  %v9747_v15 = vunpack.i.h.s16 %v6628_v0 }
 0x2da   : > { %1451 = vst [vmem:[#allocation1] ss:$9 sm:$0xff] %v6965_v10 }
 0x2db   : > { %1453 = vst [vmem:[#allocation1 + $0x1] ss:$9 sm:$0xff] %v6970_v16 }
 0x2dc   : > { %1455 = vst [vmem:[#allocation1 + $0x2] ss:$9 sm:$0xff] %v6975_v39 }
 0x2dd   : > { %1457 = vst [vmem:[#allocation1 + $0x3] ss:$9 sm:$0xff] %v6981_v44 }
 0x2de   : > { %1459 = vst [vmem:[#allocation1 + $0x4] ss:$9 sm:$0xff] %v9548_v5  ;;  %v9748_v5 = vld [vmem:[#allocation4_spill] sm:$0xff] }
 0x2e5   : > { %v7080_v38 = vld [vmem:[#allocation1] sm:$0xff] }
 0x2e6   : > { %9745 = vst [vmem:[#allocation24_spill] sm:$0xff] %v7080_v38 }
 0x2e7   : > { %1463 = vst [vmem:[#allocation1] ss:$9 sm:$0xff] %v6344_v6  ;;  %v9749_v6 = vld [vmem:[#allocation79_spill] sm:$0xff] }
 0x2e8   : > { %1465 = vst [vmem:[#allocation1 + $0x1] ss:$9 sm:$0xff] %v6349_v8 }
 0x2e9   : > { %1467 = vst [vmem:[#allocation1 + $0x2] ss:$9 sm:$0xff] %v6357_v11  ;;  %v9750_v11 = vld [vmem:[#allocation80_spill] sm:$0xff] }
 0x2ea   : > { %1469 = vst [vmem:[#allocation1 + $0x3] ss:$9 sm:$0xff] %v9746_v48  ;;  %v9753_v48 = vld [vmem:[#allocation14_spill] sm:$0xff] }
 0x2eb   : > { %1471 = vst [vmem:[#allocation1 + $0x4] ss:$9 sm:$0xff] %v9747_v15  ;;  %v9751_v15 = vld [vmem:[#allocation12_spill] sm:$0xff] }
 0x2f2   : > { %v1472_v16 = vld [vmem:[#allocation1] sm:$0xff] }
 0x2f3   : > { %1474 = vst [vmem:[#allocation1] ss:$9 sm:$0xff] %v6376_v29  ;;  %1532 = vrot.lane.b32.xlu1 %v1472_v16, %s6149_s25  ;;  %v9752_v16 = vld [vmem:[#allocation16_spill] sm:$0xff] }
 0x2f4   : > { %1475 = vst [vmem:[#allocation1 + $0x1] ss:$9 sm:$0xff] %v6378_v30 }
 0x2f5   : > { %1476 = vst [vmem:[#allocation1 + $0x2] ss:$9 sm:$0xff] %v6383_v32 }
 0x2f6   : > { %1477 = vst [vmem:[#allocation1 + $0x3] ss:$9 sm:$0xff] %v9748_v5 }
 0x2f7   : > { %1478 = vst [vmem:[#allocation1 + $0x4] ss:$9 sm:$0xff] %v9749_v6 }
 0x2fe   : > { %v1479_v8 = vld [vmem:[#allocation1] sm:$0xff] }
 0x2ff   : > { %1481 = vst [vmem:[#allocation1] ss:$9 sm:$0xff] %v6409_v58  ;;  %1534 = vrot.lane.b32.xlu0 %v1479_v8, %s6149_s25 }
 0x300   : > { %1482 = vst [vmem:[#allocation1 + $0x1] ss:$9 sm:$0xff] %v9666_v13 }
 0x301   : > { %1483 = vst [vmem:[#allocation1 + $0x2] ss:$9 sm:$0xff] %v9668_v33 }
 0x302   : > { %1484 = vst [vmem:[#allocation1 + $0x3] ss:$9 sm:$0xff] %v9750_v11 }
 0x303   : > { %1485 = vst [vmem:[#allocation1 + $0x4] ss:$9 sm:$0xff] %v9751_v15 }
 0x30a   : > { %v1486_v0 = vld [vmem:[#allocation1] sm:$0xff] }
 0x30b   : > { %1488 = vst [vmem:[#allocation1] ss:$9 sm:$0xff] %v6443_v34  ;;  %1536 = vrot.lane.b32.xlu0 %v1486_v0, %s6149_s25  ;;  %v9754_v0 = vld [vmem:[#allocation27_spill] sm:$0xff] }
 0x30c   : > { %1489 = vst [vmem:[#allocation1 + $0x1] ss:$9 sm:$0xff] %v6456_v47 }
 0x30d   : > { %1490 = vst [vmem:[#allocation1 + $0x2] ss:$9 sm:$0xff] %v6447_v42 }
 0x30e   : > { %1491 = vst [vmem:[#allocation1 + $0x3] ss:$9 sm:$0xff] %v9752_v16 }
 0x30f   : > { %1492 = vst [vmem:[#allocation1 + $0x4] ss:$9 sm:$0xff] %v9753_v48  ;;  %v9755_v48 = vld [vmem:[#allocation31_spill] sm:$0xff] }
 0x316   : > { %v1493_v8 = vld [vmem:[#allocation1] sm:$0xff] }
 0x317   : > { %1495 = vst [vmem:[#allocation1] ss:$9 sm:$0xff] %v9673_v3  ;;  %1538 = vrot.lane.b32.xlu0 %v1493_v8, %s6149_s25  ;;  %v9756_v8 = vld [vmem:[#allocation34_spill] sm:$0xff] }
 0x318   : > { %1496 = vst [vmem:[#allocation1 + $0x1] ss:$9 sm:$0xff] %v9676_v49 }
 0x319   : > { %1497 = vst [vmem:[#allocation1 + $0x2] ss:$9 sm:$0xff] %v9678_v19 }
 0x31a   : > { %1498 = vst [vmem:[#allocation1 + $0x3] ss:$9 sm:$0xff] %v6860_v41  ;;  %v9769_v41 = vld [vmem:[#allocation40_spill] sm:$0xff] }
 0x31b   : > { %1499 = vst [vmem:[#allocation1 + $0x4] ss:$9 sm:$0xff] %v9754_v0  ;;  %v9757_v0 = vld [vmem:[#allocation43_spill] sm:$0xff] }
 0x322   : > { %v1500_v38 = vld [vmem:[#allocation1] sm:$0xff] }
 0x323   : > { %1502 = vst [vmem:[#allocation1] ss:$9 sm:$0xff] %v6517_v57  ;;  %1540 = vrot.lane.b32.xlu0 %v1500_v38, %s6149_s25 }
 0x324   : > { %1503 = vst [vmem:[#allocation1 + $0x1] ss:$9 sm:$0xff] %v6524_v18 }
 0x325   : > { %1504 = vst [vmem:[#allocation1 + $0x2] ss:$9 sm:$0xff] %v6528_v51 }
 0x326   : > { %1505 = vst [vmem:[#allocation1 + $0x3] ss:$9 sm:$0xff] %v9755_v48  ;;  %v9760_v48 = vld [vmem:[#allocation10_spill] sm:$0xff] }
 0x327   : > { %1506 = vst [vmem:[#allocation1 + $0x4] ss:$9 sm:$0xff] %v9756_v8 }
 0x32e   : > { %v1507_v16 = vld [vmem:[#allocation1] sm:$0xff] }
 0x32f   : > { %1509 = vst [vmem:[#allocation1] ss:$9 sm:$0xff] %v9684_v21  ;;  %1542 = vrot.lane.b32.xlu1 %v1507_v16, %s6149_s25 }
 0x330   : > { %1510 = vst [vmem:[#allocation1 + $0x1] ss:$9 sm:$0xff] %v9687_v35 }
 0x331   : > { %1511 = vst [vmem:[#allocation1 + $0x2] ss:$9 sm:$0xff] %v9689_v23 }
 0x332   : > { %1512 = vst [vmem:[#allocation1 + $0x3] ss:$9 sm:$0xff] %v9757_v0  ;;  %v7136_v0 = vpack.i.b16 %v7069_v43, %v7003_v61 }
 0x333   : > { %1513 = vst [vmem:[#allocation1 + $0x4] ss:$9 sm:$0xff] %v6895_v36  ;;  %v9552_v36 = vunpack.i.h.s16 %v7069_v43 }
 0x334   : > { %9758 = vst [vmem:[#allocation71_spill] sm:$0xff] %v7136_v0 }
 0x33a   : > { %v7124_v38 = vld [vmem:[#allocation1] sm:$0xff] }
 0x33b   : > { %1516 = vst [vmem:[#allocation1] ss:$9 sm:$0xff] %v6602_v50 }
 0x33c   : > { %1517 = vst [vmem:[#allocation1 + $0x1] ss:$9 sm:$0xff] %v6604_v2 }
 0x33d   : > { %1518 = vst [vmem:[#allocation1 + $0x2] ss:$9 sm:$0xff] %v6610_v20 }
 0x33e   : > { %1519 = vst [vmem:[#allocation1 + $0x3] ss:$9 sm:$0xff] %v6594_v46  ;;  %v9759_v46 = vld [vmem:[#allocation6_spill] sm:$0xff] }
 0x33f   : > { %1520 = vst [vmem:[#allocation1 + $0x4] ss:$9 sm:$0xff] %v6905_v53 }
 0x346   : > { %v7131_v16 = vld [vmem:[#allocation1] sm:$0xff] }
 0x347   : > { %1523 = vst [vmem:[#allocation1] ss:$9 sm:$0xff] %v6989_v24 }
 0x348   : > { %1524 = vst [vmem:[#allocation1 + $0x1] ss:$9 sm:$0xff] %v6996_v59 }
 0x349   : > { %1525 = vst [vmem:[#allocation1 + $0x2] ss:$9 sm:$0xff] %v7000_v26 }
 0x34a   : > { %1527 = vst [vmem:[#allocation1 + $0x3] ss:$9 sm:$0xff] %v7136_v0  ;;  %v9762_v0 = vld [vmem:[#allocation17_spill] sm:$0xff] }
 0x34b   : > { %1529 = vst [vmem:[#allocation1 + $0x4] ss:$9 sm:$0xff] %v9552_v36 }
 0x352   : > { %v7144_v53 = vld [vmem:[#allocation1] sm:$0xff] }
 0x353   : > { %1555 = vst [vmem:[#allocation1] ss:$9 sm:$0xff] %v6368_v22  ;;  %v9761_v22 = vld [vmem:[#allocation15_spill] sm:$0xff] }
 0x354   : > { %1557 = vst [vmem:[#allocation1 + $0x1] ss:$9 sm:$0xff] %v6376_v29 }
 0x355   : > { %1559 = vst [vmem:[#allocation1 + $0x2] ss:$9 sm:$0xff] %v6378_v30 }
 0x356   : > { %1561 = vst [vmem:[#allocation1 + $0x3] ss:$9 sm:$0xff] %v6383_v32 }
 0x357   : > { %1563 = vst [vmem:[#allocation1 + $0x4] ss:$9 sm:$0xff] %v9759_v46  ;;  %v9763_v46 = vld [vmem:[#allocation19_spill] sm:$0xff] }
 0x35e   : > { %v1564_v8 = vld [vmem:[#allocation1] sm:$0xff] }
 0x35f   : > { %1566 = vst [vmem:[#allocation1] ss:$9 sm:$0xff] %v9760_v48  ;;  %1627 = vrot.lane.b32.xlu0 %v1564_v8, %s6150_s26  ;;  %v9764_v8 = vld [vmem:[#allocation26_spill] sm:$0xff] }
 0x360   : > { %1567 = vst [vmem:[#allocation1 + $0x1] ss:$9 sm:$0xff] %v6409_v58 }
 0x361   : > { %1568 = vst [vmem:[#allocation1 + $0x2] ss:$9 sm:$0xff] %v9666_v13 }
 0x362   : > { %1569 = vst [vmem:[#allocation1 + $0x3] ss:$9 sm:$0xff] %v9668_v33 }
 0x363   : > { %1570 = vst [vmem:[#allocation1 + $0x4] ss:$9 sm:$0xff] %v9761_v22  ;;  %v9766_v22 = vld [vmem:[#allocation32_spill] sm:$0xff] }
 0x36a   : > { %v1571_v36 = vld [vmem:[#allocation1] sm:$0xff] }
 0x36b   : > { %1573 = vst [vmem:[#allocation1] ss:$9 sm:$0xff] %v9762_v0  ;;  %1629 = vrot.lane.b32.xlu0 %v1571_v36, %s6150_s26  ;;  %v9765_v36 = vld [vmem:[#allocation30_spill] sm:$0xff] }
 0x36c   : > { %1574 = vst [vmem:[#allocation1 + $0x1] ss:$9 sm:$0xff] %v6443_v34 }
 0x36d   : > { %1575 = vst [vmem:[#allocation1 + $0x2] ss:$9 sm:$0xff] %v6456_v47 }
 0x36e   : > { %1576 = vst [vmem:[#allocation1 + $0x3] ss:$9 sm:$0xff] %v6447_v42 }
 0x36f   : > { %1577 = vst [vmem:[#allocation1 + $0x4] ss:$9 sm:$0xff] %v9763_v46  ;;  %v9767_v46 = vld [vmem:[#allocation35_spill] sm:$0xff] }
 0x376   : > { %v1578_v48 = vld [vmem:[#allocation1] sm:$0xff] }
 0x377   : > { %1580 = vst [vmem:[#allocation1] ss:$9 sm:$0xff] %v9764_v8  ;;  %1631 = vrot.lane.b32.xlu0 %v1578_v48, %s6150_s26  ;;  %v9768_v48 = vld [vmem:[#allocation2_spill] sm:$0xff] }
 0x378   : > { %1581 = vst [vmem:[#allocation1 + $0x1] ss:$9 sm:$0xff] %v9673_v3 }
 0x379   : > { %1582 = vst [vmem:[#allocation1 + $0x2] ss:$9 sm:$0xff] %v9676_v49 }
 0x37a   : > { %1583 = vst [vmem:[#allocation1 + $0x3] ss:$9 sm:$0xff] %v9678_v19 }
 0x37b   : > { %1584 = vst [vmem:[#allocation1 + $0x4] ss:$9 sm:$0xff] %v9765_v36  ;;  %v9770_v36 = vld [vmem:[#allocation45_spill] sm:$0xff] }
 0x382   : > { %v1585_v0 = vld [vmem:[#allocation1] sm:$0xff] }
 0x383   : > { %1587 = vst [vmem:[#allocation1] ss:$9 sm:$0xff] %v9766_v22  ;;  %1633 = vrot.lane.b32.xlu1 %v1585_v0, %s6150_s26  ;;  %v9771_v22 = vld [vmem:[#allocation51_spill] sm:$0xff] }
 0x384   : > { %1588 = vst [vmem:[#allocation1 + $0x1] ss:$9 sm:$0xff] %v6517_v57 }
 0x385   : > { %1589 = vst [vmem:[#allocation1 + $0x2] ss:$9 sm:$0xff] %v6524_v18 }
 0x386   : > { %1590 = vst [vmem:[#allocation1 + $0x3] ss:$9 sm:$0xff] %v6528_v51 }
 0x387   : > { %1591 = vst [vmem:[#allocation1 + $0x4] ss:$9 sm:$0xff] %v9767_v46  ;;  %v9772_v46 = vld [vmem:[#allocation54_spill] sm:$0xff] }
 0x38b   : > { %1383 = vrot.lane.b32.xlu1 %v9768_v48, %s6151_s27  ;;  %v7192_v48 = vld [vmem:[%s9419_s2] ss:$0 sm:$0xff] }
 0x38c   : > { %9773 = vst [vmem:[#allocation39_spill] sm:$0xff] %v7192_v48 }
 0x38e   : > { %v1592_v8 = vld [vmem:[#allocation1] sm:$0xff] }
 0x38f   : > { %1594 = vst [vmem:[#allocation1] ss:$9 sm:$0xff] %v9769_v41  ;;  %1635 = vrot.lane.b32.xlu2 %v1592_v8, %s6150_s26  ;;  %v461_v41 = vpop.f32.mrf.mxu0 }
 0x390   : > { %1595 = vst [vmem:[#allocation1 + $0x1] ss:$9 sm:$0xff] %v9684_v21  ;;  %v462_v8 = vadd.f32 %v7192_v48, %v461_v41 }
 0x391   : > { %1596 = vst [vmem:[#allocation1 + $0x2] ss:$9 sm:$0xff] %v9687_v35 }
 0x392   : > { %1597 = vst [vmem:[#allocation1 + $0x3] ss:$9 sm:$0xff] %v9689_v23 }
 0x393   : > { %1598 = vst [vmem:[#allocation1 + $0x4] ss:$9 sm:$0xff] %v9770_v36  ;;  %v480_v36 = vmax.f32 %v462_v8, 0.0 }
 0x39a   : > { %v1599_v0 = vld [vmem:[#allocation1] sm:$0xff] }
 0x39b   : > { %1601 = vst [vmem:[#allocation1] ss:$9 sm:$0xff] %v9771_v22  ;;  %1637 = vrot.lane.b32.xlu0 %v1599_v0, %s6150_s26  ;;  %v496_v0 = vpack.c.bf16 %v480_v36, %v480_v36 }
 0x39c   : > { %1602 = vst [vmem:[#allocation1 + $0x1] ss:$9 sm:$0xff] %v6602_v50  ;;  %v9774_v50 = vld [vmem:[#allocation69_spill] sm:$0xff] }
 0x39d   : > { %1603 = vst [vmem:[#allocation1 + $0x2] ss:$9 sm:$0xff] %v6604_v2  ;;  %v715_v41 = vrot.slane %v9774_v50, 3 }
 0x39e   : > { %1604 = vst [vmem:[#allocation1 + $0x3] ss:$9 sm:$0xff] %v6610_v20 }
 0x39f   : > { %1605 = vst [vmem:[#allocation1 + $0x4] ss:$9 sm:$0xff] %v9772_v46  ;;  %v528_v46 = vrot.slane %v496_v0, 3 }
 0x3a1   : > { %v726_v20 = vsel %vm543_vm4, %v496_v0, %v528_v46  ;;  %v720_v2 = vsel %vm535_vm2, %v496_v0, %v528_v46  ;;  %v723_v8 = vsel %vm539_vm3, %v496_v0, %v528_v46  ;;  %v7211_v36 = vsel %vm530_vm1, %v496_v0, %v528_v46  ;;  %v9775_v0 = vld [vmem:[#allocation7_spill] sm:$0xff]  ;;  %v9776_v46 = vld [vmem:[#allocation8_spill] sm:$0xff] }
 0x3a2   : > { %v7204_v48 = vrot.slane %v726_v20, 3 }
 0x3a6   : > { %v1606_v22 = vld [vmem:[#allocation1] sm:$0xff] }
 0x3a7   : > { %1608 = vst [vmem:[#allocation1] ss:$9 sm:$0xff] %v6985_v40 }
 0x3a8   : > { %1609 = vst [vmem:[#allocation1 + $0x1] ss:$9 sm:$0xff] %v6989_v24 }
 0x3a9   : > { %1610 = vst [vmem:[#allocation1 + $0x2] ss:$9 sm:$0xff] %v6996_v59  ;;  %v851_v59 = vunpack.i.l.s16 %v7204_v48 }
 0x3aa   : > { %1611 = vst [vmem:[#allocation1 + $0x3] ss:$9 sm:$0xff] %v7000_v26  ;;  %v7215_v26 = vrot.slane %v723_v8, 2  ;;  %v9778_v8 = vld [vmem:[#allocation11_spill] sm:$0xff] }
 0x3ab   : > { %1612 = vst [vmem:[#allocation1 + $0x4] ss:$9 sm:$0xff] %v7003_v61  ;;  %v7213_v61 = vrot.slane %v720_v2, 1 }
 0x3b2   : > { %v7206_v40 = vld [vmem:[#allocation1] sm:$0xff] }
 0x3b3   : > { %1616 = vst [vmem:[#allocation1] ss:$9 sm:$0xff] %v715_v41 }
 0x3b4   : > { %1618 = vst [vmem:[#allocation1 + $0x1] ss:$9 sm:$0xff] %v7211_v36 }
 0x3b5   : > { %1620 = vst [vmem:[#allocation1 + $0x2] ss:$9 sm:$0xff] %v7213_v61 }
 0x3b6   : > { %1622 = vst [vmem:[#allocation1 + $0x3] ss:$9 sm:$0xff] %v7215_v26 }
 0x3b7   : > { %1624 = vst [vmem:[#allocation1 + $0x4] ss:$9 sm:$0xff] %v851_v59  ;;  %v9777_v59 = vld [vmem:[#allocation9_spill] sm:$0xff] }
 0x3be   : > { %v7221_v20 = vld [vmem:[#allocation1] sm:$0xff] }
 0x3bf   : > { %1650 = vst [vmem:[#allocation1] ss:$9 sm:$0xff] %v6644_v7  ;;  %v9779_v7 = vld [vmem:[#allocation60_spill] sm:$0xff] }
 0x3c0   : > { %1652 = vst [vmem:[#allocation1 + $0x1] ss:$9 sm:$0xff] %v6647_v62  ;;  %v9780_v62 = vld [vmem:[#allocation29_spill] sm:$0xff] }
 0x3c1   : > { %1654 = vst [vmem:[#allocation1 + $0x2] ss:$9 sm:$0xff] %v9714_v54 }
 0x3c2   : > { %1656 = vst [vmem:[#allocation1 + $0x3] ss:$9 sm:$0xff] %v9715_v56  ;;  %v9781_v56 = vld [vmem:[#allocation61_spill] sm:$0xff] }
 0x3c3   : > { %1658 = vst [vmem:[#allocation1 + $0x4] ss:$9 sm:$0xff] %v9716_v63  ;;  %v9782_v63 = vld [vmem:[#allocation70_spill] sm:$0xff] }
 0x3ca   : > { %v1659_v2 = vld [vmem:[#allocation1] sm:$0xff] }
 0x3cb   : > { %1661 = vst [vmem:[#allocation1] ss:$9 sm:$0xff] %v9775_v0  ;;  %1722 = vrot.lane.b32.xlu0 %v1659_v2, %s6151_s27  ;;  %v9783_v0 = vld [vmem:[#allocation21_spill] sm:$0xff] }
 0x3cc   : > { %1662 = vst [vmem:[#allocation1 + $0x1] ss:$9 sm:$0xff] %v9776_v46  ;;  %v9784_v46 = vld [vmem:[#allocation22_spill] sm:$0xff] }
 0x3cd   : > { %1663 = vst [vmem:[#allocation1 + $0x2] ss:$9 sm:$0xff] %v9777_v59  ;;  %v9785_v59 = vld [vmem:[#allocation23_spill] sm:$0xff] }
 0x3ce   : > { %1664 = vst [vmem:[#allocation1 + $0x3] ss:$9 sm:$0xff] %v9778_v8  ;;  %v9789_v8 = vld [vmem:[#allocation83_spill] sm:$0xff] }
 0x3cf   : > { %1665 = vst [vmem:[#allocation1 + $0x4] ss:$9 sm:$0xff] %v9779_v7  ;;  %v9791_v7 = vld [vmem:[#allocation38_spill] sm:$0xff] }
 0x3d3   : > { %1290 = vrot.lane.b32.xlu0 %v9780_v62, %s6150_s26  ;;  %v9792_v62 = vld [vmem:[#allocation36_spill] sm:$0xff] }
 0x3d6   : > { %v1666_v54 = vld [vmem:[#allocation1] sm:$0xff] }
 0x3d7   : > { %1668 = vst [vmem:[#allocation1] ss:$9 sm:$0xff] %v9781_v56  ;;  %1724 = vrot.lane.b32.xlu2 %v1666_v54, %s6151_s27  ;;  %v9793_v54 = vld [vmem:[#allocation37_spill] sm:$0xff] }
 0x3d8   : > { %1669 = vst [vmem:[#allocation1 + $0x1] ss:$9 sm:$0xff] %v9724_v1  ;;  %v9786_v1 = vld [vmem:[#allocation66_spill] sm:$0xff] }
 0x3d9   : > { %1670 = vst [vmem:[#allocation1 + $0x2] ss:$9 sm:$0xff] %v9725_v12 }
 0x3da   : > { %1671 = vst [vmem:[#allocation1 + $0x3] ss:$9 sm:$0xff] %v9726_v55  ;;  %v9787_v55 = vld [vmem:[#allocation20_spill] sm:$0xff] }
 0x3db   : > { %1672 = vst [vmem:[#allocation1 + $0x4] ss:$9 sm:$0xff] %v9727_v4  ;;  %v9788_v4 = vld [vmem:[#allocation67_spill] sm:$0xff] }
 0x3df   : > { %1169 = vrot.lane.b32.xlu2 %v9782_v63, %s6149_s25 }
 0x3e2   : > { %v1673_v2 = vld [vmem:[#allocation1] sm:$0xff] }
 0x3e3   : > { %1675 = vst [vmem:[#allocation1] ss:$9 sm:$0xff] %v9783_v0  ;;  %1726 = vrot.lane.b32.xlu0 %v1673_v2, %s6151_s27  ;;  %v9802_v0 = vld [vmem:[#allocation44_spill] sm:$0xff] }
 0x3e4   : > { %1676 = vst [vmem:[#allocation1 + $0x1] ss:$9 sm:$0xff] %v9784_v46  ;;  %v852_v46 = vunpack.i.h.s16 %v7204_v48 }
 0x3e5   : > { %1677 = vst [vmem:[#allocation1 + $0x2] ss:$9 sm:$0xff] %v9785_v59 }
 0x3e6   : > { %1678 = vst [vmem:[#allocation1 + $0x3] ss:$9 sm:$0xff] %v9732_v17  ;;  %v9790_v17 = vld [vmem:[#allocation72_spill] sm:$0xff] }
 0x3e7   : > { %1679 = vst [vmem:[#allocation1 + $0x4] ss:$9 sm:$0xff] %v9786_v1  ;;  %1288 = vrot.lane.b32.xlu2 %v9787_v55, %s6150_s26  ;;  %v7321_v55 = vpop.permute.xlu2 %1165 }
 0x3eb   : > { %1544 = vrot.lane.b32.xlu0 %v7124_v38, %s6149_s25 }
 0x3ee   : > { %v1680_v12 = vld [vmem:[#allocation1] sm:$0xff] }
 0x3ef   : > { %1682 = vst [vmem:[#allocation1] ss:$9 sm:$0xff] %v9788_v4  ;;  %1728 = vrot.lane.b32.xlu1 %v1680_v12, %s6151_s27  ;;  %1385 = vrot.lane.b32.xlu2 %v9789_v8, %s6151_s27  ;;  %v7328_v12 = vpop.permute.xlu1 %1159  ;;  %v7335_v4 = vpop.permute.xlu2 %1282 }
 0x3f0   : > { %1683 = vst [vmem:[#allocation1 + $0x1] ss:$9 sm:$0xff] %v6738_v60 }
 0x3f1   : > { %1684 = vst [vmem:[#allocation1 + $0x2] ss:$9 sm:$0xff] %v6743_v45  ;;  %v9795_v45 = vld [vmem:[#allocation84_spill] sm:$0xff] }
 0x3f2   : > { %1685 = vst [vmem:[#allocation1 + $0x3] ss:$9 sm:$0xff] %v6747_v52  ;;  %v9794_v52 = vld [vmem:[#allocation81_spill] sm:$0xff] }
 0x3f3   : > { %1686 = vst [vmem:[#allocation1 + $0x4] ss:$9 sm:$0xff] %v9735_v31  ;;  %v9796_v31 = vld [vmem:[#allocation75_spill] sm:$0xff] }
 0x3f7   : > { %1639 = vrot.lane.b32.xlu1 %v1606_v22, %s6150_s26  ;;  %1171 = vrot.lane.b32.xlu2 %v9790_v17, %s6149_s25  ;;  %v844_v22 = vunpack.i.h.s16 %v715_v41  ;;  %v9803_v41 = vld [vmem:[#allocation87_spill] sm:$0xff] }
 0x3fa   : > { %v1687_v38 = vld [vmem:[#allocation1] sm:$0xff] }
 0x3fb   : > { %1689 = vst [vmem:[#allocation1] ss:$9 sm:$0xff] %v9791_v7  ;;  %1730 = vrot.lane.b32.xlu0 %v1687_v38, %s6151_s27 }
 0x3fc   : > { %1690 = vst [vmem:[#allocation1 + $0x1] ss:$9 sm:$0xff] %v9792_v62 }
 0x3fd   : > { %1691 = vst [vmem:[#allocation1 + $0x2] ss:$9 sm:$0xff] %v9793_v54 }
 0x3fe   : > { %1692 = vst [vmem:[#allocation1 + $0x3] ss:$9 sm:$0xff] %v9739_v9 }
 0x3ff   : > { %1693 = vst [vmem:[#allocation1 + $0x4] ss:$9 sm:$0xff] %v9740_v37  ;;  %1292 = vrot.lane.b32.xlu2 %v9794_v52, %s6150_s26  ;;  %v9797_v37 = vld [vmem:[#allocation74_spill] sm:$0xff] }
 0x403   : > { %1546 = vrot.lane.b32.xlu0 %v7131_v16, %s6149_s25  ;;  %v9799_v16 = vld [vmem:[#allocation47_spill] sm:$0xff] }
 0x406   : > { %v1694_v60 = vld [vmem:[#allocation1] sm:$0xff] }
 0x407   : > { %1696 = vst [vmem:[#allocation1] ss:$9 sm:$0xff] %v6773_v28  ;;  %1732 = vrot.lane.b32.xlu1 %v1694_v60, %s6151_s27  ;;  %1387 = vrot.lane.b32.xlu2 %v9795_v45, %s6151_s27  ;;  %v9798_v28 = vld [vmem:[#allocation48_spill] sm:$0xff] }
 0x408   : > { %1697 = vst [vmem:[#allocation1 + $0x1] ss:$9 sm:$0xff] %v6776_v27  ;;  %v9800_v27 = vunpack.i.l.s16 %v7069_v43 }
 0x409   : > { %1698 = vst [vmem:[#allocation1 + $0x2] ss:$9 sm:$0xff] %v6782_v25  ;;  %v9801_v25 = vld [vmem:[#allocation77_spill] sm:$0xff] }
 0x40a   : > { %1699 = vst [vmem:[#allocation1 + $0x3] ss:$9 sm:$0xff] %v9796_v31  ;;  %v6043_v31 = vld [vmem:[%s9420_s3 + $0x38] sm:$0xff] }
 0x40b   : > { %1700 = vst [vmem:[#allocation1 + $0x4] ss:$9 sm:$0xff] %v9742_v14  ;;  %1641 = vrot.lane.b32.xlu0 %v7206_v40, %s6150_s26  ;;  %v846_v14 = vunpack.i.h.s16 %v7211_v36  ;;  %v850_v40 = vunpack.i.h.s16 %v7215_v26  ;;  %2544 = vmatpush.bf16.msra.mxu1 %v6043_v31 }
 0x40d   : > { %v5712_v56 = vpack.i.b16 %v7213_v61, %v846_v14  ;;  %v5714_v50 = vpack.i.b16 %v7204_v48, %v850_v40  ;;  %v6048_v40 = vld [vmem:[%s9420_s3 + $0x60] sm:$0xff] }
 0x40f   : > { %1173 = vrot.lane.b32.xlu1 %v9797_v37, %s6149_s25  ;;  %1389 = vrot.lane.b32.xlu2 %v9798_v28, %s6151_s27 }
 0x412   : > { %v1701_v9 = vld [vmem:[#allocation1] sm:$0xff] }
 0x413   : > { %1703 = vst [vmem:[#allocation1] ss:$9 sm:$0xff] %v6965_v10  ;;  %v848_v10 = vunpack.i.h.s16 %v7213_v61 }
 0x414   : > { %1704 = vst [vmem:[#allocation1 + $0x1] ss:$9 sm:$0xff] %v9799_v16  ;;  %v9811_v16 = vld [vmem:[#allocation43_spill] sm:$0xff] }
 0x415   : > { %1705 = vst [vmem:[#allocation1 + $0x2] ss:$9 sm:$0xff] %v6975_v39  ;;  %v7303_v39 = vpop.permute.xlu0 %1534  ;;  %v5713_v2 = vpack.i.b16 %v7215_v26, %v848_v10  ;;  %v6040_v10 = vld [vmem:[%s9420_s3 + $0x20] sm:$0xff] }
 0x416   : > { %1706 = vst [vmem:[#allocation1 + $0x3] ss:$9 sm:$0xff] %v6981_v44  ;;  %v5711_v44 = vpack.i.b16 %v7211_v36, %v844_v22 }
 0x417   : > { %1707 = vst [vmem:[#allocation1 + $0x4] ss:$9 sm:$0xff] %v9800_v27  ;;  %1734 = vrot.lane.b32.xlu1 %v1701_v9, %s6151_s27  ;;  %1175 = vrot.lane.b32.xlu2 %v9801_v25, %s6149_s25  ;;  %v6042_v9 = vld [vmem:[%s9420_s3 + $0x30] sm:$0xff]  ;;  %v9812_v25 = vld [vmem:[#allocation41_spill] sm:$0xff] }
 0x418   : > { %v6050_v27 = vld [vmem:[%s9420_s3 + $0x70] sm:$0xff]  ;;  %2545 = vmatpush.bf16.msra.mxu1 %v6042_v9 }
 0x41d   : > { %v7315_v59 = vpop.permute.xlu0 %1536 }
 0x41e   : > { %v1708_v63 = vld [vmem:[#allocation1] sm:$0xff] }
 0x41f   : > { %1711 = vst [vmem:[#allocation1] ss:$9 sm:$0xff] %v5711_v44  ;;  %1736 = vrot.lane.b32.xlu0 %v1708_v63, %s6151_s27  ;;  %1294 = vrot.lane.b32.xlu1 %v9802_v0, %s6150_s26  ;;  %v9815_v0 = vld [vmem:[#allocation55_spill] sm:$0xff] }
 0x420   : > { %1713 = vst [vmem:[#allocation1 + $0x1] ss:$9 sm:$0xff] %v5712_v56  ;;  %1391 = vrot.lane.b32.xlu2 %v9803_v41, %s6151_s27  ;;  %v9813_v56 = vld [vmem:[#allocation52_spill] sm:$0xff] }
 0x421   : > { %1715 = vst [vmem:[#allocation1 + $0x2] ss:$9 sm:$0xff] %v5713_v2  ;;  %v9814_v2 = vld [vmem:[#allocation53_spill] sm:$0xff]  ;;  %v6047_v41 = vld [vmem:[%s9420_s3 + $0x58] sm:$0xff] }
 0x422   : > { %1717 = vst [vmem:[#allocation1 + $0x3] ss:$9 sm:$0xff] %v5714_v50  ;;  %v6039_v50 = vld [vmem:[%s9420_s3 + $0x18] sm:$0xff] }
 0x423   : > { %1719 = vst [vmem:[#allocation1 + $0x4] ss:$9 sm:$0xff] %v852_v46  ;;  %v9816_v46 = vld [vmem:[#allocation49_spill] sm:$0xff] }
 0x427   : > { %1548 = vrot.lane.b32.xlu0 %v7144_v53, %s6149_s25  ;;  %1643 = vrot.lane.b32.xlu1 %v7221_v20, %s6150_s26  ;;  %v9804_v53 = vld [vmem:[#allocation82_spill] sm:$0xff]  ;;  %v7333_v20 = vpop.permute.xlu0 %1538 }
 0x42a   : > { %v1720_v1 = vld [vmem:[#allocation1] sm:$0xff] }
 0x42b   : > { %1742 = vst [vmem:[#allocation1] ss:$9 sm:$0xff] %v6376_v29 }
 0x42c   : > { %1744 = vst [vmem:[#allocation1 + $0x1] ss:$9 sm:$0xff] %v6378_v30  ;;  %v7342_v30 = vpop.permute.xlu1 %1161 }
 0x42d   : > { %1746 = vst [vmem:[#allocation1 + $0x2] ss:$9 sm:$0xff] %v6383_v32  ;;  %v7345_v32 = vpop.permute.xlu2 %1286 }
 0x42e   : > { %1748 = vst [vmem:[#allocation1 + $0x3] ss:$9 sm:$0xff] %v9748_v5 }
 0x42f   : > { %1750 = vst [vmem:[#allocation1 + $0x4] ss:$9 sm:$0xff] %v9749_v6  ;;  %1738 = vrot.lane.b32.xlu0 %v1720_v1, %s6151_s27  ;;  %1296 = vrot.lane.b32.xlu1 %v9804_v53, %s6150_s26  ;;  %v7347_v5 = vpop.permute.xlu0 %1540  ;;  %v9817_v1 = vld [vmem:[#allocation46_spill] sm:$0xff]  ;;  %v463_v53 = vpop.f32.mrf.mxu0 }
 0x435   : > { %v7352_v8 = vpop.permute.xlu2 %1375 }
 0x436   : > { %v7337_v29 = vld [vmem:[#allocation1] sm:$0xff] }
 0x437   : > { %1753 = vst [vmem:[#allocation1] ss:$9 sm:$0xff] %v6409_v58  ;;  %v7354_v17 = vpop.permute.xlu0 %1627  ;;  %v7357_v58 = vpop.permute.xlu1 %1163 }
 0x438   : > { %1754 = vst [vmem:[#allocation1 + $0x1] ss:$9 sm:$0xff] %v9666_v13  ;;  %v9805_v13 = vld [vmem:[#allocation16_spill] sm:$0xff] }
 0x439   : > { %1755 = vst [vmem:[#allocation1 + $0x2] ss:$9 sm:$0xff] %v9668_v33  ;;  %v9806_v33 = vld [vmem:[#allocation14_spill] sm:$0xff] }
 0x43a   : > { %1756 = vst [vmem:[#allocation1 + $0x3] ss:$9 sm:$0xff] %v9750_v11 }
 0x43b   : > { %1757 = vst [vmem:[#allocation1 + $0x4] ss:$9 sm:$0xff] %v9751_v15 }
 0x43d   : > { %v7365_v15 = vpop.permute.xlu2 %1377 }
 0x43f   : > { %v7363_v11 = vpop.permute.xlu1 %1167  ;;  %v7367_v38 = vpop.permute.xlu0 %1629 }
 0x442   : > { %v7350_v6 = vld [vmem:[#allocation1] sm:$0xff] }
 0x443   : > { %1760 = vst [vmem:[#allocation1] ss:$9 sm:$0xff] %v6443_v34  ;;  %v9807_v34 = vld [vmem:[#allocation25_spill] sm:$0xff] }
 0x444   : > { %1761 = vst [vmem:[#allocation1 + $0x1] ss:$9 sm:$0xff] %v6456_v47 }
 0x445   : > { %1762 = vst [vmem:[#allocation1 + $0x2] ss:$9 sm:$0xff] %v6447_v42  ;;  %v9808_v42 = vld [vmem:[#allocation27_spill] sm:$0xff]  ;;  %v7378_v62 = vpop.permute.xlu2 %1379 }
 0x446   : > { %1763 = vst [vmem:[#allocation1 + $0x3] ss:$9 sm:$0xff] %v9805_v13  ;;  %v9818_v13 = vld [vmem:[#allocation39_spill] sm:$0xff] }
 0x447   : > { %1764 = vst [vmem:[#allocation1 + $0x4] ss:$9 sm:$0xff] %v9806_v33  ;;  %v7376_v47 = vpop.permute.xlu1 %1280  ;;  %v1632_v54 = vpop.permute.xlu0 %1631  ;;  %v464_v33 = vadd.f32 %v9818_v13, %v463_v53 }
 0x44d   : > { %v7391_v45 = vpop.permute.xlu2 %1381 }
 0x44e   : > { %v7369_v7 = vld [vmem:[#allocation1] sm:$0xff] }
 0x44f   : > { %1767 = vst [vmem:[#allocation1] ss:$9 sm:$0xff] %v9673_v3  ;;  %v7383_v60 = vpop.permute.xlu1 %1284  ;;  %v9810_v3 = vld [vmem:[#allocation34_spill] sm:$0xff] }
 0x450   : > { %1768 = vst [vmem:[#allocation1 + $0x1] ss:$9 sm:$0xff] %v9676_v49  ;;  %v7388_v49 = vpop.permute.xlu0 %1637 }
 0x451   : > { %1769 = vst [vmem:[#allocation1 + $0x2] ss:$9 sm:$0xff] %v9678_v19  ;;  %v9809_v19 = vld [vmem:[#allocation31_spill] sm:$0xff] }
 0x452   : > { %1770 = vst [vmem:[#allocation1 + $0x3] ss:$9 sm:$0xff] %v9807_v34 }
 0x453   : > { %1771 = vst [vmem:[#allocation1 + $0x4] ss:$9 sm:$0xff] %v9808_v42 }
 0x455   : > { %v7407_v28 = vpop.permute.xlu2 %1635 }
 0x458   : > { %v7403_v37 = vpop.permute.xlu0 %1722 }
 0x45a   : > { %v7380_v52 = vld [vmem:[#allocation1] sm:$0xff] }
 0x45b   : > { %1774 = vst [vmem:[#allocation1] ss:$9 sm:$0xff] %v6517_v57  ;;  %v6051_v57 = vld [vmem:[%s9420_s3 + $0x78] sm:$0xff] }
 0x45c   : > { %1775 = vst [vmem:[#allocation1 + $0x1] ss:$9 sm:$0xff] %v6524_v18  ;;  %2582 = vmatpush.bf16.msra.mxu2 %v6051_v57  ;;  %v7399_v18 = vpop.permute.xlu1 %1532 }
 0x45d   : > { %1776 = vst [vmem:[#allocation1 + $0x2] ss:$9 sm:$0xff] %v6528_v51 }
 0x45e   : > { %1777 = vst [vmem:[#allocation1 + $0x3] ss:$9 sm:$0xff] %v9809_v19  ;;  %v9819_v19 = vld [vmem:[#allocation58_spill] sm:$0xff] }
 0x45f   : > { %1778 = vst [vmem:[#allocation1 + $0x4] ss:$9 sm:$0xff] %v9810_v3  ;;  %v1872_v3 = vsel %vm1811_vm5, %v9819_v19, %v7315_v59  ;;  %v9820_v59 = vld [vmem:[#allocation57_spill] sm:$0xff] }
 0x460   : > { %2583 = vmatpush.bf16.msra.mxu2 %v6050_v27  ;;  %v7426_v22 = vpop.permute.xlu0 %1290  ;;  %v1890_v31 = vsel %vm392_vm0, %v1872_v3, %v1632_v54  ;;  %v6046_v27 = vld [vmem:[%s9420_s3 + $0x50] sm:$0xff]  ;;  %v1870_v54 = vsel %vm1811_vm5, %v9820_v59, %v7303_v39  ;;  %v6037_v39 = vld [vmem:[%s9420_s3 + $0x8] sm:$0xff]  ;;  %v9829_v59 = vld [vmem:[#allocation88_spill] sm:$0xff] }
 0x464   : > { %v7418_v14 = vpop.permute.xlu1 %1542 }
 0x466   : > { %v7401_v51 = vld [vmem:[#allocation1] sm:$0xff] }
 0x467   : > { %1781 = vst [vmem:[#allocation1] ss:$9 sm:$0xff] %v9684_v21  ;;  %v6049_v21 = vld [vmem:[%s9420_s3 + $0x68] sm:$0xff] }
 0x468   : > { %1782 = vst [vmem:[#allocation1 + $0x1] ss:$9 sm:$0xff] %v9687_v35  ;;  %v1725_v35 = vpop.permute.xlu2 %1724  ;;  %2584 = vmatpush.bf16.msra.mxu2 %v6049_v21  ;;  %v1727_v42 = vpop.permute.xlu0 %1726  ;;  %v9821_v21 = vld [vmem:[#allocation85_spill] sm:$0xff] }
 0x469   : > { %1783 = vst [vmem:[#allocation1 + $0x2] ss:$9 sm:$0xff] %v9689_v23  ;;  %v6041_v23 = vld [vmem:[%s9420_s3 + $0x28] sm:$0xff]  ;;  %v1908_v9 = vsel %vm1848_vm6, %v1890_v31, %v1727_v42 }
 0x46a   : > { %1784 = vst [vmem:[#allocation1 + $0x3] ss:$9 sm:$0xff] %v9811_v16  ;;  %2546 = vmatpush.bf16.msra.mxu1 %v6041_v23  ;;  %v6038_v16 = vld [vmem:[%s9420_s3 + $0x10] sm:$0xff]  ;;  %v481_v23 = vmax.f32 %v464_v33, 0.0  ;;  %v9827_v33 = vld [vmem:[#allocation5_spill] sm:$0xff] }
 0x46b   : > { %1785 = vst [vmem:[#allocation1 + $0x4] ss:$9 sm:$0xff] %v9812_v25  ;;  %v1815_v42 = vsel %vm1811_vm5, %v9827_v33, %v7342_v30 }
 0x46c   : > { %v1634_v63 = vpop.permute.xlu1 %1633  ;;  %2585 = vmatpush.bf16.msra.mxu2 %v6048_v40  ;;  %v7472_v40 = vrot.slane %v1908_v9, 7  ;;  %v7519_v9 = vrot.slane %v7369_v7, 6 }
 0x46e   : > { %2547 = vmatpush.bf16.msra.mxu1 %v6040_v10  ;;  %v1888_v10 = vsel %vm392_vm0, %v1870_v54, %v7367_v38  ;;  %v6053_v38 = vld [vmem:[%s9420_s3 + $0x88] sm:$0xff]  ;;  %v1868_v54 = vsel %vm1811_vm5, %v9829_v59, %v7399_v18 }
 0x46f   : > { %2626 = vmatpush.bf16.msra.mxu3 %v6053_v38 }
 0x470   : > { %2586 = vmatpush.bf16.msra.mxu2 %v6047_v41  ;;  %v7448_v34 = vpop.permute.xlu2 %1169  ;;  %v9824_v41 = vld [vmem:[#allocation71_spill] sm:$0xff] }
 0x472   : > { %v7434_v44 = vld [vmem:[#allocation1] sm:$0xff]  ;;  %2548 = vmatpush.bf16.msra.mxu1 %v6039_v50  ;;  %v6045_v50 = vld [vmem:[%s9420_s3 + $0x48] sm:$0xff] }
 0x473   : > { %1788 = vst [vmem:[#allocation1] ss:$9 sm:$0xff] %v9813_v56  ;;  %v9822_v56 = vld [vmem:[#allocation86_spill] sm:$0xff] }
 0x474   : > { %1789 = vst [vmem:[#allocation1 + $0x1] ss:$9 sm:$0xff] %v9814_v2  ;;  %v7454_v57 = vpop.permute.xlu1 %1383  ;;  %2587 = vmatpush.bf16.msra.mxu2 %v6046_v27  ;;  %v9823_v2 = vld [vmem:[#allocation13_spill] sm:$0xff] }
 0x475   : > { %1790 = vst [vmem:[#allocation1 + $0x2] ss:$9 sm:$0xff] %v9815_v0  ;;  %v1817_v0 = vsel %vm1811_vm5, %v9823_v2, %v7357_v58  ;;  %v497_v58 = vpack.c.bf16 %v481_v23, %v481_v23  ;;  %v6044_v27 = vld [vmem:[%s9420_s3 + $0x40] sm:$0xff] }
 0x476   : > { %1791 = vst [vmem:[#allocation1 + $0x3] ss:$9 sm:$0xff] %v9816_v46  ;;  %2549 = vmatpush.bf16.msra.mxu1 %v6038_v16  ;;  %v1835_v46 = vsel %vm392_vm0, %v1817_v0, %v7383_v60  ;;  %v9828_v60 = vld [vmem:[#allocation59_spill] sm:$0xff]  ;;  %v6036_v16 = vld [vmem:[%s9420_s3] sm:$0xff] }
 0x477   : > { %1792 = vst [vmem:[#allocation1 + $0x4] ss:$9 sm:$0xff] %v9817_v1  ;;  %v9826_v1 = vld [vmem:[#allocation18_spill] sm:$0xff]  ;;  %v7498_v13 = vsel %vm1848_vm6, %v1835_v46, %v7378_v62  ;;  %v1833_v62 = vsel %vm392_vm0, %v1815_v42, %v7335_v4  ;;  %v6052_v4 = vld [vmem:[%s9420_s3 + $0x80] sm:$0xff] }
 0x478   : > { %v1819_v53 = vsel %vm1811_vm5, %v9826_v1, %v7321_v55  ;;  %2588 = vmatpush.bf16.msra.mxu2 %v6045_v50  ;;  %v7508_v3 = vpop.permute.xlu2 %1288  ;;  %v2013_v55 = vsel %vm1969_vm7, %v7498_v13, %v7472_v40  ;;  %2627 = vmatpush.bf16.msra.mxu3 %v6052_v4 }
 0x479   : > { %v1837_v31 = vsel %vm392_vm0, %v1819_v53, %v7345_v32  ;;  %v7532_v32 = vsel %vm1848_vm6, %v1833_v62, %v7365_v15  ;;  %v7547_v15 = vrot.slane %v7350_v6, 6 }
 0x47a   : > { %2550 = vmatpush.bf16.msra.mxu1 %v6037_v39  ;;  %v7537_v23 = vsel %vm1848_vm6, %v1837_v31, %v7391_v45  ;;  %v7566_v39 = vpop.permute.xlu0 %1544 }
 0x47c   : > { %2589 = vmatpush.bf16.msra.mxu2 %v6044_v27 }
 0x47e   : > { %v7463_v25 = vld [vmem:[#allocation1] sm:$0xff]  ;;  %2551 = vmatpush.bf16.msra.mxu1 %v6036_v16 }
 0x47f   : > { %1795 = vst [vmem:[#allocation1] ss:$9 sm:$0xff] %v6989_v24  ;;  %v1906_v24 = vsel %vm1848_vm6, %v1888_v10, %v1725_v35  ;;  %v9825_v35 = vunpack.i.h.s16 %v7069_v43  ;;  %v1874_v43 = vsel %vm1811_vm5, %v9828_v60, %v7333_v20  ;;  %v1729_v20 = vpop.permute.xlu1 %1728 }
 0x480   : > { %1796 = vst [vmem:[#allocation1 + $0x1] ss:$9 sm:$0xff] %v9821_v21  ;;  %v7506_v19 = vrot.slane %v1906_v24, 7  ;;  %v1892_v30 = vsel %vm392_vm0, %v1874_v43, %v1634_v63  ;;  %v529_v63 = vrot.slane %v497_v58, 3  ;;  %v2014_v21 = vsel %vm1971_vm8, %v2013_v55, %v7519_v9  ;;  %v7592_v33 = vpop.permute.xlu2 %1385 }
 0x481   : > { %1797 = vst [vmem:[#allocation1 + $0x2] ss:$9 sm:$0xff] %v9822_v56  ;;  %v1910_v7 = vsel %vm1848_vm6, %v1892_v30, %v1729_v20  ;;  %v7553_v56 = vrot.slane %v7380_v52, 6  ;;  %v1886_v24 = vsel %vm392_vm0, %v1868_v54, %v7354_v17  ;;  %v2016_v52 = vrot.slane %v2014_v21, 4 }
 0x482   : > { %1798 = vst [vmem:[#allocation1 + $0x3] ss:$9 sm:$0xff] %v9824_v41  ;;  %v7544_v10 = vrot.slane %v1910_v7, 7  ;;  %v1980_v45 = vsel %vm535_vm2, %v7532_v32, %v7506_v19  ;;  %v1984_v18 = vsel %vm539_vm3, %v7532_v32, %v7506_v19  ;;  %v731_v0 = vsel %vm530_vm1, %v497_v58, %v529_v63  ;;  %v7610_v4 = vpop.permute.xlu0 %1730 }
 0x483   : > { %1799 = vst [vmem:[#allocation1 + $0x4] ss:$9 sm:$0xff] %v9825_v35  ;;  %v1976_v38 = vsel %vm530_vm1, %v7532_v32, %v7506_v19  ;;  %v1981_v41 = vsel %vm1955_vm9, %v1980_v45, %v7547_v15  ;;  %v1904_v46 = vsel %vm1848_vm6, %v1886_v24, %v7403_v37  ;;  %v1985_v17 = vsel %vm1960_vm11, %v1984_v18, %v7547_v15 }
 0x484   : > { %v2018_v2 = vsel %vm530_vm1, %v7537_v23, %v7544_v10  ;;  %v1978_v1 = vsel %vm1950_vm10, %v1976_v38, %v7547_v15  ;;  %v1983_v53 = vrot.slane %v1981_v41, 1  ;;  %v1930_v37 = vrot.slane %v1904_v46, 7 }
 0x485   : > { %v7570_v50 = vsel %vm1950_vm10, %v2018_v2, %v7553_v56  ;;  %v1987_v60 = vrot.slane %v1985_v17, 2  ;;  %v2153_v55 = vunpack.i.h.s16 %v1978_v1  ;;  %v1931_v20 = vrot.slane %v7337_v29, 6 }
 0x486   : > { %v7584_v58 = vpack.i.b16 %v7570_v50, %v2016_v52  ;;  %v2155_v31 = vunpack.i.h.s16 %v1983_v53 }
 0x487   : > { %v7587_v35 = vpop.permute.xlu1 %1639  ;;  %v2157_v30 = vunpack.i.h.s16 %v1987_v60  ;;  %v5716_v63 = vpack.i.b16 %v1983_v53, %v2153_v55  ;;  %v1992_v53 = vsel %vm1969_vm7, %v7532_v32, %v7506_v19 }
 0x488   : > { %v5717_v54 = vpack.i.b16 %v1987_v60, %v2155_v31  ;;  %v7620_v52 = vpop.permute.xlu2 %1171  ;;  %v1993_v60 = vsel %vm1971_vm8, %v1992_v53, %v7547_v15  ;;  %v9831_v31 = vld [vmem:[#allocation62_spill] sm:$0xff] }
 0x489   : > { %v1995_v55 = vrot.slane %v1993_v60, 4 }
 0x48a   : > { %v7561_v6 = vld [vmem:[#allocation1] sm:$0xff] }
 0x48b   : > { %1802 = vst [vmem:[#allocation1] ss:$9 sm:$0xff] %v7211_v36  ;;  %v853_v36 = vunpack.i.l.s16 %v731_v0 }
 0x48c   : > { %1803 = vst [vmem:[#allocation1 + $0x1] ss:$9 sm:$0xff] %v7213_v61  ;;  %v9830_v61 = vld [vmem:[#allocation3_spill] sm:$0xff] }
 0x48d   : > { %1804 = vst [vmem:[#allocation1 + $0x2] ss:$9 sm:$0xff] %v7215_v26  ;;  %v1813_v42 = vsel %vm1811_vm5, %v9830_v61, %v7328_v12  ;;  %v1988_v26 = vsel %vm543_vm4, %v7532_v32, %v7506_v19  ;;  %v2005_v19 = vsel %vm539_vm3, %v7498_v13, %v7472_v40 }
 0x48e   : > { %1806 = vst [vmem:[#allocation1 + $0x3] ss:$9 sm:$0xff] %v7204_v48  ;;  %v1831_v48 = vsel %vm392_vm0, %v1813_v42, %v7376_v47  ;;  %v1989_v62 = vsel %vm1965_vm12, %v1988_v26, %v7547_v15  ;;  %v7631_v42 = vpop.permute.xlu0 %1546  ;;  %v2009_v15 = vsel %vm543_vm4, %v7498_v13, %v7472_v40 }
 0x48f   : > { %1808 = vst [vmem:[#allocation1 + $0x4] ss:$9 sm:$0xff] %v853_v36  ;;  %v1850_v43 = vsel %vm1848_vm6, %v1831_v48, %v7352_v8  ;;  %v1991_v47 = vrot.slane %v1989_v62, 3  ;;  %v1733_v2 = vpop.permute.xlu1 %1732  ;;  %v2022_v36 = vsel %vm535_vm2, %v7537_v23, %v7544_v10 }
 0x490   : > { %v1970_v12 = vsel %vm1969_vm7, %v1850_v43, %v1930_v37  ;;  %v1954_v16 = vsel %vm535_vm2, %v1850_v43, %v1930_v37  ;;  %v1959_v27 = vsel %vm539_vm3, %v1850_v43, %v1930_v37  ;;  %v1964_v8 = vsel %vm543_vm4, %v1850_v43, %v1930_v37  ;;  %v7649_v62 = vpop.permute.xlu2 %1292 }
 0x491   : > { %v1972_v7 = vsel %vm1971_vm8, %v1970_v12, %v1931_v20  ;;  %v1949_v21 = vsel %vm530_vm1, %v1850_v43, %v1930_v37  ;;  %v1956_v45 = vsel %vm1955_vm9, %v1954_v16, %v1931_v20  ;;  %v5718_v29 = vpack.i.b16 %v1991_v47, %v2157_v30 }
 0x492   : > { %v1961_v18 = vsel %vm1960_vm11, %v1959_v27, %v1931_v20  ;;  %v1966_v0 = vsel %vm1965_vm12, %v1964_v8, %v1931_v20  ;;  %v1974_v24 = vrot.slane %v1972_v7, 4  ;;  %v1952_v38 = vsel %vm1950_vm10, %v1949_v21, %v1931_v20  ;;  %v9832_v8 = vld [vmem:[#allocation63_spill] sm:$0xff] }
 0x493   : > { %v1958_v41 = vrot.slane %v1956_v45, 1  ;;  %v1963_v46 = vrot.slane %v1961_v18, 2  ;;  %v1968_v17 = vrot.slane %v1966_v0, 3  ;;  %v2023_v61 = vsel %vm1955_vm9, %v2022_v36, %v7553_v56 }
 0x494   : > { %v5715_v37 = vpack.i.b16 %v1978_v1, %v1974_v24  ;;  %v2159_v48 = vunpack.i.h.s16 %v1991_v47  ;;  %v2001_v43 = vsel %vm535_vm2, %v7498_v13, %v7472_v40  ;;  %v2025_v32 = vrot.slane %v2023_v61, 1 }
 0x495   : > { %v2026_v1 = vsel %vm539_vm3, %v7537_v23, %v7544_v10  ;;  %v1876_v12 = vsel %vm1811_vm5, %v9831_v31, %v7347_v5  ;;  %v1997_v30 = vsel %vm530_vm1, %v7498_v13, %v7472_v40  ;;  %v2002_v20 = vsel %vm1955_vm9, %v2001_v43, %v7519_v9 }
 0x496   : > { %v7614_v59 = vld [vmem:[#allocation1] sm:$0xff]  ;;  %v5719_v16 = vpack.i.b16 %v1995_v55, %v2159_v48  ;;  %v2006_v27 = vsel %vm1960_vm11, %v2005_v19, %v7519_v9  ;;  %v2027_v47 = vsel %vm1960_vm11, %v2026_v1, %v7553_v56  ;;  %v1878_v5 = vsel %vm1811_vm5, %v9832_v8, %v7418_v14  ;;  %v7686_v36 = vpop.permute.xlu0 %1641 }
 0x497   : > { %2321 = vst [vmem:[#allocation1 + $0x5] ss:$9 sm:$0xff] %v5716_v63  ;;  %v7635_v26 = vpop.permute.xlu1 %1173  ;;  %v2171_v63 = vunpack.i.h.s16 %v7570_v50  ;;  %v2010_v40 = vsel %vm1965_vm12, %v2009_v15, %v7519_v9  ;;  %v2030_v13 = vsel %vm543_vm4, %v7537_v23, %v7544_v10  ;;  %v2173_v45 = vunpack.i.h.s16 %v2025_v32 }
 0x498   : > { %2324 = vst [vmem:[#allocation1 + $0x6] ss:$9 sm:$0xff] %v5717_v54  ;;  %v1999_v50 = vsel %vm1950_vm10, %v1997_v30, %v7519_v9  ;;  %v2004_v18 = vrot.slane %v2002_v20, 1  ;;  %v1894_v14 = vsel %vm392_vm0, %v1876_v12, %v7407_v28  ;;  %v2008_v0 = vrot.slane %v2006_v27, 2  ;;  %v9833_v28 = vld [vmem:[#allocation33_spill] sm:$0xff] }
 0x499   : > { %2327 = vst [vmem:[#allocation1 + $0x7] ss:$9 sm:$0xff] %v5718_v29  ;;  %v1896_v29 = vsel %vm392_vm0, %v1878_v5, %v7388_v49  ;;  %v2029_v24 = vrot.slane %v2027_v47, 2  ;;  %v2012_v49 = vrot.slane %v2010_v40, 3  ;;  %v2031_v9 = vsel %vm1965_vm12, %v2030_v13, %v7553_v56 }
 0x49a   : > { %2306 = vst [vmem:[#allocation1] ss:$9 sm:$0xff] %v1952_v38  ;;  %v1914_v38 = vsel %vm1848_vm6, %v1896_v29, %v1733_v2  ;;  %v1823_v53 = vsel %vm1811_vm5, %v9833_v28, %v7448_v34  ;;  %v9834_v2 = vld [vmem:[#allocation28_spill] sm:$0xff]  ;;  %v2033_v43 = vrot.slane %v2031_v9, 3  ;;  %v2034_v34 = vsel %vm1969_vm7, %v7537_v23, %v7544_v10 }
 0x49b   : > { %2309 = vst [vmem:[#allocation1 + $0x1] ss:$9 sm:$0xff] %v1958_v41  ;;  %v1821_v61 = vsel %vm1811_vm5, %v9834_v2, %v7363_v11  ;;  %v1841_v60 = vsel %vm392_vm0, %v1823_v53, %v7426_v22  ;;  %v7696_v48 = vrot.slane %v1914_v38, 7  ;;  %v2175_v10 = vunpack.i.h.s16 %v2029_v24  ;;  %v9835_v29 = vld [vmem:[#allocation64_spill] sm:$0xff]  ;;  %v9836_v2 = vld [vmem:[#allocation65_spill] sm:$0xff] }
 0x49c   : > { %2312 = vst [vmem:[#allocation1 + $0x2] ss:$9 sm:$0xff] %v1963_v46  ;;  %v5721_v46 = vpack.i.b16 %v2025_v32, %v2171_v63  ;;  %v7704_v32 = vpop.permute.xlu2 %1387  ;;  %v1860_v11 = vsel %vm1848_vm6, %v1841_v60, %v7592_v33  ;;  %v7718_v15 = vrot.slane %v7434_v44, 6  ;;  %v1939_v33 = vrot.slane %v7401_v51, 6 }
 0x49d   : > { %2315 = vst [vmem:[#allocation1 + $0x3] ss:$9 sm:$0xff] %v1968_v17  ;;  %v1912_v17 = vsel %vm1848_vm6, %v1894_v14, %v7610_v4  ;;  %v1839_v4 = vsel %vm392_vm0, %v1821_v61, %v7508_v3  ;;  %v2035_v3 = vsel %vm1971_vm8, %v2034_v34, %v7553_v56  ;;  %v2060_v1 = vsel %vm530_vm1, %v1860_v11, %v7696_v48 }
 0x49e   : > { %2318 = vst [vmem:[#allocation1 + $0x4] ss:$9 sm:$0xff] %v5715_v37  ;;  %v5722_v37 = vpack.i.b16 %v2029_v24, %v2173_v45  ;;  %v1938_v19 = vrot.slane %v1912_v17, 7  ;;  %v1858_v22 = vsel %vm1848_vm6, %v1839_v4, %v7454_v57  ;;  %v2064_v23 = vsel %vm535_vm2, %v1860_v11, %v7696_v48  ;;  %v1737_v44 = vpop.permute.xlu0 %1736 }
 0x49f   : > { %v7680_v41 = vpop.permute.xlu1 %1734  ;;  %v2037_v31 = vrot.slane %v2035_v3, 4  ;;  %v2062_v12 = vsel %vm1950_vm10, %v2060_v1, %v7718_v15  ;;  %v2065_v30 = vsel %vm1955_vm9, %v2064_v23, %v7718_v15  ;;  %v5723_v47 = vpack.i.b16 %v2033_v43, %v2175_v10 }
 0x4a0   : > { %v2055_v55 = vsel %vm1969_vm7, %v1858_v22, %v1938_v19  ;;  %v2043_v57 = vsel %vm535_vm2, %v1858_v22, %v1938_v19  ;;  %v2047_v56 = vsel %vm539_vm3, %v1858_v22, %v1938_v19  ;;  %v2039_v51 = vsel %vm530_vm1, %v1858_v22, %v1938_v19 }
 0x4a1   : > { %v2056_v27 = vsel %vm1971_vm8, %v2055_v55, %v1939_v33  ;;  %v2044_v8 = vsel %vm1955_vm9, %v2043_v57, %v1939_v33  ;;  %v2067_v40 = vrot.slane %v2065_v30, 1  ;;  %v2068_v13 = vsel %vm539_vm3, %v1860_v11, %v7696_v48 }
 0x4a2   : > { %v2189_v45 = vunpack.i.h.s16 %v2062_v12  ;;  %v2058_v14 = vrot.slane %v2056_v27, 4  ;;  %v2041_v38 = vsel %vm1950_vm10, %v2039_v51, %v1939_v33  ;;  %v1882_v61 = vsel %vm1811_vm5, %v9836_v2, %v7631_v42 }
 0x4a3   : > { %v2076_v4 = vsel %vm1969_vm7, %v1860_v11, %v7696_v48  ;;  %v1900_v1 = vsel %vm392_vm0, %v1882_v61, %v7686_v36  ;;  %v2191_v55 = vunpack.i.h.s16 %v2067_v40 }
 0x4a4   : > { %v1390_v9 = vpop.permute.xlu2 %1389  ;;  %v5725_v17 = vpack.i.b16 %v2062_v12, %v2058_v14  ;;  %v9839_v14 = vld [vmem:[#allocation24_spill] sm:$0xff] }
 0x4a5   : > { %v2328_v7 = vld [vmem:[#allocation1] sm:$0xff]  ;;  %v2329_v54 = vld [vmem:[#allocation1 + $0x9] sm:$0xff]  ;;  %v2330_v21 = vld [vmem:[#allocation1 + $0x12] sm:$0xff] }
 0x4a6   : > { %2332 = vst [vmem:[#allocation1] ss:$9 sm:$0xff] %v5719_v16  ;;  %2552 = vmatmul.bf16.vlgmr.msra.gmra.mxu1 %v2328_v7  ;;  %2590 = vmatmul.bf16.vlgmr.msra.gmra.mxu2 %v2329_v54  ;;  %v2051_v16 = vsel %vm543_vm4, %v1858_v22, %v1938_v19  ;;  %v9838_v19 = vld [vmem:[#allocation42_spill] sm:$0xff] }
 0x4a7   : > { %2334 = vst [vmem:[#allocation1 + $0x1] ss:$9 sm:$0xff] %v1999_v50  ;;  %5807 = vmatmul.msk.bf16.vlgmr.msra.gmra.mxu3 %vm1811_vm5, %v2330_v21  ;;  %v1295_v20 = vpop.permute.xlu1 %1294  ;;  %v2048_v21 = vsel %vm1960_vm11, %v2047_v56, %v1939_v33  ;;  %v1880_v50 = vsel %vm1811_vm5, %v9835_v29, %v7566_v39  ;;  %v2069_v39 = vsel %vm1960_vm11, %v2068_v13, %v7718_v15 }
 0x4a8   : > { %2336 = vst [vmem:[#allocation1 + $0x2] ss:$9 sm:$0xff] %v2004_v18  ;;  %v2052_v18 = vsel %vm1965_vm12, %v2051_v16, %v1939_v33  ;;  %v1898_v24 = vsel %vm392_vm0, %v1880_v50, %v7587_v35  ;;  %v2071_v60 = vrot.slane %v2069_v39, 2  ;;  %v1825_v22 = vsel %vm1811_vm5, %v9838_v19, %v7620_v52  ;;  %v9840_v39 = vld [vmem:[#allocation56_spill] sm:$0xff] }
 0x4a9   : > { %2338 = vst [vmem:[#allocation1 + $0x3] ss:$9 sm:$0xff] %v2008_v0  ;;  %v2072_v0 = vsel %vm543_vm4, %v1860_v11, %v7696_v48  ;;  %v1916_v28 = vsel %vm1848_vm6, %v1898_v24, %v7680_v41  ;;  %v2054_v53 = vrot.slane %v2052_v18, 3  ;;  %v1843_v48 = vsel %vm392_vm0, %v1825_v22, %v7649_v62 }
 0x4aa   : > { %2340 = vst [vmem:[#allocation1 + $0x4] ss:$9 sm:$0xff] %v2012_v49  ;;  %v2046_v49 = vrot.slane %v2044_v8, 1  ;;  %v2073_v35 = vsel %vm1965_vm12, %v2072_v0, %v7718_v15  ;;  %v1942_v34 = vrot.slane %v1916_v28, 7  ;;  %v1918_v11 = vsel %vm1848_vm6, %v1900_v1, %v1737_v44 }
 0x4ab   : > { %2342 = vst [vmem:[#allocation1 + $0x5] ss:$9 sm:$0xff] %v7584_v58  ;;  %v2177_v58 = vunpack.i.h.s16 %v2033_v43  ;;  %v9837_v43 = vld [vmem:[#allocation50_spill] sm:$0xff]  ;;  %v2075_v3 = vrot.slane %v2073_v35, 3  ;;  %v1862_v10 = vsel %vm1848_vm6, %v1843_v48, %v7704_v32  ;;  %v2077_v52 = vsel %vm1971_vm8, %v2076_v4, %v7718_v15 }
 0x4ac   : > { %2344 = vst [vmem:[#allocation1 + $0x6] ss:$9 sm:$0xff] %v5721_v46  ;;  %v2050_v46 = vrot.slane %v2048_v21, 2  ;;  %v1827_v41 = vsel %vm1811_vm5, %v9837_v43, %v7635_v26  ;;  %v1549_v26 = vpop.permute.xlu0 %1548  ;;  %v2193_v36 = vunpack.i.h.s16 %v2071_v60  ;;  %v2085_v33 = vsel %vm535_vm2, %v1862_v10, %v1942_v34  ;;  %v1176_v30 = vpop.permute.xlu2 %1175 }
 0x4ad   : > { %2346 = vst [vmem:[#allocation1 + $0x7] ss:$9 sm:$0xff] %v5722_v37  ;;  %v5724_v63 = vpack.i.b16 %v2037_v31, %v2177_v58  ;;  %v5726_v37 = vpack.i.b16 %v2067_v40, %v2189_v45  ;;  %v1845_v42 = vsel %vm392_vm0, %v1827_v41, %v1295_v20  ;;  %v1943_v58 = vrot.slane %v7463_v25, 6 }
 0x4ae   : > { %v1864_v57 = vsel %vm1848_vm6, %v1845_v42, %v1390_v9  ;;  %v2195_v31 = vunpack.i.h.s16 %v2075_v3  ;;  %v2089_v62 = vsel %vm539_vm3, %v1862_v10, %v1942_v34  ;;  %v2097_v56 = vsel %vm1969_vm7, %v1862_v10, %v1942_v34 }
 0x4af   : > { %v1644_v23 = vpop.permute.xlu1 %1643  ;;  %v1944_v12 = vrot.slane %v1918_v11, 7  ;;  %v2093_v32 = vsel %vm543_vm4, %v1862_v10, %v1942_v34  ;;  %v2079_v20 = vrot.slane %v2077_v52, 4  ;;  %v2081_v15 = vsel %vm530_vm1, %v1862_v10, %v1942_v34 }
 0x4b0   : > { %v2086_v25 = vsel %vm1955_vm9, %v2085_v33, %v1943_v58  ;;  %v5727_v27 = vpack.i.b16 %v2071_v60, %v2191_v55  ;;  %v2090_v44 = vsel %vm1960_vm11, %v2089_v62, %v1943_v58  ;;  %v5728_v51 = vpack.i.b16 %v2075_v3, %v2193_v36 }
 0x4b1   : > { %v2102_v16 = vsel %vm530_vm1, %v1864_v57, %v1944_v12  ;;  %v5729_v8 = vpack.i.b16 %v2079_v20, %v2195_v31  ;;  %v2094_v21 = vsel %vm1965_vm12, %v2093_v32, %v1943_v58  ;;  %v2083_v40 = vsel %vm1950_vm10, %v2081_v15, %v1943_v58 }
 0x4b2   : > { %v2088_v13 = vrot.slane %v2086_v25, 1  ;;  %v2106_v29 = vsel %vm535_vm2, %v1864_v57, %v1944_v12  ;;  %v2092_v50 = vrot.slane %v2090_v44, 2  ;;  %v2110_v18 = vsel %vm539_vm3, %v1864_v57, %v1944_v12 }
 0x4b3   : > { %v1884_v0 = vsel %vm1811_vm5, %v9839_v14, %v1549_v26  ;;  %v2118_v19 = vsel %vm1969_vm7, %v1864_v57, %v1944_v12  ;;  %v1947_v11 = vrot.slane %v7614_v59, 6 }
 0x4b4   : > { %v2347_v5 = vld [vmem:[#allocation1] sm:$0xff]  ;;  %v2348_v7 = vld [vmem:[#allocation1 + $0x9] sm:$0xff]  ;;  %v2349_v54 = vld [vmem:[#allocation1 + $0x12] sm:$0xff]  ;;  %v1902_v9 = vsel %vm392_vm0, %v1884_v0, %v1644_v23  ;;  %v1392_v60 = vpop.permute.xlu2 %1391 }
 0x4b5   : > { %2351 = vst [vmem:[#allocation1] ss:$9 sm:$0xff] %v5723_v47  ;;  %v1945_v47 = vrot.slane %v7561_v6, 6 }
 0x4b6   : > { %2353 = vst [vmem:[#allocation1 + $0x1] ss:$9 sm:$0xff] %v5724_v63  ;;  %2557 = vmatmul.bf16.gmra.mxu1 %v2347_v5  ;;  %2595 = vmatmul.bf16.gmra.mxu2 %v2348_v7  ;;  %v2098_v63 = vsel %vm1971_vm8, %v2097_v56, %v1943_v58 }
 0x4b7   : > { %2355 = vst [vmem:[#allocation1 + $0x2] ss:$9 sm:$0xff] %v2041_v38  ;;  %5808 = vmatmul.msk.bf16.gmra.mxu3 %vm1811_vm5, %v2349_v54  ;;  %v2104_v45 = vsel %vm1950_vm10, %v2102_v16, %v1945_v47  ;;  %v2100_v6 = vrot.slane %v2098_v63, 4  ;;  %v1297_v24 = vpop.permute.xlu1 %1296  ;;  %v2096_v38 = vrot.slane %v2094_v21, 3  ;;  %v2107_v28 = vsel %vm1955_vm9, %v2106_v29, %v1945_v47 }
 0x4b8   : > { %2357 = vst [vmem:[#allocation1 + $0x3] ss:$9 sm:$0xff] %v2046_v49  ;;  %v2114_v49 = vsel %vm543_vm4, %v1864_v57, %v1944_v12  ;;  %v2111_v35 = vsel %vm1960_vm11, %v2110_v18, %v1945_v47  ;;  %v2109_v4 = vrot.slane %v2107_v28, 1  ;;  %v2207_v3 = vunpack.i.h.s16 %v2104_v45 }
 0x4b9   : > { %2359 = vst [vmem:[#allocation1 + $0x4] ss:$9 sm:$0xff] %v2050_v46  ;;  %v1739_v46 = vpop.permute.xlu0 %1738  ;;  %v2115_v2 = vsel %vm1965_vm12, %v2114_v49, %v1945_v47  ;;  %v2113_v43 = vrot.slane %v2111_v35, 2  ;;  %v2119_v23 = vsel %vm1971_vm8, %v2118_v19, %v1945_v47 }
 0x4ba   : > { %2361 = vst [vmem:[#allocation1 + $0x5] ss:$9 sm:$0xff] %v2054_v53  ;;  %v5730_v53 = vpack.i.b16 %v2104_v45, %v2100_v6  ;;  %v1920_v61 = vsel %vm1848_vm6, %v1902_v9, %v1739_v46  ;;  %v2117_v34 = vrot.slane %v2115_v2, 3  ;;  %v2209_v1 = vunpack.i.h.s16 %v2109_v4 }
 0x4bb   : > { %2363 = vst [vmem:[#allocation1 + $0x6] ss:$9 sm:$0xff] %v5725_v17  ;;  %v1829_v17 = vsel %vm1811_vm5, %v9840_v39, %v1176_v30  ;;  %v1946_v22 = vrot.slane %v1920_v61, 7  ;;  %v2211_v48 = vunpack.i.h.s16 %v2113_v43  ;;  %v5731_v58 = vpack.i.b16 %v2109_v4, %v2207_v3 }
 0x4bc   : > { %2365 = vst [vmem:[#allocation1 + $0x7] ss:$9 sm:$0xff] %v5726_v37  ;;  %v1847_v37 = vsel %vm392_vm0, %v1829_v17, %v1297_v24  ;;  %v2213_v10 = vunpack.i.h.s16 %v2117_v34  ;;  %v2121_v33 = vrot.slane %v2119_v23, 4  ;;  %v5732_v57 = vpack.i.b16 %v2113_v43, %v2209_v1 }
 0x4bd   : > { %v1866_v41 = vsel %vm1848_vm6, %v1847_v37, %v1392_v60  ;;  %v5733_v30 = vpack.i.b16 %v2117_v34, %v2211_v48 }
 0x4be   : > { %v2127_v42 = vsel %vm535_vm2, %v1866_v41, %v1946_v22  ;;  %v2131_v26 = vsel %vm539_vm3, %v1866_v41, %v1946_v22  ;;  %v2135_v52 = vsel %vm543_vm4, %v1866_v41, %v1946_v22  ;;  %v2123_v55 = vsel %vm530_vm1, %v1866_v41, %v1946_v22 }
 0x4bf   : > { %v2128_v36 = vsel %vm1955_vm9, %v2127_v42, %v1947_v11  ;;  %v2132_v12 = vsel %vm1960_vm11, %v2131_v26, %v1947_v11  ;;  %v2136_v59 = vsel %vm1965_vm12, %v2135_v52, %v1947_v11  ;;  %v5734_v32 = vpack.i.b16 %v2121_v33, %v2213_v10 }
 0x4c0   : > { %v2125_v20 = vsel %vm1950_vm10, %v2123_v55, %v1947_v11  ;;  %v2130_v15 = vrot.slane %v2128_v36, 1  ;;  %v2134_v25 = vrot.slane %v2132_v12, 2  ;;  %v2138_v16 = vrot.slane %v2136_v59, 3 }
 0x4c3   : > { %v2366_v5 = vld [vmem:[#allocation1] sm:$0xff]  ;;  %v2367_v7 = vld [vmem:[#allocation1 + $0x9] sm:$0xff]  ;;  %v2368_v54 = vld [vmem:[#allocation1 + $0x12] sm:$0xff] }
 0x4c4   : > { %2370 = vst [vmem:[#allocation1] ss:$9 sm:$0xff] %v5727_v27  ;;  %v2139_v27 = vsel %vm1969_vm7, %v1866_v41, %v1946_v22 }
 0x4c5   : > { %2372 = vst [vmem:[#allocation1 + $0x1] ss:$9 sm:$0xff] %v5728_v51  ;;  %v2140_v44 = vsel %vm1971_vm8, %v2139_v27, %v1947_v11 }
 0x4c6   : > { %2374 = vst [vmem:[#allocation1 + $0x2] ss:$9 sm:$0xff] %v5729_v8  ;;  %2562 = vmatmul.bf16.gmra.mxu1 %v2366_v5  ;;  %2600 = vmatmul.bf16.gmra.mxu2 %v2367_v7  ;;  %v2142_v47 = vrot.slane %v2140_v44, 4 }
 0x4c7   : > { %2376 = vst [vmem:[#allocation1 + $0x3] ss:$9 sm:$0xff] %v2083_v40  ;;  %5809 = vmatmul.msk.bf16.gmra.mxu3 %vm1811_vm5, %v2368_v54 }
 0x4c8   : > { %2378 = vst [vmem:[#allocation1 + $0x4] ss:$9 sm:$0xff] %v2088_v13  ;;  %v2223_v63 = vunpack.i.l.s16 %v2142_v47  ;;  %v7820_v13 = vld [vmem:[%s9421_s4] ss:$0 sm:$0xff] }
 0x4c9   : > { %2380 = vst [vmem:[#allocation1 + $0x5] ss:$9 sm:$0xff] %v2092_v50 }
 0x4ca   : > { %2382 = vst [vmem:[#allocation1 + $0x6] ss:$9 sm:$0xff] %v2096_v38 }
 0x4cb   : > { %2384 = vst [vmem:[#allocation1 + $0x7] ss:$9 sm:$0xff] %v5730_v53 }
 0x4d2   : > { %v2385_v31 = vld [vmem:[#allocation1] sm:$0xff]  ;;  %v2386_v62 = vld [vmem:[#allocation1 + $0x9] sm:$0xff]  ;;  %v2387_v56 = vld [vmem:[#allocation1 + $0x12] sm:$0xff] }
 0x4d3   : > { %2389 = vst [vmem:[#allocation1] ss:$9 sm:$0xff] %v5731_v58 }
 0x4d4   : > { %2391 = vst [vmem:[#allocation1 + $0x1] ss:$9 sm:$0xff] %v5732_v57 }
 0x4d5   : > { %2393 = vst [vmem:[#allocation1 + $0x2] ss:$9 sm:$0xff] %v5733_v30 }
 0x4d6   : > { %2395 = vst [vmem:[#allocation1 + $0x3] ss:$9 sm:$0xff] %v5734_v32  ;;  %2567 = vmatmul.bf16.gmra.mxu1 %v2385_v31  ;;  %2605 = vmatmul.bf16.gmra.mxu2 %v2386_v62 }
 0x4d7   : > { %5810 = vmatmul.msk.bf16.gmra.mxu3 %vm1811_vm5, %v2387_v56  ;;  %2397 = vst [vmem:[#allocation1 + $0x4] ss:$9 sm:$0xff] %v2125_v20 }
 0x4d8   : > { %2399 = vst [vmem:[#allocation1 + $0x5] ss:$9 sm:$0xff] %v2130_v15 }
 0x4d9   : > { %2401 = vst [vmem:[#allocation1 + $0x6] ss:$9 sm:$0xff] %v2134_v25 }
 0x4da   : > { %2403 = vst [vmem:[#allocation1 + $0x7] ss:$9 sm:$0xff] %v2138_v16 }
 0x4e1   : > { %v2404_v51 = vld [vmem:[#allocation1] sm:$0xff]  ;;  %v2405_v8 = vld [vmem:[#allocation1 + $0x9] sm:$0xff]  ;;  %v2406_v5 = vld [vmem:[#allocation1 + $0x12] sm:$0xff] }
 0x4e2   : > { %2408 = vst [vmem:[#allocation1] ss:$9 sm:$0xff] %v2223_v63 }
 0x4e6   : > { %2572 = vmatmul.bf16.gmra.mxu1 %v2404_v51  ;;  %2610 = vmatmul.bf16.gmra.mxu2 %v2405_v8 }
 0x4e7   : > { %5811 = vmatmul.msk.bf16.gmra.mxu3 %vm1811_vm5, %v2406_v5 }
 0x4e9   : > { %v2409_v7 = vld [vmem:[#allocation1] sm:$0xff]  ;;  %v2410_v54 = vld [vmem:[#allocation1 + $0x9] sm:$0xff]  ;;  %v2411_v21 = vld [vmem:[#allocation1 + $0x12] sm:$0xff] }
 0x4f6   : > { %2577 = vmatmul.bf16.gmra.mxu1 %v2409_v7  ;;  %2615 = vmatmul.bf16.gmra.mxu2 %v2410_v54 }
 0x4f7   : > { %5812 = vmatmul.msk.bf16.gmra.mxu3 %vm1811_vm5, %v2411_v21 }
 0x523   : > { %v2553_v40 = vpop.f32.mrf.mxu1 }
 0x524   : > { %v2554_v45 = vadd.f32 %v7820_v13, %v2553_v40 }
 0x529   : > { %v2591_v29 = vpop.f32.mrf.mxu2 }
 0x52a   : > { %v2592_v50 = vadd.f32 %v2591_v29, %v2554_v45  ;;  %v2629_v6 = vpop.f32.mrf.mxu3 }
 0x52b   : > { %v2555_v18 = vpop.f32.mrf.mxu1 }
 0x52c   : > { %v2630_v14 = vadd.f32 %v2629_v6, %v2592_v50  ;;  %v2556_v38 = vadd.f32 %v7820_v13, %v2555_v18 }
 0x52e   : > { %v2658_v0 = vmax.f32 %v2630_v14, 0.0 }
 0x530   : > { %v2669_v24 = vpack.c.bf16 %v2658_v0, %v2658_v0 }
 0x531   : > { %v2593_v49 = vpop.f32.mrf.mxu2 }
 0x532   : > { %v2691_v9 = vrot.slane %v2669_v24, 3  ;;  %v2594_v46 = vadd.f32 %v2593_v49, %v2556_v38  ;;  %v2631_v39 = vpop.f32.mrf.mxu3 }
 0x533   : > { %v2558_v17 = vpop.f32.mrf.mxu1 }
 0x534   : > { %v7825_v28 = vsel %vm530_vm1, %v2669_v24, %v2691_v9  ;;  %v2706_v53 = vsel %vm535_vm2, %v2669_v24, %v2691_v9  ;;  %v2709_v35 = vsel %vm539_vm3, %v2669_v24, %v2691_v9  ;;  %v2712_v37 = vsel %vm543_vm4, %v2669_v24, %v2691_v9 }
 0x535   : > { %v7830_v2 = vrot.slane %v2706_v53, 1  ;;  %v7832_v61 = vrot.slane %v2709_v35, 2  ;;  %v7834_v60 = vrot.slane %v2712_v37, 3  ;;  %2946 = vst [vmem:[#allocation1] ss:$9 sm:$0xff] %v7825_v28  ;;  %v2632_v4 = vadd.f32 %v2631_v39, %v2594_v46 }
 0x536   : > { %v2559_v34 = vadd.f32 %v7820_v13, %v2558_v17 }
 0x537   : > { %v2842_v43 = vunpack.i.l.s16 %v7834_v60  ;;  %2949 = vst [vmem:[#allocation1 + $0x1] ss:$9 sm:$0xff] %v7830_v2  ;;  %v2659_v41 = vmax.f32 %v2632_v4, 0.0 }
 0x538   : > { %2952 = vst [vmem:[#allocation1 + $0x2] ss:$9 sm:$0xff] %v7832_v61 }
 0x539   : > { %2955 = vst [vmem:[#allocation1 + $0x3] ss:$9 sm:$0xff] %v2842_v43  ;;  %v2596_v19 = vpop.f32.mrf.mxu2  ;;  %v2670_v22 = vpack.c.bf16 %v2659_v41, %v2659_v41 }
 0x53a   : > { %v2597_v3 = vadd.f32 %v2596_v19, %v2559_v34  ;;  %v2634_v1 = vpop.f32.mrf.mxu3 }
 0x53b   : > { %v2560_v42 = vpop.f32.mrf.mxu1  ;;  %v2692_v23 = vrot.slane %v2670_v22, 3 }
 0x53c   : > { %v2635_v48 = vadd.f32 %v2634_v1, %v2597_v3  ;;  %v2561_v62 = vadd.f32 %v7820_v13, %v2560_v42 }
 0x53d   : > { %v7842_v11 = vsel %vm530_vm1, %v2670_v22, %v2692_v23  ;;  %v2719_v26 = vsel %vm535_vm2, %v2670_v22, %v2692_v23  ;;  %v2722_v10 = vsel %vm539_vm3, %v2670_v22, %v2692_v23  ;;  %v2725_v52 = vsel %vm543_vm4, %v2670_v22, %v2692_v23 }
 0x53e   : > { %v7847_v58 = vrot.slane %v2719_v26, 1  ;;  %v7849_v55 = vrot.slane %v2722_v10, 2  ;;  %v7851_v36 = vrot.slane %v2725_v52, 3  ;;  %v2845_v57 = vunpack.i.h.s16 %v7842_v11 }
 0x53f   : > { %v2660_v31 = vmax.f32 %v2635_v48, 0.0 }
 0x540   : > { %v7853_v33 = vld [vmem:[#allocation1] sm:$0xff]  ;;  %v2847_v56 = vunpack.i.h.s16 %v7847_v58  ;;  %v2849_v12 = vunpack.i.h.s16 %v7849_v55  ;;  %v7860_v30 = vunpack.i.h.s16 %v7851_v36  ;;  %v7863_v32 = vpack.i.b16 %v7847_v58, %v2845_v57 }
 0x541   : > { %9841 = vst [vmem:[#allocation73_spill] sm:$0xff] %v7853_v33  ;;  %v2598_v59 = vpop.f32.mrf.mxu2  ;;  %v2671_v20 = vpack.c.bf16 %v2660_v31, %v2660_v31 }
 0x542   : > { %v2599_v15 = vadd.f32 %v2598_v59, %v2561_v62  ;;  %v2636_v25 = vpop.f32.mrf.mxu3  ;;  %v7866_v16 = vpack.i.b16 %v7849_v55, %v2847_v56  ;;  %v7869_v27 = vpack.i.b16 %v7851_v36, %v2849_v12  ;;  %2964 = vst [vmem:[#allocation1 + $0x3] ss:$9 sm:$0xff] %v7860_v30 }
 0x543   : > { %v2563_v44 = vpop.f32.mrf.mxu1  ;;  %2958 = vst [vmem:[#allocation1] ss:$9 sm:$0xff] %v7863_v32  ;;  %v2693_v47 = vrot.slane %v2671_v20, 3 }
 0x544   : > { %v2637_v63 = vadd.f32 %v2636_v25, %v2599_v15  ;;  %2960 = vst [vmem:[#allocation1 + $0x1] ss:$9 sm:$0xff] %v7866_v16  ;;  %v2564_v5 = vadd.f32 %v7820_v13, %v2563_v44 }
 0x545   : > { %2962 = vst [vmem:[#allocation1 + $0x2] ss:$9 sm:$0xff] %v7869_v27  ;;  %v7876_v51 = vsel %vm530_vm1, %v2671_v20, %v2693_v47  ;;  %v2732_v7 = vsel %vm535_vm2, %v2671_v20, %v2693_v47  ;;  %v2735_v21 = vsel %vm539_vm3, %v2671_v20, %v2693_v47  ;;  %v2738_v50 = vsel %vm543_vm4, %v2671_v20, %v2693_v47 }
 0x546   : > { %v2661_v8 = vmax.f32 %v2637_v63, 0.0  ;;  %v7882_v18 = vrot.slane %v2732_v7, 1  ;;  %v7884_v24 = vrot.slane %v2735_v21, 2  ;;  %v7888_v49 = vrot.slane %v2738_v50, 3 }
 0x548   : > { %v2672_v40 = vpack.c.bf16 %v2661_v8, %v2661_v8 }
 0x549   : > { %v2601_v54 = vpop.f32.mrf.mxu2 }
 0x54a   : > { %v2602_v45 = vadd.f32 %v2601_v54, %v2564_v5  ;;  %v2639_v29 = vpop.f32.mrf.mxu3  ;;  %v2694_v14 = vrot.slane %v2672_v40, 3 }
 0x54b   : > { %v2565_v6 = vpop.f32.mrf.mxu1 }
 0x54c   : > { %v2640_v0 = vadd.f32 %v2639_v29, %v2602_v45  ;;  %v7886_v38 = vld [vmem:[#allocation1] sm:$0xff]  ;;  %v7892_v9 = vsel %vm530_vm1, %v2672_v40, %v2694_v14  ;;  %v7895_v46 = vsel %vm535_vm2, %v2672_v40, %v2694_v14  ;;  %v2748_v39 = vsel %vm539_vm3, %v2672_v40, %v2694_v14 }
 0x54d   : > { %9842 = vst [vmem:[#allocation76_spill] sm:$0xff] %v7886_v38  ;;  %v9562_v17 = vrot.slane %v7895_v46, 1  ;;  %v7900_v53 = vrot.slane %v2748_v39, 2  ;;  %v2751_v35 = vsel %vm543_vm4, %v2672_v40, %v2694_v14  ;;  %v7904_v37 = vunpack.i.l.s16 %v7892_v9 }
 0x54e   : > { %2967 = vst [vmem:[#allocation1] ss:$9 sm:$0xff] %v7882_v18  ;;  %v2662_v4 = vmax.f32 %v2640_v0, 0.0  ;;  %v2566_v43 = vadd.f32 %v7820_v13, %v2565_v6  ;;  %v7909_v34 = vrot.slane %v2751_v35, 3 }
 0x54f   : > { %2969 = vst [vmem:[#allocation1 + $0x1] ss:$9 sm:$0xff] %v7884_v24  ;;  %v2863_v1 = vunpack.i.h.s16 %v9562_v17  ;;  %v2865_v42 = vunpack.i.h.s16 %v7900_v53 }
 0x550   : > { %2971 = vst [vmem:[#allocation1 + $0x2] ss:$9 sm:$0xff] %v7888_v49  ;;  %v2673_v19 = vpack.c.bf16 %v2662_v4, %v2662_v4  ;;  %v2867_v57 = vunpack.i.h.s16 %v7909_v34 }
 0x551   : > { %2973 = vst [vmem:[#allocation1 + $0x3] ss:$9 sm:$0xff] %v7904_v37  ;;  %v2603_v41 = vpop.f32.mrf.mxu2  ;;  %v7922_v31 = vpack.i.b16 %v7900_v53, %v2863_v1  ;;  %v7925_v62 = vpack.i.b16 %v7909_v34, %v2865_v42 }
 0x552   : > { %v2604_v22 = vadd.f32 %v2603_v41, %v2566_v43  ;;  %v2641_v3 = vpop.f32.mrf.mxu3  ;;  %v2695_v48 = vrot.slane %v2673_v19, 3 }
 0x553   : > { %v2568_v23 = vpop.f32.mrf.mxu1 }
 0x554   : > { %v2642_v26 = vadd.f32 %v2641_v3, %v2604_v22  ;;  %v7915_v10 = vsel %vm530_vm1, %v2673_v19, %v2695_v48  ;;  %v7918_v52 = vsel %vm535_vm2, %v2673_v19, %v2695_v48  ;;  %v2569_v15 = vadd.f32 %v7820_v13, %v2568_v23 }
 0x555   : > { %v7930_v12 = vunpack.i.h.s16 %v7915_v10  ;;  %v7933_v59 = vpack.i.b16 %v7915_v10, %v2867_v57  ;;  %v2761_v21 = vsel %vm539_vm3, %v2673_v19, %v2695_v48  ;;  %v2764_v45 = vsel %vm543_vm4, %v2673_v19, %v2695_v48 }
 0x556   : > { %v2663_v20 = vmax.f32 %v2642_v26, 0.0  ;;  %v7946_v14 = vrot.slane %v2761_v21, 2  ;;  %v7951_v4 = vrot.slane %v2764_v45, 3 }
 0x558   : > { %v7927_v56 = vld [vmem:[#allocation1] sm:$0xff]  ;;  %v2674_v44 = vpack.c.bf16 %v2663_v20, %v2663_v20 }
 0x559   : > { %9843 = vst [vmem:[#allocation68_spill] sm:$0xff] %v7927_v56  ;;  %v2606_v25 = vpop.f32.mrf.mxu2 }
 0x55a   : > { %2976 = vst [vmem:[#allocation1] ss:$9 sm:$0xff] %v7922_v31  ;;  %v2607_v47 = vadd.f32 %v2606_v25, %v2569_v15  ;;  %v2644_v63 = vpop.f32.mrf.mxu3  ;;  %v2696_v8 = vrot.slane %v2674_v44, 3 }
 0x55b   : > { %2978 = vst [vmem:[#allocation1 + $0x1] ss:$9 sm:$0xff] %v7925_v62  ;;  %v2570_v7 = vpop.f32.mrf.mxu1 }
 0x55c   : > { %2980 = vst [vmem:[#allocation1 + $0x2] ss:$9 sm:$0xff] %v7933_v59  ;;  %v2645_v5 = vadd.f32 %v2644_v63, %v2607_v47  ;;  %v2771_v54 = vsel %vm535_vm2, %v2674_v44, %v2696_v8  ;;  %v2571_v50 = vadd.f32 %v7820_v13, %v2570_v7  ;;  %v7949_v0 = vsel %vm539_vm3, %v2674_v44, %v2696_v8 }
 0x55d   : > { %2982 = vst [vmem:[#allocation1 + $0x3] ss:$9 sm:$0xff] %v7930_v12  ;;  %v7942_v40 = vrot.slane %v2771_v54, 1  ;;  %v2777_v41 = vsel %vm543_vm4, %v2674_v44, %v2696_v8  ;;  %v7962_v42 = vsel %vm530_vm1, %v2674_v44, %v2696_v8  ;;  %v9561_v23 = vrot.slane %v7949_v0, 2 }
 0x55e   : > { %v2664_v29 = vmax.f32 %v2645_v5, 0.0  ;;  %v7965_v48 = vrot.slane %v2777_v41, 3 }
 0x55f   : > { %v7957_v22 = vunpack.i.l.s16 %v7942_v40  ;;  %v2881_v25 = vunpack.i.h.s16 %v9561_v23  ;;  %v8097_v33 = vunpack.i.h.s16 %v7942_v40 }
 0x560   : > { %v2675_v39 = vpack.c.bf16 %v2664_v29, %v2664_v29  ;;  %9845 = vst [vmem:[#allocation4_spill] sm:$0xff] %v7965_v48  ;;  %v2883_v63 = vunpack.i.h.s16 %v7965_v48 }
 0x561   : > { %v2608_v6 = vpop.f32.mrf.mxu2  ;;  %v7986_v54 = vpack.i.b16 %v7965_v48, %v2881_v25  ;;  %9853 = vst [vmem:[#allocation19_spill] sm:$0xff] %v8097_v33 }
 0x562   : > { %v2609_v35 = vadd.f32 %v2608_v6, %v2571_v50  ;;  %v2646_v19 = vpop.f32.mrf.mxu3  ;;  %v2697_v3 = vrot.slane %v2675_v39, 3 }
 0x563   : > { %v2573_v23 = vpop.f32.mrf.mxu1 }
 0x564   : > { %v7953_v43 = vld [vmem:[#allocation1] sm:$0xff]  ;;  %v2647_v1 = vadd.f32 %v2646_v19, %v2609_v35  ;;  %v7969_v26 = vsel %vm530_vm1, %v2675_v39, %v2697_v3  ;;  %v2784_v57 = vsel %vm535_vm2, %v2675_v39, %v2697_v3  ;;  %v7973_v20 = vsel %vm539_vm3, %v2675_v39, %v2697_v3 }
 0x565   : > { %9844 = vst [vmem:[#allocation78_spill] sm:$0xff] %v7953_v43  ;;  %v7978_v44 = vrot.slane %v2784_v57, 1  ;;  %v2885_v47 = vunpack.i.h.s16 %v7969_v26  ;;  %v7983_v5 = vpack.i.b16 %v7969_v26, %v2883_v63  ;;  %v2790_v35 = vsel %vm543_vm4, %v2675_v39, %v2697_v3 }
 0x566   : > { %2985 = vst [vmem:[#allocation1] ss:$9 sm:$0xff] %v7946_v14  ;;  %v2665_v15 = vmax.f32 %v2647_v1, 0.0  ;;  %v8008_v1 = vrot.slane %v2790_v35, 3  ;;  %v2837_v39 = vunpack.i.h.s16 %v7825_v28  ;;  %v2839_v3 = vunpack.i.h.s16 %v7830_v2 }
 0x567   : > { %2987 = vst [vmem:[#allocation1 + $0x1] ss:$9 sm:$0xff] %v7951_v4  ;;  %v7989_v21 = vpack.i.b16 %v7978_v44, %v2885_v47  ;;  %v7994_v29 = vunpack.i.h.s16 %v7978_v44  ;;  %v2841_v63 = vunpack.i.h.s16 %v7832_v61  ;;  %v2574_v17 = vadd.f32 %v7820_v13, %v2573_v23 }
 0x568   : > { %2989 = vst [vmem:[#allocation1 + $0x2] ss:$9 sm:$0xff] %v7962_v42  ;;  %v2676_v8 = vpack.c.bf16 %v2665_v15, %v2665_v15  ;;  %v5823_v35 = vpack.i.b16 %v7832_v61, %v2839_v3  ;;  %v2891_v38 = vunpack.i.h.s16 %v8008_v1 }
 0x569   : > { %9846 = vst [vmem:[#allocation79_spill] sm:$0xff] %v7969_v26  ;;  %v2611_v3 = vpop.f32.mrf.mxu2 }
 0x56a   : > { %2991 = vst [vmem:[#allocation1 + $0x3] ss:$9 sm:$0xff] %v7957_v22  ;;  %v2698_v7 = vrot.slane %v2676_v8, 3 }
 0x56b   : > { %9847 = vst [vmem:[#allocation80_spill] sm:$0xff] %v7978_v44 }
 0x56c   : > { %v7997_v50 = vsel %vm543_vm4, %v2676_v8, %v2698_v7  ;;  %v2800_v6 = vsel %vm539_vm3, %v2676_v8, %v2698_v7  ;;  %v2797_v19 = vsel %vm535_vm2, %v2676_v8, %v2698_v7  ;;  %v8017_v25 = vsel %vm530_vm1, %v2676_v8, %v2698_v7 }
 0x56d   : > { %v8005_v41 = vrot.slane %v2800_v6, 2  ;;  %v8019_v47 = vrot.slane %v2797_v19, 1  ;;  %v5822_v6 = vpack.i.b16 %v7830_v2, %v2837_v39  ;;  %v5824_v7 = vpack.i.b16 %v7834_v60, %v2841_v63 }
 0x56e   : > { %v2843_v19 = vunpack.i.h.s16 %v7834_v60  ;;  %v9563_v39 = vunpack.i.l.s16 %v7876_v51  ;;  %v2612_v63 = vadd.f32 %v2611_v3, %v2574_v17 }
 0x56f   : > { %v8013_v15 = vunpack.i.l.s16 %v8005_v41 }
 0x571   : > { %v7991_v45 = vld [vmem:[#allocation1] sm:$0xff] }
 0x572   : > { %9848 = vst [vmem:[#allocation12_spill] sm:$0xff] %v7991_v45 }
 0x573   : > { %2994 = vst [vmem:[#allocation1] ss:$9 sm:$0xff] %v7986_v54 }
 0x574   : > { %2996 = vst [vmem:[#allocation1 + $0x1] ss:$9 sm:$0xff] %v7983_v5 }
 0x575   : > { %2998 = vst [vmem:[#allocation1 + $0x2] ss:$9 sm:$0xff] %v7989_v21 }
 0x576   : > { %3000 = vst [vmem:[#allocation1 + $0x3] ss:$9 sm:$0xff] %v7994_v29 }
 0x57d   : > { %v8010_v57 = vld [vmem:[#allocation1] sm:$0xff] }
 0x57e   : > { %9849 = vst [vmem:[#allocation6_spill] sm:$0xff] %v8010_v57  ;;  %v2859_v57 = vunpack.i.h.s16 %v7888_v49 }
 0x57f   : > { %3003 = vst [vmem:[#allocation1] ss:$9 sm:$0xff] %v8008_v1 }
 0x580   : > { %3005 = vst [vmem:[#allocation1 + $0x1] ss:$9 sm:$0xff] %v8017_v25 }
 0x581   : > { %3007 = vst [vmem:[#allocation1 + $0x2] ss:$9 sm:$0xff] %v8019_v47 }
 0x582   : > { %3009 = vst [vmem:[#allocation1 + $0x3] ss:$9 sm:$0xff] %v8013_v15 }
 0x589   : > { %v8029_v8 = vld [vmem:[#allocation1] sm:$0xff] }
 0x58a   : > { %9850 = vst [vmem:[#allocation10_spill] sm:$0xff] %v8029_v8 }
 0x58b   : > { %3040 = vst [vmem:[#allocation1] ss:$9 sm:$0xff] %v5822_v6  ;;  %v2649_v6 = vpop.f32.mrf.mxu3 }
 0x58c   : > { %3043 = vst [vmem:[#allocation1 + $0x1] ss:$9 sm:$0xff] %v5823_v35  ;;  %v2650_v35 = vadd.f32 %v2649_v6, %v2612_v63  ;;  %v8056_v63 = vpack.i.b16 %v7892_v9, %v2859_v57  ;;  %v8061_v6 = vunpack.i.h.s16 %v7892_v9  ;;  %v8072_v57 = vrot.slane %v7918_v52, 1 }
 0x58d   : > { %3046 = vst [vmem:[#allocation1 + $0x2] ss:$9 sm:$0xff] %v5824_v7  ;;  %v2855_v7 = vunpack.i.h.s16 %v7882_v18  ;;  %v2875_v52 = vunpack.i.h.s16 %v7951_v4 }
 0x58e   : > { %3049 = vst [vmem:[#allocation1 + $0x3] ss:$9 sm:$0xff] %v2843_v19  ;;  %v2857_v19 = vunpack.i.h.s16 %v7884_v24  ;;  %v2666_v23 = vmax.f32 %v2650_v35, 0.0 }
 0x590   : > { %v8043_v8 = vpack.c.bf16 %v2666_v23, %v2666_v23  ;;  %v8050_v45 = vpack.i.b16 %v7888_v49, %v2857_v19  ;;  %v8077_v19 = vunpack.i.l.s16 %v8072_v57  ;;  %v2873_v23 = vunpack.i.h.s16 %v7946_v14 }
 0x592   : > { %v8053_v3 = vrot.slane %v8043_v8, 3 }
 0x594   : > { %v8067_v35 = vsel %vm543_vm4, %v8043_v8, %v8053_v3 }
 0x595   : > { %v3050_v28 = vld [vmem:[#allocation1] sm:$0xff]  ;;  %9851 = vst [vmem:[#allocation15_spill] sm:$0xff] %v8067_v35  ;;  %v8117_v35 = vpack.i.b16 %v8017_v25, %v2891_v38 }
 0x596   : > { %3053 = vst [vmem:[#allocation1] ss:$9 sm:$0xff] %v7847_v58  ;;  %3112 = vrot.lane.b32.xlu1 %v3050_v28, %s6149_s25  ;;  %v8046_v28 = vpack.i.b16 %v7884_v24, %v2855_v7 }
 0x597   : > { %3055 = vst [vmem:[#allocation1 + $0x1] ss:$9 sm:$0xff] %v7849_v55 }
 0x598   : > { %3057 = vst [vmem:[#allocation1 + $0x2] ss:$9 sm:$0xff] %v7851_v36 }
 0x599   : > { %3059 = vst [vmem:[#allocation1 + $0x3] ss:$9 sm:$0xff] %v9563_v39  ;;  %v8086_v39 = vpack.i.b16 %v7951_v4, %v2873_v23  ;;  %v8103_v23 = vrot.slane %v7973_v20, 2  ;;  %v2895_v20 = vunpack.i.h.s16 %v8019_v47 }
 0x59a   : > { %9855 = vst [vmem:[#allocation30_spill] sm:$0xff] %v8117_v35 }
 0x5a0   : > { %v3060_v17 = vld [vmem:[#allocation1] sm:$0xff] }
 0x5a1   : > { %3063 = vst [vmem:[#allocation1] ss:$9 sm:$0xff] %v8046_v28  ;;  %3114 = vrot.lane.b32.xlu2 %v3060_v17, %s6149_s25  ;;  %v2877_v17 = vunpack.i.h.s16 %v7962_v42 }
 0x5a2   : > { %3065 = vst [vmem:[#allocation1 + $0x1] ss:$9 sm:$0xff] %v8050_v45 }
 0x5a3   : > { %3067 = vst [vmem:[#allocation1 + $0x2] ss:$9 sm:$0xff] %v8056_v63  ;;  %v8092_v56 = vpack.i.b16 %v7942_v40, %v2877_v17  ;;  %v8108_v17 = vunpack.i.l.s16 %v8103_v23 }
 0x5a4   : > { %3069 = vst [vmem:[#allocation1 + $0x3] ss:$9 sm:$0xff] %v8061_v6 }
 0x5a5   : > { %9852 = vst [vmem:[#allocation17_spill] sm:$0xff] %v8092_v56 }
 0x5a6   : > { %9854 = vst [vmem:[#allocation26_spill] sm:$0xff] %v8108_v17 }
 0x5ab   : > { %v3070_v7 = vld [vmem:[#allocation1] sm:$0xff] }
 0x5ac   : > { %3073 = vst [vmem:[#allocation1] ss:$9 sm:$0xff] %v7900_v53  ;;  %3116 = vrot.lane.b32.xlu2 %v3070_v7, %s6149_s25  ;;  %v8089_v7 = vpack.i.b16 %v7962_v42, %v2875_v52 }
 0x5ad   : > { %3075 = vst [vmem:[#allocation1 + $0x1] ss:$9 sm:$0xff] %v7909_v34 }
 0x5ae   : > { %3077 = vst [vmem:[#allocation1 + $0x2] ss:$9 sm:$0xff] %v7915_v10 }
 0x5af   : > { %3079 = vst [vmem:[#allocation1 + $0x3] ss:$9 sm:$0xff] %v8077_v19 }
 0x5b6   : > { %v3080_v43 = vld [vmem:[#allocation1] sm:$0xff] }
 0x5b7   : > { %3083 = vst [vmem:[#allocation1] ss:$9 sm:$0xff] %v8086_v39  ;;  %3118 = vrot.lane.b32.xlu2 %v3080_v43, %s6149_s25  ;;  %v2893_v43 = vunpack.i.h.s16 %v8017_v25 }
 0x5b8   : > { %3085 = vst [vmem:[#allocation1 + $0x1] ss:$9 sm:$0xff] %v8089_v7 }
 0x5b9   : > { %3087 = vst [vmem:[#allocation1 + $0x2] ss:$9 sm:$0xff] %v8092_v56  ;;  %v8145_v56 = vpack.i.b16 %v7876_v51, %v7860_v30 }
 0x5ba   : > { %3089 = vst [vmem:[#allocation1 + $0x3] ss:$9 sm:$0xff] %v8097_v33  ;;  %v2651_v33 = vpop.f32.mrf.mxu3 }
 0x5c1   : > { %v3090_v52 = vld [vmem:[#allocation1] sm:$0xff] }
 0x5c2   : > { %3093 = vst [vmem:[#allocation1] ss:$9 sm:$0xff] %v7965_v48  ;;  %3120 = vrot.lane.b32.xlu2 %v3090_v52, %s6149_s25  ;;  %v8120_v52 = vpack.i.b16 %v8019_v47, %v2893_v43  ;;  %v2844_v43 = vunpack.i.l.s16 %v7842_v11 }
 0x5c3   : > { %3095 = vst [vmem:[#allocation1 + $0x1] ss:$9 sm:$0xff] %v7969_v26  ;;  %v8125_v26 = vpack.i.b16 %v8005_v41, %v2895_v20  ;;  %v2575_v20 = vpop.f32.mrf.mxu1 }
 0x5c4   : > { %3097 = vst [vmem:[#allocation1 + $0x2] ss:$9 sm:$0xff] %v7978_v44  ;;  %v2613_v44 = vpop.f32.mrf.mxu2 }
 0x5c5   : > { %3099 = vst [vmem:[#allocation1 + $0x3] ss:$9 sm:$0xff] %v8108_v17  ;;  %v8129_v17 = vunpack.i.h.s16 %v8005_v41 }
 0x5c6   : > { %9856 = vst [vmem:[#allocation32_spill] sm:$0xff] %v8120_v52 }
 0x5c7   : > { %9857 = vst [vmem:[#allocation35_spill] sm:$0xff] %v8125_v26 }
 0x5c8   : > { %9858 = vst [vmem:[#allocation2_spill] sm:$0xff] %v8129_v17 }
 0x5cc   : > { %v8122_v48 = vld [vmem:[#allocation1] sm:$0xff] }
 0x5cd   : > { %3103 = vst [vmem:[#allocation1] ss:$9 sm:$0xff] %v8117_v35  ;;  %v2576_v35 = vadd.f32 %v7820_v13, %v2575_v20 }
 0x5ce   : > { %3105 = vst [vmem:[#allocation1 + $0x1] ss:$9 sm:$0xff] %v8120_v52 }
 0x5cf   : > { %3107 = vst [vmem:[#allocation1 + $0x2] ss:$9 sm:$0xff] %v8125_v26  ;;  %v2614_v52 = vadd.f32 %v2613_v44, %v2576_v35  ;;  %v2616_v35 = vpop.f32.mrf.mxu2 }
 0x5d0   : > { %3109 = vst [vmem:[#allocation1 + $0x3] ss:$9 sm:$0xff] %v8129_v17 }
 0x5d1   : > { %v8141_v26 = vadd.f32 %v2651_v33, %v2614_v52  ;;  %v9859_v33 = vrot.slane %v7895_v46, 1  ;;  %v8168_v46 = vpack.i.b16 %v8072_v57, %v7930_v12 }
 0x5d3   : > { %v8159_v44 = vunpack.i.l.s16 %v9859_v33 }
 0x5d7   : > { %v8134_v38 = vld [vmem:[#allocation1] sm:$0xff] }
 0x5d8   : > { %3140 = vst [vmem:[#allocation1] ss:$9 sm:$0xff] %v7830_v2  ;;  %v9584_v2 = vunpack.i.h.s16 %v7876_v51 }
 0x5d9   : > { %3142 = vst [vmem:[#allocation1 + $0x1] ss:$9 sm:$0xff] %v7832_v61  ;;  %v2578_v61 = vpop.f32.mrf.mxu1 }
 0x5da   : > { %3145 = vst [vmem:[#allocation1 + $0x2] ss:$9 sm:$0xff] %v7834_v60  ;;  %v2579_v11 = vadd.f32 %v7820_v13, %v2578_v61 }
 0x5db   : > { %3148 = vst [vmem:[#allocation1 + $0x3] ss:$9 sm:$0xff] %v2844_v43 }
 0x5dc   : > { %v2617_v52 = vadd.f32 %v2616_v35, %v2579_v11  ;;  %v9861_v11 = vrot.slane %v7949_v0, 2  ;;  %v8191_v35 = vpack.i.b16 %v8103_v23, %v7994_v29  ;;  %v2805_v0 = vrot.slane %v7997_v50, 3 }
 0x5de   : > { %v8182_v33 = vunpack.i.l.s16 %v9861_v11  ;;  %v8246_v11 = vsel %vm530_vm1, %v8043_v8, %v8053_v3 }
 0x5e1   : > { %v2580_v43 = vpop.f32.mrf.mxu1 }
 0x5e2   : > { %v3149_v17 = vld [vmem:[#allocation1] sm:$0xff]  ;;  %v8204_v43 = vunpack.i.l.s16 %v2805_v0 }
 0x5e3   : > { %3151 = vst [vmem:[#allocation1] ss:$9 sm:$0xff] %v7866_v16  ;;  %3199 = vrot.lane.b32.xlu1 %v3149_v17, %s6150_s26  ;;  %v2654_v17 = vpop.f32.mrf.mxu3 }
 0x5e4   : > { %3152 = vst [vmem:[#allocation1 + $0x1] ss:$9 sm:$0xff] %v7869_v27  ;;  %v8164_v20 = vadd.f32 %v2654_v17, %v2617_v52  ;;  %v8195_v17 = vunpack.i.h.s16 %v8103_v23 }
 0x5e5   : > { %3154 = vst [vmem:[#allocation1 + $0x2] ss:$9 sm:$0xff] %v8145_v56 }
 0x5e6   : > { %3156 = vst [vmem:[#allocation1 + $0x3] ss:$9 sm:$0xff] %v9584_v2  ;;  %v2618_v2 = vpop.f32.mrf.mxu2 }
 0x5e7   : > { %9860 = vst [vmem:[#allocation40_spill] sm:$0xff] %v8164_v20 }
 0x5eb   : > { %v2656_v13 = vpop.f32.mrf.mxu3 }
 0x5ed   : > { %v3157_v60 = vld [vmem:[#allocation1] sm:$0xff] }
 0x5ee   : > { %3159 = vst [vmem:[#allocation1] ss:$9 sm:$0xff] %v7884_v24  ;;  %3201 = vrot.lane.b32.xlu2 %v3157_v60, %s6150_s26  ;;  %v8173_v60 = vunpack.i.h.s16 %v8072_v57 }
 0x5ef   : > { %3160 = vst [vmem:[#allocation1 + $0x1] ss:$9 sm:$0xff] %v7888_v49 }
 0x5f0   : > { %3162 = vst [vmem:[#allocation1 + $0x2] ss:$9 sm:$0xff] %v7892_v9 }
 0x5f1   : > { %3164 = vst [vmem:[#allocation1 + $0x3] ss:$9 sm:$0xff] %v8159_v44 }
 0x5f8   : > { %v3165_v61 = vld [vmem:[#allocation1] sm:$0xff] }
 0x5f9   : > { %3167 = vst [vmem:[#allocation1] ss:$9 sm:$0xff] %v7925_v62  ;;  %3203 = vrot.lane.b32.xlu1 %v3165_v61, %s6150_s26 }
 0x5fa   : > { %3168 = vst [vmem:[#allocation1 + $0x1] ss:$9 sm:$0xff] %v7933_v59 }
 0x5fb   : > { %3170 = vst [vmem:[#allocation1 + $0x2] ss:$9 sm:$0xff] %v8168_v46 }
 0x5fc   : > { %3172 = vst [vmem:[#allocation1 + $0x3] ss:$9 sm:$0xff] %v8173_v60 }
 0x603   : > { %v3173_v2 = vld [vmem:[#allocation1] sm:$0xff] }
 0x604   : > { %3175 = vst [vmem:[#allocation1] ss:$9 sm:$0xff] %v7951_v4  ;;  %3205 = vrot.lane.b32.xlu1 %v3173_v2, %s6150_s26  ;;  %v2810_v2 = vsel %vm535_vm2, %v8043_v8, %v8053_v3 }
 0x605   : > { %3176 = vst [vmem:[#allocation1 + $0x1] ss:$9 sm:$0xff] %v7962_v42 }
 0x606   : > { %3178 = vst [vmem:[#allocation1 + $0x2] ss:$9 sm:$0xff] %v7942_v40 }
 0x607   : > { %3180 = vst [vmem:[#allocation1 + $0x3] ss:$9 sm:$0xff] %v8182_v33 }
 0x60e   : > { %v8187_v57 = vld [vmem:[#allocation1] sm:$0xff] }
 0x60f   : > { %9862 = vst [vmem:[#allocation45_spill] sm:$0xff] %v8187_v57 }
 0x610   : > { %3183 = vst [vmem:[#allocation1] ss:$9 sm:$0xff] %v7983_v5 }
 0x611   : > { %3184 = vst [vmem:[#allocation1 + $0x1] ss:$9 sm:$0xff] %v7989_v21 }
 0x612   : > { %3186 = vst [vmem:[#allocation1 + $0x2] ss:$9 sm:$0xff] %v8191_v35 }
 0x613   : > { %3188 = vst [vmem:[#allocation1 + $0x3] ss:$9 sm:$0xff] %v8195_v17 }
 0x61a   : > { %v8201_v52 = vld [vmem:[#allocation1] sm:$0xff] }
 0x61b   : > { %9863 = vst [vmem:[#allocation51_spill] sm:$0xff] %v8201_v52 }
 0x61c   : > { %3191 = vst [vmem:[#allocation1] ss:$9 sm:$0xff] %v8017_v25 }
 0x61d   : > { %3192 = vst [vmem:[#allocation1 + $0x1] ss:$9 sm:$0xff] %v8019_v47 }
 0x61e   : > { %3194 = vst [vmem:[#allocation1 + $0x2] ss:$9 sm:$0xff] %v8005_v41 }
 0x61f   : > { %3196 = vst [vmem:[#allocation1 + $0x3] ss:$9 sm:$0xff] %v8204_v43 }
 0x626   : > { %v8209_v23 = vld [vmem:[#allocation1] sm:$0xff] }
 0x627   : > { %9864 = vst [vmem:[#allocation54_spill] sm:$0xff] %v8209_v23 }
 0x628   : > { %3217 = vst [vmem:[#allocation1] ss:$9 sm:$0xff] %v7863_v32 }
 0x629   : > { %3219 = vst [vmem:[#allocation1 + $0x1] ss:$9 sm:$0xff] %v7866_v16 }
 0x62a   : > { %3221 = vst [vmem:[#allocation1 + $0x2] ss:$9 sm:$0xff] %v7869_v27 }
 0x62b   : > { %3223 = vst [vmem:[#allocation1 + $0x3] ss:$9 sm:$0xff] %v7860_v30 }
 0x632   : > { %v3224_v50 = vld [vmem:[#allocation1] sm:$0xff] }
 0x633   : > { %3226 = vst [vmem:[#allocation1] ss:$9 sm:$0xff] %v7882_v18  ;;  %3266 = vrot.lane.b32.xlu2 %v3224_v50, %s6151_s27  ;;  %v8248_v50 = vrot.slane %v2810_v2, 1 }
 0x634   : > { %3227 = vst [vmem:[#allocation1 + $0x1] ss:$9 sm:$0xff] %v7884_v24 }
 0x635   : > { %3228 = vst [vmem:[#allocation1 + $0x2] ss:$9 sm:$0xff] %v7888_v49 }
 0x636   : > { %3229 = vst [vmem:[#allocation1 + $0x3] ss:$9 sm:$0xff] %v7904_v37 }
 0x63d   : > { %v3230_v13 = vld [vmem:[#allocation1] sm:$0xff] }
 0x63e   : > { %3232 = vst [vmem:[#allocation1] ss:$9 sm:$0xff] %v7922_v31  ;;  %3268 = vrot.lane.b32.xlu2 %v3230_v13, %s6151_s27  ;;  %v2813_v13 = vsel %vm539_vm3, %v8043_v8, %v8053_v3  ;;  %v9865_v3 = vunpack.i.l.s16 %v7876_v51 }
 0x63f   : > { %3233 = vst [vmem:[#allocation1 + $0x1] ss:$9 sm:$0xff] %v7925_v62  ;;  %v8255_v20 = vrot.slane %v2813_v13, 2  ;;  %v9872_v13 = vld [vmem:[#allocation4_spill] sm:$0xff] }
 0x640   : > { %3234 = vst [vmem:[#allocation1 + $0x2] ss:$9 sm:$0xff] %v7933_v59 }
 0x641   : > { %3235 = vst [vmem:[#allocation1 + $0x3] ss:$9 sm:$0xff] %v7930_v12  ;;  %v8270_v8 = vunpack.i.h.s16 %v8255_v20 }
 0x648   : > { %v3236_v30 = vld [vmem:[#allocation1] sm:$0xff] }
 0x649   : > { %3238 = vst [vmem:[#allocation1] ss:$9 sm:$0xff] %v7946_v14  ;;  %3270 = vrot.lane.b32.xlu2 %v3236_v30, %s6151_s27  ;;  %v2901_v30 = vunpack.i.h.s16 %v8246_v11 }
 0x64a   : > { %3239 = vst [vmem:[#allocation1 + $0x1] ss:$9 sm:$0xff] %v7951_v4 }
 0x64b   : > { %3240 = vst [vmem:[#allocation1 + $0x2] ss:$9 sm:$0xff] %v7962_v42  ;;  %v8263_v2 = vpack.i.b16 %v8248_v50, %v2901_v30  ;;  %v9873_v30 = vld [vmem:[#allocation79_spill] sm:$0xff] }
 0x64c   : > { %3241 = vst [vmem:[#allocation1 + $0x3] ss:$9 sm:$0xff] %v7957_v22 }
 0x653   : > { %v3242_v32 = vld [vmem:[#allocation1] sm:$0xff] }
 0x654   : > { %3244 = vst [vmem:[#allocation1] ss:$9 sm:$0xff] %v7986_v54  ;;  %3272 = vrot.lane.b32.xlu2 %v3242_v32, %s6151_s27  ;;  %v2899_v32 = vunpack.i.h.s16 %v2805_v0 }
 0x655   : > { %3245 = vst [vmem:[#allocation1 + $0x1] ss:$9 sm:$0xff] %v7983_v5 }
 0x656   : > { %3246 = vst [vmem:[#allocation1 + $0x2] ss:$9 sm:$0xff] %v7989_v21  ;;  %v8260_v23 = vpack.i.b16 %v8246_v11, %v2899_v32  ;;  %v9874_v32 = vld [vmem:[#allocation80_spill] sm:$0xff] }
 0x657   : > { %3247 = vst [vmem:[#allocation1 + $0x3] ss:$9 sm:$0xff] %v7994_v29 }
 0x65e   : > { %v3248_v61 = vld [vmem:[#allocation1] sm:$0xff] }
 0x65f   : > { %3250 = vst [vmem:[#allocation1] ss:$9 sm:$0xff] %v8008_v1  ;;  %3274 = vrot.lane.b32.xlu2 %v3248_v61, %s6151_s27  ;;  %v2903_v61 = vunpack.i.h.s16 %v8248_v50 }
 0x660   : > { %3251 = vst [vmem:[#allocation1 + $0x1] ss:$9 sm:$0xff] %v8017_v25 }
 0x661   : > { %3252 = vst [vmem:[#allocation1 + $0x2] ss:$9 sm:$0xff] %v8019_v47  ;;  %v8266_v57 = vpack.i.b16 %v8255_v20, %v2903_v61  ;;  %v9875_v61 = vld [vmem:[#allocation26_spill] sm:$0xff] }
 0x662   : > { %3253 = vst [vmem:[#allocation1 + $0x3] ss:$9 sm:$0xff] %v8013_v15 }
 0x667   : > { %3122 = vrot.lane.b32.xlu2 %v8122_v48, %s6149_s25 }
 0x669   : > { %v3254_v52 = vld [vmem:[#allocation1] sm:$0xff] }
 0x66a   : > { %3257 = vst [vmem:[#allocation1] ss:$9 sm:$0xff] %v8260_v23 }
 0x66b   : > { %3259 = vst [vmem:[#allocation1 + $0x1] ss:$9 sm:$0xff] %v8263_v2 }
 0x66c   : > { %3261 = vst [vmem:[#allocation1 + $0x2] ss:$9 sm:$0xff] %v8266_v57 }
 0x66d   : > { %3263 = vst [vmem:[#allocation1 + $0x3] ss:$9 sm:$0xff] %v8270_v8 }
 0x66f   : > { %3276 = vrot.lane.b32.xlu2 %v3254_v52, %s6151_s27 }
 0x674   : > { %v3264_v48 = vld [vmem:[#allocation1] sm:$0xff] }
 0x675   : > { %3284 = vst [vmem:[#allocation1] ss:$9 sm:$0xff] %v7847_v58 }
 0x676   : > { %3286 = vst [vmem:[#allocation1 + $0x1] ss:$9 sm:$0xff] %v7849_v55 }
 0x677   : > { %3288 = vst [vmem:[#allocation1 + $0x2] ss:$9 sm:$0xff] %v7851_v36  ;;  %3124 = vrot.lane.b32.xlu2 %v8134_v38, %s6149_s25  ;;  %v9869_v36 = vld [vmem:[#allocation17_spill] sm:$0xff]  ;;  %v9870_v38 = vld [vmem:[#allocation19_spill] sm:$0xff] }
 0x678   : > { %3290 = vst [vmem:[#allocation1 + $0x3] ss:$9 sm:$0xff] %v9865_v3  ;;  %v9877_v3 = vld [vmem:[#allocation30_spill] sm:$0xff] }
 0x67f   : > { %v8283_v0 = vld [vmem:[#allocation1] sm:$0xff]  ;;  %3278 = vrot.lane.b32.xlu2 %v3264_v48, %s6151_s27 }
 0x680   : > { %9866 = vst [vmem:[#allocation69_spill] sm:$0xff] %v8283_v0  ;;  %v9880_v0 = vld [vmem:[#allocation2_spill] sm:$0xff] }
 0x681   : > { %3292 = vst [vmem:[#allocation1] ss:$9 sm:$0xff] %v8046_v28 }
 0x682   : > { %3293 = vst [vmem:[#allocation1 + $0x1] ss:$9 sm:$0xff] %v8050_v45 }
 0x683   : > { %3294 = vst [vmem:[#allocation1 + $0x2] ss:$9 sm:$0xff] %v8056_v63 }
 0x684   : > { %3295 = vst [vmem:[#allocation1 + $0x3] ss:$9 sm:$0xff] %v8061_v6 }
 0x68b   : > { %v8290_v58 = vld [vmem:[#allocation1] sm:$0xff] }
 0x68c   : > { %9867 = vst [vmem:[#allocation7_spill] sm:$0xff] %v8290_v58  ;;  %v9879_v58 = vld [vmem:[#allocation35_spill] sm:$0xff] }
 0x68d   : > { %3297 = vst [vmem:[#allocation1] ss:$9 sm:$0xff] %v7900_v53 }
 0x68e   : > { %3298 = vst [vmem:[#allocation1 + $0x1] ss:$9 sm:$0xff] %v7909_v34 }
 0x68f   : > { %3299 = vst [vmem:[#allocation1 + $0x2] ss:$9 sm:$0xff] %v7915_v10 }
 0x690   : > { %3300 = vst [vmem:[#allocation1 + $0x3] ss:$9 sm:$0xff] %v8077_v19 }
 0x697   : > { %v8296_v55 = vld [vmem:[#allocation1] sm:$0xff] }
 0x698   : > { %9868 = vst [vmem:[#allocation8_spill] sm:$0xff] %v8296_v55  ;;  %v9878_v55 = vld [vmem:[#allocation32_spill] sm:$0xff] }
 0x699   : > { %3302 = vst [vmem:[#allocation1] ss:$9 sm:$0xff] %v8086_v39 }
 0x69a   : > { %3303 = vst [vmem:[#allocation1 + $0x1] ss:$9 sm:$0xff] %v8089_v7 }
 0x69b   : > { %3304 = vst [vmem:[#allocation1 + $0x2] ss:$9 sm:$0xff] %v9869_v36 }
 0x69c   : > { %3305 = vst [vmem:[#allocation1 + $0x3] ss:$9 sm:$0xff] %v9870_v38  ;;  %v9881_v38 = vld [vmem:[#allocation15_spill] sm:$0xff] }
 0x6a3   : > { %v8302_v52 = vld [vmem:[#allocation1] sm:$0xff] }
 0x6a4   : > { %9871 = vst [vmem:[#allocation9_spill] sm:$0xff] %v8302_v52  ;;  %v8315_v52 = vrot.slane %v9881_v38, 3  ;;  %v9883_v38 = vunpack.i.h.s16 %v7876_v51 }
 0x6a5   : > { %3307 = vst [vmem:[#allocation1] ss:$9 sm:$0xff] %v9872_v13 }
 0x6a6   : > { %3308 = vst [vmem:[#allocation1 + $0x1] ss:$9 sm:$0xff] %v9873_v30 }
 0x6a7   : > { %3309 = vst [vmem:[#allocation1 + $0x2] ss:$9 sm:$0xff] %v9874_v32  ;;  %v9585_v32 = vunpack.i.l.s16 %v8315_v52 }
 0x6a8   : > { %3310 = vst [vmem:[#allocation1 + $0x3] ss:$9 sm:$0xff] %v9875_v61 }
 0x6af   : > { %v8308_v48 = vld [vmem:[#allocation1] sm:$0xff] }
 0x6b0   : > { %9876 = vst [vmem:[#allocation11_spill] sm:$0xff] %v8308_v48 }
 0x6b1   : > { %3312 = vst [vmem:[#allocation1] ss:$9 sm:$0xff] %v9877_v3 }
 0x6b2   : > { %3313 = vst [vmem:[#allocation1 + $0x1] ss:$9 sm:$0xff] %v9878_v55 }
 0x6b3   : > { %3314 = vst [vmem:[#allocation1 + $0x2] ss:$9 sm:$0xff] %v9879_v58 }
 0x6b4   : > { %3315 = vst [vmem:[#allocation1 + $0x3] ss:$9 sm:$0xff] %v9880_v0 }
 0x6bb   : > { %v8317_v13 = vld [vmem:[#allocation1] sm:$0xff] }
 0x6bc   : > { %9882 = vst [vmem:[#allocation60_spill] sm:$0xff] %v8317_v13 }
 0x6bd   : > { %3318 = vst [vmem:[#allocation1] ss:$9 sm:$0xff] %v8246_v11 }
 0x6be   : > { %3320 = vst [vmem:[#allocation1 + $0x1] ss:$9 sm:$0xff] %v8248_v50 }
 0x6bf   : > { %3322 = vst [vmem:[#allocation1 + $0x2] ss:$9 sm:$0xff] %v8255_v20 }
 0x6c0   : > { %3324 = vst [vmem:[#allocation1 + $0x3] ss:$9 sm:$0xff] %v9585_v32 }
 0x6c7   : > { %v8325_v48 = vld [vmem:[#allocation1] sm:$0xff] }
 0x6c8   : > { %3328 = vst [vmem:[#allocation1] ss:$9 sm:$0xff] %v7866_v16 }
 0x6c9   : > { %3330 = vst [vmem:[#allocation1 + $0x1] ss:$9 sm:$0xff] %v7869_v27 }
 0x6ca   : > { %3332 = vst [vmem:[#allocation1 + $0x2] ss:$9 sm:$0xff] %v8145_v56 }
 0x6cb   : > { %3334 = vst [vmem:[#allocation1 + $0x3] ss:$9 sm:$0xff] %v9883_v38 }
 0x6d2   : > { %v3335_v13 = vld [vmem:[#allocation1] sm:$0xff] }
 0x6d3   : > { %3337 = vst [vmem:[#allocation1] ss:$9 sm:$0xff] %v7884_v24  ;;  %3375 = vrot.lane.b32.xlu0 %v3335_v13, %s6149_s25  ;;  %v8361_v13 = vpack.i.b16 %v8315_v52, %v8270_v8 }
 0x6d4   : > { %3338 = vst [vmem:[#allocation1 + $0x1] ss:$9 sm:$0xff] %v7888_v49 }
 0x6d5   : > { %3339 = vst [vmem:[#allocation1 + $0x2] ss:$9 sm:$0xff] %v7892_v9 }
 0x6d6   : > { %3340 = vst [vmem:[#allocation1 + $0x3] ss:$9 sm:$0xff] %v8159_v44 }
 0x6dd   : > { %v3341_v32 = vld [vmem:[#allocation1] sm:$0xff] }
 0x6de   : > { %3343 = vst [vmem:[#allocation1] ss:$9 sm:$0xff] %v7925_v62  ;;  %3377 = vrot.lane.b32.xlu0 %v3341_v32, %s6149_s25  ;;  %v2907_v32 = vunpack.i.h.s16 %v8315_v52 }
 0x6df   : > { %3344 = vst [vmem:[#allocation1 + $0x1] ss:$9 sm:$0xff] %v7933_v59 }
 0x6e0   : > { %3345 = vst [vmem:[#allocation1 + $0x2] ss:$9 sm:$0xff] %v8168_v46 }
 0x6e1   : > { %3346 = vst [vmem:[#allocation1 + $0x3] ss:$9 sm:$0xff] %v8173_v60 }
 0x6e8   : > { %v3347_v16 = vld [vmem:[#allocation1] sm:$0xff] }
 0x6e9   : > { %3349 = vst [vmem:[#allocation1] ss:$9 sm:$0xff] %v7951_v4  ;;  %3379 = vrot.lane.b32.xlu0 %v3347_v16, %s6149_s25 }
 0x6ea   : > { %3350 = vst [vmem:[#allocation1 + $0x1] ss:$9 sm:$0xff] %v7962_v42 }
 0x6eb   : > { %3351 = vst [vmem:[#allocation1 + $0x2] ss:$9 sm:$0xff] %v7942_v40 }
 0x6ec   : > { %3352 = vst [vmem:[#allocation1 + $0x3] ss:$9 sm:$0xff] %v8182_v33 }
 0x6f3   : > { %v3353_v27 = vld [vmem:[#allocation1] sm:$0xff] }
 0x6f4   : > { %3355 = vst [vmem:[#allocation1] ss:$9 sm:$0xff] %v7983_v5  ;;  %3381 = vrot.lane.b32.xlu0 %v3353_v27, %s6149_s25 }
 0x6f5   : > { %3356 = vst [vmem:[#allocation1 + $0x1] ss:$9 sm:$0xff] %v7989_v21 }
 0x6f6   : > { %3357 = vst [vmem:[#allocation1 + $0x2] ss:$9 sm:$0xff] %v8191_v35 }
 0x6f7   : > { %3358 = vst [vmem:[#allocation1 + $0x3] ss:$9 sm:$0xff] %v8195_v17 }
 0x6fe   : > { %v3359_v51 = vld [vmem:[#allocation1] sm:$0xff] }
 0x6ff   : > { %3361 = vst [vmem:[#allocation1] ss:$9 sm:$0xff] %v8017_v25  ;;  %3383 = vrot.lane.b32.xlu0 %v3359_v51, %s6149_s25 }
 0x700   : > { %3362 = vst [vmem:[#allocation1 + $0x1] ss:$9 sm:$0xff] %v8019_v47 }
 0x701   : > { %3363 = vst [vmem:[#allocation1 + $0x2] ss:$9 sm:$0xff] %v8005_v41 }
 0x702   : > { %3364 = vst [vmem:[#allocation1 + $0x3] ss:$9 sm:$0xff] %v8204_v43 }
 0x709   : > { %v8357_v56 = vld [vmem:[#allocation1] sm:$0xff] }
 0x70a   : > { %3367 = vst [vmem:[#allocation1] ss:$9 sm:$0xff] %v8263_v2 }
 0x70b   : > { %3368 = vst [vmem:[#allocation1 + $0x1] ss:$9 sm:$0xff] %v8266_v57 }
 0x70c   : > { %3370 = vst [vmem:[#allocation1 + $0x2] ss:$9 sm:$0xff] %v8361_v13 }
 0x70d   : > { %3372 = vst [vmem:[#allocation1 + $0x3] ss:$9 sm:$0xff] %v2907_v32 }
 0x714   : > { %v8369_v38 = vld [vmem:[#allocation1] sm:$0xff] }
 0x715   : > { %3393 = vst [vmem:[#allocation1] ss:$9 sm:$0xff] %v7882_v18 }
 0x716   : > { %3395 = vst [vmem:[#allocation1 + $0x1] ss:$9 sm:$0xff] %v7884_v24 }
 0x717   : > { %3397 = vst [vmem:[#allocation1 + $0x2] ss:$9 sm:$0xff] %v7888_v49 }
 0x718   : > { %3399 = vst [vmem:[#allocation1 + $0x3] ss:$9 sm:$0xff] %v7904_v37 }
 0x71f   : > { %v3400_v16 = vld [vmem:[#allocation1] sm:$0xff] }
 0x720   : > { %3402 = vst [vmem:[#allocation1] ss:$9 sm:$0xff] %v7922_v31  ;;  %3442 = vrot.lane.b32.xlu0 %v3400_v16, %s6150_s26  ;;  %v2667_v31 = vmax.f32 %v8141_v26, 0.0 }
 0x721   : > { %3403 = vst [vmem:[#allocation1 + $0x1] ss:$9 sm:$0xff] %v7925_v62 }
 0x722   : > { %3404 = vst [vmem:[#allocation1 + $0x2] ss:$9 sm:$0xff] %v7933_v59 }
 0x723   : > { %3405 = vst [vmem:[#allocation1 + $0x3] ss:$9 sm:$0xff] %v7930_v12  ;;  %v2678_v12 = vpack.c.bf16 %v2667_v31, %v2667_v31  ;;  %v6069_v31 = vld [vmem:[%s9422_s5 + $0x78] sm:$0xff] }
 0x724   : > { %4131 = vmatpush.bf16.msrb.mxu1 %v6069_v31 }
 0x72a   : > { %v3406_v27 = vld [vmem:[#allocation1] sm:$0xff] }
 0x72b   : > { %3408 = vst [vmem:[#allocation1] ss:$9 sm:$0xff] %v7946_v14  ;;  %3444 = vrot.lane.b32.xlu1 %v3406_v27, %s6150_s26 }
 0x72c   : > { %3409 = vst [vmem:[#allocation1 + $0x1] ss:$9 sm:$0xff] %v7951_v4 }
 0x72d   : > { %3410 = vst [vmem:[#allocation1 + $0x2] ss:$9 sm:$0xff] %v7962_v42 }
 0x72e   : > { %3411 = vst [vmem:[#allocation1 + $0x3] ss:$9 sm:$0xff] %v7957_v22  ;;  %v2700_v22 = vrot.slane %v2678_v12, 3 }
 0x735   : > { %v3412_v18 = vld [vmem:[#allocation1] sm:$0xff] }
 0x736   : > { %3414 = vst [vmem:[#allocation1] ss:$9 sm:$0xff] %v7986_v54  ;;  %3446 = vrot.lane.b32.xlu1 %v3412_v18, %s6150_s26  ;;  %v2829_v54 = vsel %vm543_vm4, %v2678_v12, %v2700_v22 }
 0x737   : > { %3415 = vst [vmem:[#allocation1 + $0x1] ss:$9 sm:$0xff] %v7983_v5  ;;  %v8404_v26 = vrot.slane %v2829_v54, 3  ;;  %v6068_v54 = vld [vmem:[%s9422_s5 + $0x70] sm:$0xff] }
 0x738   : > { %3416 = vst [vmem:[#allocation1 + $0x2] ss:$9 sm:$0xff] %v7989_v21  ;;  %4132 = vmatpush.bf16.msrb.mxu1 %v6068_v54 }
 0x739   : > { %3417 = vst [vmem:[#allocation1 + $0x3] ss:$9 sm:$0xff] %v7994_v29  ;;  %v2823_v29 = vsel %vm535_vm2, %v2678_v12, %v2700_v22  ;;  %v2914_v27 = vunpack.i.l.s16 %v8404_v26 }
 0x73a   : > { %v8407_v51 = vrot.slane %v2823_v29, 1  ;;  %v6059_v29 = vld [vmem:[%s9422_s5 + $0x28] sm:$0xff] }
 0x740   : > { %v3418_v37 = vld [vmem:[#allocation1] sm:$0xff] }
 0x741   : > { %3420 = vst [vmem:[#allocation1] ss:$9 sm:$0xff] %v8008_v1  ;;  %3448 = vrot.lane.b32.xlu1 %v3418_v37, %s6150_s26  ;;  %v2826_v1 = vsel %vm539_vm3, %v2678_v12, %v2700_v22  ;;  %v8467_v37 = vpop.permute.xlu2 %3114 }
 0x742   : > { %3421 = vst [vmem:[#allocation1 + $0x1] ss:$9 sm:$0xff] %v8017_v25  ;;  %v8409_v16 = vrot.slane %v2826_v1, 2  ;;  %v6070_v1 = vld [vmem:[%s9422_s5 + $0x80] sm:$0xff] }
 0x743   : > { %3422 = vst [vmem:[#allocation1 + $0x2] ss:$9 sm:$0xff] %v8019_v47 }
 0x744   : > { %3423 = vst [vmem:[#allocation1 + $0x3] ss:$9 sm:$0xff] %v8013_v15 }
 0x74b   : > { %v3424_v14 = vld [vmem:[#allocation1] sm:$0xff] }
 0x74c   : > { %3426 = vst [vmem:[#allocation1] ss:$9 sm:$0xff] %v8260_v23  ;;  %3450 = vrot.lane.b32.xlu1 %v3424_v14, %s6150_s26  ;;  %v2821_v23 = vsel %vm530_vm1, %v2678_v12, %v2700_v22  ;;  %v6060_v12 = vld [vmem:[%s9422_s5 + $0x30] sm:$0xff]  ;;  %v8478_v14 = vpop.permute.xlu0 %3375 }
 0x74d   : > { %3427 = vst [vmem:[#allocation1 + $0x1] ss:$9 sm:$0xff] %v8263_v2 }
 0x74e   : > { %3428 = vst [vmem:[#allocation1 + $0x2] ss:$9 sm:$0xff] %v8266_v57 }
 0x74f   : > { %3429 = vst [vmem:[#allocation1 + $0x3] ss:$9 sm:$0xff] %v8270_v8 }
 0x756   : > { %v3430_v15 = vld [vmem:[#allocation1] sm:$0xff] }
 0x757   : > { %3433 = vst [vmem:[#allocation1] ss:$9 sm:$0xff] %v2821_v23 }
 0x758   : > { %3435 = vst [vmem:[#allocation1 + $0x1] ss:$9 sm:$0xff] %v8407_v51 }
 0x759   : > { %3437 = vst [vmem:[#allocation1 + $0x2] ss:$9 sm:$0xff] %v8409_v16 }
 0x75a   : > { %3439 = vst [vmem:[#allocation1 + $0x3] ss:$9 sm:$0xff] %v2914_v27  ;;  %v6058_v27 = vld [vmem:[%s9422_s5 + $0x20] sm:$0xff] }
 0x761   : > { %v3440_v8 = vld [vmem:[#allocation1] sm:$0xff] }
 0x762   : > { %3460 = vst [vmem:[#allocation1] ss:$9 sm:$0xff] %v8046_v28 }
 0x763   : > { %3462 = vst [vmem:[#allocation1 + $0x1] ss:$9 sm:$0xff] %v8050_v45  ;;  %v9886_v45 = vld [vmem:[#allocation4_spill] sm:$0xff] }
 0x764   : > { %3464 = vst [vmem:[#allocation1 + $0x2] ss:$9 sm:$0xff] %v8056_v63  ;;  %v9887_v63 = vld [vmem:[#allocation80_spill] sm:$0xff] }
 0x765   : > { %3466 = vst [vmem:[#allocation1 + $0x3] ss:$9 sm:$0xff] %v8061_v6 }
 0x76c   : > { %v3467_v18 = vld [vmem:[#allocation1] sm:$0xff] }
 0x76d   : > { %3469 = vst [vmem:[#allocation1] ss:$9 sm:$0xff] %v7900_v53  ;;  %3509 = vrot.lane.b32.xlu0 %v3467_v18, %s6151_s27  ;;  %v9884_v53 = vld [vmem:[#allocation19_spill] sm:$0xff] }
 0x76e   : > { %3470 = vst [vmem:[#allocation1 + $0x1] ss:$9 sm:$0xff] %v7909_v34  ;;  %v9885_v34 = vld [vmem:[#allocation45_spill] sm:$0xff] }
 0x76f   : > { %3471 = vst [vmem:[#allocation1 + $0x2] ss:$9 sm:$0xff] %v7915_v10 }
 0x770   : > { %3472 = vst [vmem:[#allocation1 + $0x3] ss:$9 sm:$0xff] %v8077_v19  ;;  %v9888_v19 = vld [vmem:[#allocation51_spill] sm:$0xff] }
 0x775   : > { %3385 = vrot.lane.b32.xlu0 %v8357_v56, %s6149_s25  ;;  %v2915_v56 = vunpack.i.h.s16 %v8404_v26 }
 0x777   : > { %v3473_v28 = vld [vmem:[#allocation1] sm:$0xff] }
 0x778   : > { %3511 = vrot.lane.b32.xlu1 %v3473_v28, %s6151_s27  ;;  %3475 = vst [vmem:[#allocation1] ss:$9 sm:$0xff] %v8086_v39  ;;  %v6061_v39 = vld [vmem:[%s9422_s5 + $0x38] sm:$0xff]  ;;  %v3378_v28 = vpop.permute.xlu0 %3377 }
 0x779   : > { %3476 = vst [vmem:[#allocation1 + $0x1] ss:$9 sm:$0xff] %v8089_v7  ;;  %4103 = vmatpush.bf16.msrb.mxu3 %v6061_v39 }
 0x77a   : > { %3477 = vst [vmem:[#allocation1 + $0x2] ss:$9 sm:$0xff] %v9869_v36  ;;  %v2911_v36 = vunpack.i.h.s16 %v8407_v51 }
 0x77b   : > { %3478 = vst [vmem:[#allocation1 + $0x3] ss:$9 sm:$0xff] %v9884_v53 }
 0x77d   : > { %4104 = vmatpush.bf16.msrb.mxu3 %v6060_v12 }
 0x780   : > { %3207 = vrot.lane.b32.xlu1 %v9885_v34, %s6150_s26 }
 0x781   : > { %4105 = vmatpush.bf16.msrb.mxu3 %v6059_v29  ;;  %v9895_v29 = vld [vmem:[#allocation73_spill] sm:$0xff] }
 0x782   : > { %v3479_v10 = vld [vmem:[#allocation1] sm:$0xff] }
 0x783   : > { %3513 = vrot.lane.b32.xlu0 %v3479_v10, %s6151_s27  ;;  %3481 = vst [vmem:[#allocation1] ss:$9 sm:$0xff] %v9886_v45  ;;  %v8525_v10 = vpop.permute.xlu0 %3379 }
 0x784   : > { %3482 = vst [vmem:[#allocation1 + $0x1] ss:$9 sm:$0xff] %v9873_v30  ;;  %v2913_v30 = vunpack.i.h.s16 %v8409_v16 }
 0x785   : > { %3483 = vst [vmem:[#allocation1 + $0x2] ss:$9 sm:$0xff] %v9887_v63  ;;  %4106 = vmatpush.bf16.msrb.mxu3 %v6058_v27 }
 0x786   : > { %3484 = vst [vmem:[#allocation1 + $0x3] ss:$9 sm:$0xff] %v9875_v61  ;;  %v8462_v61 = vpop.permute.xlu1 %3112 }
 0x788   : > { %3452 = vrot.lane.b32.xlu1 %v3430_v15, %s6150_s26 }
 0x78d   : > { %v3485_v6 = vld [vmem:[#allocation1] sm:$0xff] }
 0x78e   : > { %3515 = vrot.lane.b32.xlu0 %v3485_v6, %s6151_s27  ;;  %3487 = vst [vmem:[#allocation1] ss:$9 sm:$0xff] %v9877_v3  ;;  %v5843_v3 = vpack.i.b16 %v8404_v26, %v2913_v30  ;;  %v8481_v22 = vpop.permute.xlu1 %3199  ;;  %v9893_v30 = vld [vmem:[#allocation7_spill] sm:$0xff] }
 0x78f   : > { %3488 = vst [vmem:[#allocation1 + $0x1] ss:$9 sm:$0xff] %v9878_v55  ;;  %v9889_v55 = vunpack.i.l.s16 %v8315_v52  ;;  %v6063_v52 = vld [vmem:[%s9422_s5 + $0x48] sm:$0xff] }
 0x790   : > { %3489 = vst [vmem:[#allocation1 + $0x2] ss:$9 sm:$0xff] %v9879_v58  ;;  %3209 = vrot.lane.b32.xlu1 %v9888_v19, %s6150_s26  ;;  %v2909_v58 = vunpack.i.h.s16 %v2821_v23  ;;  %v6067_v23 = vld [vmem:[%s9422_s5 + $0x68] sm:$0xff] }
 0x791   : > { %3490 = vst [vmem:[#allocation1 + $0x3] ss:$9 sm:$0xff] %v9880_v0  ;;  %v9890_v0 = vld [vmem:[#allocation54_spill] sm:$0xff]  ;;  %4133 = vmatpush.bf16.msrb.mxu1 %v6067_v23 }
 0x796   : > { %v8504_v18 = vpop.permute.xlu1 %3203 }
 0x798   : > { %v3491_v7 = vld [vmem:[#allocation1] sm:$0xff]  ;;  %3454 = vrot.lane.b32.xlu1 %v3440_v8, %s6150_s26  ;;  %v8500_v8 = vpop.permute.xlu2 %3116 }
 0x799   : > { %3517 = vrot.lane.b32.xlu0 %v3491_v7, %s6151_s27  ;;  %3493 = vst [vmem:[#allocation1] ss:$9 sm:$0xff] %v8246_v11  ;;  %v5841_v11 = vpack.i.b16 %v8407_v51, %v2909_v58  ;;  %v9892_v58 = vld [vmem:[#allocation69_spill] sm:$0xff] }
 0x79a   : > { %3494 = vst [vmem:[#allocation1 + $0x1] ss:$9 sm:$0xff] %v8248_v50 }
 0x79b   : > { %3495 = vst [vmem:[#allocation1 + $0x2] ss:$9 sm:$0xff] %v8255_v20  ;;  %v5842_v20 = vpack.i.b16 %v8409_v16, %v2911_v36  ;;  %v3615_v36 = vsel %vm1811_vm5, %v9892_v58, %v8478_v14 }
 0x79c   : > { %3496 = vst [vmem:[#allocation1 + $0x3] ss:$9 sm:$0xff] %v9889_v55 }
 0x79e   : > { %v8522_v34 = vpop.permute.xlu1 %3205 }
 0x7a0   : > { %3211 = vrot.lane.b32.xlu1 %v9890_v0, %s6150_s26  ;;  %v3617_v0 = vsel %vm1811_vm5, %v9893_v30, %v3378_v28  ;;  %v6054_v28 = vld [vmem:[%s9422_s5] sm:$0xff] }
 0x7a1   : > { %3387 = vrot.lane.b32.xlu0 %v8369_v38, %s6149_s25  ;;  %v6071_v38 = vld [vmem:[%s9422_s5 + $0x88] sm:$0xff] }
 0x7a2   : > { %4165 = vmatpush.bf16.msrb.mxu2 %v6071_v38 }
 0x7a3   : > { %v3497_v50 = vld [vmem:[#allocation1] sm:$0xff] }
 0x7a4   : > { %3500 = vst [vmem:[#allocation1] ss:$9 sm:$0xff] %v5841_v11 }
 0x7a5   : > { %3502 = vst [vmem:[#allocation1 + $0x1] ss:$9 sm:$0xff] %v5842_v20 }
 0x7a6   : > { %3504 = vst [vmem:[#allocation1 + $0x2] ss:$9 sm:$0xff] %v5843_v3  ;;  %4166 = vmatpush.bf16.msrb.mxu2 %v6070_v1  ;;  %v3445_v63 = vpop.permute.xlu1 %3444  ;;  %v3573_v1 = vsel %vm1811_vm5, %v9895_v29, %v8462_v61 }
 0x7a7   : > { %3506 = vst [vmem:[#allocation1 + $0x3] ss:$9 sm:$0xff] %v2915_v56  ;;  %v9894_v56 = vld [vmem:[#allocation76_spill] sm:$0xff] }
 0x7a8   : > { %v3575_v38 = vsel %vm1811_vm5, %v9894_v56, %v8467_v37  ;;  %v3587_v37 = vsel %vm392_vm0, %v3573_v1, %v8481_v22 }
 0x7a9   : > { %3519 = vrot.lane.b32.xlu0 %v3497_v50, %s6151_s27 }
 0x7ae   : > { %v3507_v15 = vld [vmem:[#allocation1] sm:$0xff] }
 0x7af   : > { %3525 = vst [vmem:[#allocation1] ss:$9 sm:$0xff] %v7884_v24  ;;  %v6066_v24 = vld [vmem:[%s9422_s5 + $0x60] sm:$0xff] }
 0x7b0   : > { %3527 = vst [vmem:[#allocation1 + $0x1] ss:$9 sm:$0xff] %v7888_v49  ;;  %v6057_v49 = vld [vmem:[%s9422_s5 + $0x18] sm:$0xff]  ;;  %4134 = vmatpush.bf16.msrb.mxu1 %v6066_v24 }
 0x7b1   : > { %3521 = vrot.lane.b32.xlu0 %v3507_v15, %s6151_s27  ;;  %3529 = vst [vmem:[#allocation1 + $0x2] ss:$9 sm:$0xff] %v7892_v9  ;;  %v6065_v9 = vld [vmem:[%s9422_s5 + $0x58] sm:$0xff]  ;;  %4107 = vmatpush.bf16.msrb.mxu3 %v6057_v49  ;;  %v6062_v49 = vld [vmem:[%s9422_s5 + $0x40] sm:$0xff] }
 0x7b2   : > { %3531 = vst [vmem:[#allocation1 + $0x3] ss:$9 sm:$0xff] %v8159_v44  ;;  %v8519_v44 = vpop.permute.xlu2 %3118 }
 0x7b4   : > { %4135 = vmatpush.bf16.msrb.mxu1 %v6065_v9 }
 0x7b9   : > { %v8516_v53 = vld [vmem:[#allocation1] sm:$0xff] }
 0x7ba   : > { %3534 = vst [vmem:[#allocation1] ss:$9 sm:$0xff] %v7925_v62  ;;  %v8528_v39 = vpop.permute.xlu2 %3120  ;;  %v8532_v62 = vpop.permute.xlu0 %3381 }
 0x7bb   : > { %3535 = vst [vmem:[#allocation1 + $0x1] ss:$9 sm:$0xff] %v7933_v59 }
 0x7bc   : > { %3536 = vst [vmem:[#allocation1 + $0x2] ss:$9 sm:$0xff] %v8168_v46  ;;  %v8536_v46 = vpop.permute.xlu1 %3446 }
 0x7bd   : > { %3537 = vst [vmem:[#allocation1 + $0x3] ss:$9 sm:$0xff] %v8173_v60 }
 0x7c2   : > { %v3202_v59 = vpop.permute.xlu2 %3201  ;;  %v8541_v60 = vpop.permute.xlu0 %3383 }
 0x7c4   : > { %v3538_v45 = vld [vmem:[#allocation1] sm:$0xff] }
 0x7c5   : > { %3540 = vst [vmem:[#allocation1] ss:$9 sm:$0xff] %v7951_v4  ;;  %v3666_v27 = vrot.slane %v3538_v45, 6 }
 0x7c6   : > { %3541 = vst [vmem:[#allocation1 + $0x1] ss:$9 sm:$0xff] %v7962_v42  ;;  %v8546_v42 = vpop.permute.xlu1 %3448 }
 0x7c7   : > { %3542 = vst [vmem:[#allocation1 + $0x2] ss:$9 sm:$0xff] %v7942_v40 }
 0x7c8   : > { %3543 = vst [vmem:[#allocation1 + $0x3] ss:$9 sm:$0xff] %v8182_v33 }
 0x7ca   : > { %v3267_v4 = vpop.permute.xlu2 %3266  ;;  %v3443_v40 = vpop.permute.xlu0 %3442 }
 0x7cb   : > { %v3629_v20 = vsel %vm392_vm0, %v3615_v36, %v3443_v40  ;;  %v3601_v61 = vsel %vm1848_vm6, %v3587_v37, %v3267_v4  ;;  %v9896_v40 = vld [vmem:[#allocation8_spill] sm:$0xff]  ;;  %v3664_v4 = vrot.slane %v8516_v53, 6 }
 0x7ce   : > { %v8558_v7 = vpop.permute.xlu1 %3450 }
 0x7cf   : > { %v8538_v6 = vld [vmem:[#allocation1] sm:$0xff] }
 0x7d0   : > { %3546 = vst [vmem:[#allocation1] ss:$9 sm:$0xff] %v7983_v5  ;;  %v6056_v5 = vld [vmem:[%s9422_s5 + $0x10] sm:$0xff] }
 0x7d1   : > { %3547 = vst [vmem:[#allocation1 + $0x1] ss:$9 sm:$0xff] %v7989_v21  ;;  %4108 = vmatpush.bf16.msrb.mxu3 %v6056_v5  ;;  %v3619_v5 = vsel %vm1811_vm5, %v9896_v40, %v8525_v10 }
 0x7d2   : > { %3548 = vst [vmem:[#allocation1 + $0x2] ss:$9 sm:$0xff] %v8191_v35  ;;  %v3269_v21 = vpop.permute.xlu2 %3268 }
 0x7d3   : > { %3549 = vst [vmem:[#allocation1 + $0x3] ss:$9 sm:$0xff] %v8195_v17  ;;  %v9891_v17 = vld [vmem:[#allocation40_spill] sm:$0xff] }
 0x7d4   : > { %v2668_v19 = vmax.f32 %v9891_v17, 0.0 }
 0x7da   : > { %v8548_v33 = vld [vmem:[#allocation1] sm:$0xff]  ;;  %v8571_v55 = vpop.permute.xlu2 %3270 }
 0x7db   : > { %3552 = vst [vmem:[#allocation1] ss:$9 sm:$0xff] %v8017_v25  ;;  %v6064_v25 = vld [vmem:[%s9422_s5 + $0x50] sm:$0xff] }
 0x7dc   : > { %3553 = vst [vmem:[#allocation1 + $0x1] ss:$9 sm:$0xff] %v8019_v47  ;;  %4136 = vmatpush.bf16.msrb.mxu1 %v6064_v25 }
 0x7dd   : > { %3554 = vst [vmem:[#allocation1 + $0x2] ss:$9 sm:$0xff] %v8005_v41  ;;  %v6055_v41 = vld [vmem:[%s9422_s5 + $0x8] sm:$0xff] }
 0x7de   : > { %3555 = vst [vmem:[#allocation1 + $0x3] ss:$9 sm:$0xff] %v8204_v43  ;;  %4109 = vmatpush.bf16.msrb.mxu3 %v6055_v41  ;;  %v2679_v43 = vpack.c.bf16 %v2668_v19, %v2668_v19 }
 0x7df   : > { %v3510_v35 = vpop.permute.xlu0 %3509 }
 0x7e0   : > { %v2701_v11 = vrot.slane %v2679_v43, 3  ;;  %4137 = vmatpush.bf16.msrb.mxu1 %v6063_v52 }
 0x7e2   : > { %v2834_v12 = vsel %vm530_vm1, %v2679_v43, %v2701_v11  ;;  %4110 = vmatpush.bf16.msrb.mxu3 %v6054_v28 }
 0x7e3   : > { %v2916_v9 = vunpack.i.l.s16 %v2834_v12 }
 0x7e4   : > { %4138 = vmatpush.bf16.msrb.mxu1 %v6062_v49 }
 0x7e5   : > { %v8566_v47 = vld [vmem:[#allocation1] sm:$0xff] }
 0x7e6   : > { %3558 = vst [vmem:[#allocation1] ss:$9 sm:$0xff] %v8263_v2  ;;  %v3631_v2 = vsel %vm392_vm0, %v3617_v0, %v3445_v63 }
 0x7e7   : > { %3559 = vst [vmem:[#allocation1 + $0x1] ss:$9 sm:$0xff] %v8266_v57  ;;  %v8583_v50 = vpop.permute.xlu0 %3385 }
 0x7e8   : > { %3560 = vst [vmem:[#allocation1 + $0x2] ss:$9 sm:$0xff] %v8361_v13  ;;  %v3643_v13 = vsel %vm1848_vm6, %v3629_v20, %v3510_v35 }
 0x7e9   : > { %3561 = vst [vmem:[#allocation1 + $0x3] ss:$9 sm:$0xff] %v2907_v32  ;;  %v3589_v32 = vsel %vm392_vm0, %v3575_v38, %v3202_v59  ;;  %v3663_v54 = vrot.slane %v3643_v13, 7  ;;  %v3273_v59 = vpop.permute.xlu2 %3272 }
 0x7ea   : > { %v3512_v57 = vpop.permute.xlu1 %3511  ;;  %v3603_v14 = vsel %vm1848_vm6, %v3589_v32, %v3269_v21  ;;  %v3633_v21 = vsel %vm392_vm0, %v3619_v5, %v8536_v46 }
 0x7eb   : > { %v3645_v3 = vsel %vm1848_vm6, %v3631_v2, %v3512_v57  ;;  %v3682_v22 = vsel %vm535_vm2, %v3601_v61, %v3663_v54  ;;  %v3686_v35 = vsel %vm539_vm3, %v3601_v61, %v3663_v54  ;;  %v3678_v17 = vsel %vm530_vm1, %v3601_v61, %v3663_v54 }
 0x7ec   : > { %v3665_v31 = vrot.slane %v3645_v3, 7  ;;  %v3683_v19 = vsel %vm1955_vm9, %v3682_v22, %v3664_v4  ;;  %v3687_v46 = vsel %vm1960_vm11, %v3686_v35, %v3664_v4  ;;  %v3680_v30 = vsel %vm1950_vm10, %v3678_v17, %v3664_v4  ;;  %v9897_v3 = vld [vmem:[#allocation68_spill] sm:$0xff] }
 0x7ed   : > { %v3685_v0 = vrot.slane %v3683_v19, 1  ;;  %v3577_v56 = vsel %vm1811_vm5, %v9897_v3, %v8500_v8  ;;  %v3689_v38 = vrot.slane %v3687_v46, 2 }
 0x7ee   : > { %v3699_v15 = vsel %vm535_vm2, %v3603_v14, %v3665_v31  ;;  %v3703_v24 = vsel %vm539_vm3, %v3603_v14, %v3665_v31  ;;  %v3695_v45 = vsel %vm530_vm1, %v3603_v14, %v3665_v31  ;;  %v3707_v43 = vsel %vm543_vm4, %v3603_v14, %v3665_v31 }
 0x7ef   : > { %v3700_v63 = vsel %vm1955_vm9, %v3699_v15, %v3666_v27  ;;  %v3697_v10 = vsel %vm1950_vm10, %v3695_v45, %v3666_v27  ;;  %v3708_v2 = vsel %vm1965_vm12, %v3707_v43, %v3666_v27  ;;  %v3591_v52 = vsel %vm392_vm0, %v3577_v56, %v8504_v18  ;;  %v9898_v18 = vld [vmem:[#allocation9_spill] sm:$0xff] }
 0x7f0   : > { %v8601_v23 = vld [vmem:[#allocation1] sm:$0xff]  ;;  %v3702_v25 = vrot.slane %v3700_v63, 1  ;;  %v3804_v11 = vunpack.i.h.s16 %v3697_v10  ;;  %v3605_v14 = vsel %vm1848_vm6, %v3591_v52, %v8571_v55  ;;  %v9899_v55 = vld [vmem:[#allocation78_spill] sm:$0xff] }
 0x7f1   : > { %3564 = vst [vmem:[#allocation1] ss:$9 sm:$0xff] %v8407_v51  ;;  %v3690_v51 = vsel %vm543_vm4, %v3601_v61, %v3663_v54  ;;  %v3710_v54 = vrot.slane %v3708_v2, 3  ;;  %v8646_v1 = vpop.permute.xlu2 %3274  ;;  %v3579_v28 = vsel %vm1811_vm5, %v9899_v55, %v8519_v44  ;;  %v9901_v2 = vld [vmem:[#allocation11_spill] sm:$0xff] }
 0x7f2   : > { %3565 = vst [vmem:[#allocation1 + $0x1] ss:$9 sm:$0xff] %v8409_v16  ;;  %v3704_v16 = vsel %vm1960_vm11, %v3703_v24, %v3666_v27  ;;  %v3691_v53 = vsel %vm1965_vm12, %v3690_v51, %v3664_v4  ;;  %v8633_v36 = vpop.permute.xlu1 %3207  ;;  %v3806_v57 = vunpack.i.h.s16 %v3702_v25  ;;  %v5845_v29 = vpack.i.b16 %v3702_v25, %v3804_v11 }
 0x7f3   : > { %3567 = vst [vmem:[#allocation1 + $0x2] ss:$9 sm:$0xff] %v8404_v26  ;;  %v3706_v41 = vrot.slane %v3704_v16, 2  ;;  %v3693_v20 = vrot.slane %v3691_v53, 3  ;;  %v3668_v27 = vrot.slane %v8538_v6, 6  ;;  %v3621_v24 = vsel %vm1811_vm5, %v9898_v18, %v8532_v62 }
 0x7f4   : > { %3569 = vst [vmem:[#allocation1 + $0x3] ss:$9 sm:$0xff] %v2916_v9  ;;  %v3635_v49 = vsel %vm392_vm0, %v3621_v24, %v8546_v42  ;;  %v3593_v6 = vsel %vm392_vm0, %v3579_v28, %v8522_v34  ;;  %v3670_v4 = vrot.slane %v8548_v33, 6 }
 0x7f5   : > { %v3514_v26 = vpop.permute.xlu0 %3513  ;;  %v3808_v31 = vunpack.i.h.s16 %v3706_v41  ;;  %v5844_v12 = vpack.i.b16 %v3697_v10, %v3693_v20  ;;  %v5846_v15 = vpack.i.b16 %v3706_v41, %v3806_v57  ;;  %v3607_v63 = vsel %vm1848_vm6, %v3593_v6, %v3273_v59  ;;  %v9902_v6 = vld [vmem:[#allocation6_spill] sm:$0xff] }
 0x7f6   : > { %v3647_v58 = vsel %vm1848_vm6, %v3633_v21, %v3514_v26  ;;  %v3623_v57 = vsel %vm1811_vm5, %v9901_v2, %v8541_v60 }
 0x7f7   : > { %v3667_v13 = vrot.slane %v3647_v58, 7  ;;  %v5847_v37 = vpack.i.b16 %v3710_v54, %v3808_v31 }
 0x7f9   : > { %v3712_v8 = vsel %vm530_vm1, %v3605_v14, %v3667_v13  ;;  %v3724_v61 = vsel %vm543_vm4, %v3605_v14, %v3667_v13  ;;  %v3716_v42 = vsel %vm535_vm2, %v3605_v14, %v3667_v13  ;;  %v3720_v40 = vsel %vm539_vm3, %v3605_v14, %v3667_v13  ;;  %v3123_v33 = vpop.permute.xlu2 %3122 }
 0x7fa   : > { %v3714_v9 = vsel %vm1950_vm10, %v3712_v8, %v3668_v27  ;;  %v8662_v45 = vpop.permute.xlu1 %3452  ;;  %v3725_v5 = vsel %vm1965_vm12, %v3724_v61, %v3668_v27  ;;  %v3717_v19 = vsel %vm1955_vm9, %v3716_v42, %v3668_v27  ;;  %v3721_v53 = vsel %vm1960_vm11, %v3720_v40, %v3668_v27 }
 0x7fb   : > { %v8642_v32 = vld [vmem:[#allocation1] sm:$0xff]  ;;  %v3727_v41 = vrot.slane %v3725_v5, 3  ;;  %v3719_v11 = vrot.slane %v3717_v19, 1  ;;  %v3723_v13 = vrot.slane %v3721_v53, 2 }
 0x7fc   : > { %3911 = vst [vmem:[#allocation1] ss:$9 sm:$0xff] %v3680_v30  ;;  %v9900_v30 = vld [vmem:[#allocation12_spill] sm:$0xff] }
 0x7fd   : > { %3914 = vst [vmem:[#allocation1 + $0x1] ss:$9 sm:$0xff] %v3685_v0  ;;  %v3581_v0 = vsel %vm1811_vm5, %v9900_v30, %v8528_v39 }
 0x7fe   : > { %3917 = vst [vmem:[#allocation1 + $0x2] ss:$9 sm:$0xff] %v3689_v38  ;;  %v3595_v14 = vsel %vm392_vm0, %v3581_v0, %v8633_v36  ;;  %v3672_v36 = vrot.slane %v8566_v47, 6 }
 0x7ff   : > { %3920 = vst [vmem:[#allocation1 + $0x3] ss:$9 sm:$0xff] %v5844_v12  ;;  %v3637_v12 = vsel %vm392_vm0, %v3623_v57, %v8558_v7  ;;  %v3609_v7 = vsel %vm1848_vm6, %v3595_v14, %v8646_v1 }
 0x800   : > { %3923 = vst [vmem:[#allocation1 + $0x4] ss:$9 sm:$0xff] %v5845_v29  ;;  %v3516_v22 = vpop.permute.xlu0 %3515 }
 0x801   : > { %3926 = vst [vmem:[#allocation1 + $0x5] ss:$9 sm:$0xff] %v5846_v15  ;;  %v3649_v62 = vsel %vm1848_vm6, %v3635_v49, %v3516_v22  ;;  %v3277_v55 = vpop.permute.xlu2 %3276 }
 0x802   : > { %3929 = vst [vmem:[#allocation1 + $0x6] ss:$9 sm:$0xff] %v5847_v37  ;;  %v3669_v44 = vrot.slane %v3649_v62, 7  ;;  %v3210_v54 = vpop.permute.xlu1 %3209  ;;  %v3583_v62 = vsel %vm1811_vm5, %v9902_v6, %v3123_v33 }
 0x803   : > { %3932 = vst [vmem:[#allocation1 + $0x7] ss:$9 sm:$0xff] %v3714_v9 }
 0x804   : > { %v3729_v34 = vsel %vm530_vm1, %v3607_v63, %v3669_v44  ;;  %v3733_v51 = vsel %vm535_vm2, %v3607_v63, %v3669_v44  ;;  %v3737_v16 = vsel %vm539_vm3, %v3607_v63, %v3669_v44  ;;  %v3741_v21 = vsel %vm543_vm4, %v3607_v63, %v3669_v44  ;;  %v9903_v63 = vld [vmem:[#allocation60_spill] sm:$0xff] }
 0x805   : > { %v3731_v59 = vsel %vm1950_vm10, %v3729_v34, %v3670_v4  ;;  %v3734_v35 = vsel %vm1955_vm9, %v3733_v51, %v3670_v4  ;;  %v3738_v17 = vsel %vm1960_vm11, %v3737_v16, %v3670_v4  ;;  %v3742_v43 = vsel %vm1965_vm12, %v3741_v21, %v3670_v4 }
 0x806   : > { %v3736_v10 = vrot.slane %v3734_v35, 1  ;;  %v3740_v25 = vrot.slane %v3738_v17, 2  ;;  %v3818_v26 = vunpack.i.h.s16 %v3731_v59  ;;  %v5848_v20 = vpack.i.b16 %v3731_v59, %v3727_v41 }
 0x807   : > { %v3744_v31 = vrot.slane %v3742_v43, 3  ;;  %v3625_v44 = vsel %vm1811_vm5, %v9903_v63, %v8583_v50  ;;  %v3597_v51 = vsel %vm392_vm0, %v3583_v62, %v3210_v54  ;;  %v8745_v62 = vld [vmem:[%s9423_s6] ss:$0 sm:$0xff] }
 0x808   : > { %v3820_v58 = vunpack.i.h.s16 %v3736_v10  ;;  %v3822_v46 = vunpack.i.h.s16 %v3740_v25  ;;  %v5849_v52 = vpack.i.b16 %v3736_v10, %v3818_v26  ;;  %v3639_v34 = vsel %vm392_vm0, %v3625_v44, %v8662_v45 }
 0x809   : > { %v3125_v4 = vpop.permute.xlu2 %3124  ;;  %v3611_v35 = vsel %vm1848_vm6, %v3597_v51, %v3277_v55  ;;  %v3674_v45 = vrot.slane %v8601_v23, 6 }
 0x80a   : > { %v3933_v3 = vld [vmem:[#allocation1] sm:$0xff]  ;;  %v3934_v56 = vld [vmem:[#allocation1 + $0x9] sm:$0xff]  ;;  %v3935_v38 = vld [vmem:[#allocation1 + $0x12] sm:$0xff]  ;;  %v5850_v39 = vpack.i.b16 %v3740_v25, %v3820_v58  ;;  %v5851_v60 = vpack.i.b16 %v3744_v31, %v3822_v46  ;;  %v3455_v9 = vpop.permute.xlu1 %3454 }
 0x80b   : > { %3937 = vst [vmem:[#allocation1] ss:$9 sm:$0xff] %v3719_v11  ;;  %4111 = vmatmul.bf16.vlgmr.msrb.gmra.mxu3 %v3933_v3  ;;  %4139 = vmatmul.bf16.vlgmr.msrb.gmra.mxu1 %v3934_v56  ;;  %v3518_v29 = vpop.permute.xlu0 %3517 }
 0x80c   : > { %3939 = vst [vmem:[#allocation1 + $0x1] ss:$9 sm:$0xff] %v3723_v13  ;;  %5928 = vmatmul.msk.bf16.vlgmr.msrb.gmra.mxu2 %vm1811_vm5, %v3935_v38  ;;  %v3651_v15 = vsel %vm1848_vm6, %v3637_v12, %v3518_v29 }
 0x80d   : > { %3941 = vst [vmem:[#allocation1 + $0x2] ss:$9 sm:$0xff] %v5848_v20  ;;  %v3671_v8 = vrot.slane %v3651_v15, 7 }
 0x80e   : > { %3943 = vst [vmem:[#allocation1 + $0x3] ss:$9 sm:$0xff] %v5849_v52 }
 0x80f   : > { %3945 = vst [vmem:[#allocation1 + $0x4] ss:$9 sm:$0xff] %v5850_v39  ;;  %v3746_v37 = vsel %vm530_vm1, %v3609_v7, %v3671_v8  ;;  %v3750_v27 = vsel %vm535_vm2, %v3609_v7, %v3671_v8  ;;  %v3754_v49 = vsel %vm539_vm3, %v3609_v7, %v3671_v8  ;;  %v3758_v61 = vsel %vm543_vm4, %v3609_v7, %v3671_v8 }
 0x810   : > { %3947 = vst [vmem:[#allocation1 + $0x5] ss:$9 sm:$0xff] %v5851_v60  ;;  %v3748_v18 = vsel %vm1950_vm10, %v3746_v37, %v3672_v36  ;;  %v3751_v24 = vsel %vm1955_vm9, %v3750_v27, %v3672_v36  ;;  %v3755_v47 = vsel %vm1960_vm11, %v3754_v49, %v3672_v36  ;;  %v3759_v16 = vsel %vm1965_vm12, %v3758_v61, %v3672_v36 }
 0x811   : > { %v3753_v28 = vrot.slane %v3751_v24, 1  ;;  %3949 = vst [vmem:[#allocation1 + $0x6] ss:$9 sm:$0xff] %v3748_v18  ;;  %v3757_v22 = vrot.slane %v3755_v47, 2  ;;  %v3761_v17 = vrot.slane %v3759_v16, 3  ;;  %v3279_v12 = vpop.permute.xlu2 %3278  ;;  %v3676_v60 = vrot.slane %v8642_v32, 6 }
 0x812   : > { %v3212_v10 = vpop.permute.xlu1 %3211 }
 0x813   : > { %3951 = vst [vmem:[#allocation1 + $0x7] ss:$9 sm:$0xff] %v3753_v28  ;;  %v3388_v1 = vpop.permute.xlu0 %3387 }
 0x814   : > { %v3627_v19 = vsel %vm1811_vm5, %v8325_v48, %v3388_v1  ;;  %v9904_v48 = vld [vmem:[#allocation10_spill] sm:$0xff] }
 0x815   : > { %v3585_v23 = vsel %vm1811_vm5, %v9904_v48, %v3125_v4  ;;  %v3641_v57 = vsel %vm392_vm0, %v3627_v19, %v3455_v9 }
 0x816   : > { %v3599_v20 = vsel %vm392_vm0, %v3585_v23, %v3212_v10 }
 0x817   : > { %v3613_v29 = vsel %vm1848_vm6, %v3599_v20, %v3279_v12 }
 0x81a   : > { %v3952_v42 = vld [vmem:[#allocation1] sm:$0xff]  ;;  %v3953_v40 = vld [vmem:[#allocation1 + $0x9] sm:$0xff]  ;;  %v3954_v5 = vld [vmem:[#allocation1 + $0x12] sm:$0xff] }
 0x81b   : > { %v3520_v21 = vpop.permute.xlu0 %3519  ;;  %4116 = vmatmul.bf16.gmra.mxu3 %v3952_v42  ;;  %4144 = vmatmul.bf16.gmra.mxu1 %v3953_v40  ;;  %3956 = vst [vmem:[#allocation1] ss:$9 sm:$0xff] %v3757_v22 }
 0x81c   : > { %v3653_v59 = vsel %vm1848_vm6, %v3639_v34, %v3520_v21  ;;  %5929 = vmatmul.msk.bf16.gmra.mxu2 %vm1811_vm5, %v3954_v5 }
 0x81d   : > { %v3673_v50 = vrot.slane %v3653_v59, 7 }
 0x81f   : > { %v3763_v25 = vsel %vm530_vm1, %v3611_v35, %v3673_v50  ;;  %v3767_v26 = vsel %vm535_vm2, %v3611_v35, %v3673_v50  ;;  %v3771_v33 = vsel %vm539_vm3, %v3611_v35, %v3673_v50  ;;  %v3775_v53 = vsel %vm543_vm4, %v3611_v35, %v3673_v50 }
 0x820   : > { %v3765_v41 = vsel %vm1950_vm10, %v3763_v25, %v3674_v45  ;;  %v3768_v43 = vsel %vm1955_vm9, %v3767_v26, %v3674_v45  ;;  %v3772_v58 = vsel %vm1960_vm11, %v3771_v33, %v3674_v45  ;;  %v3776_v46 = vsel %vm1965_vm12, %v3775_v53, %v3674_v45 }
 0x821   : > { %v3770_v30 = vrot.slane %v3768_v43, 1  ;;  %v3774_v0 = vrot.slane %v3772_v58, 2  ;;  %v3832_v11 = vunpack.i.h.s16 %v3765_v41  ;;  %v5852_v2 = vpack.i.b16 %v3765_v41, %v3761_v17 }
 0x822   : > { %v3778_v13 = vrot.slane %v3776_v46, 3 }
 0x823   : > { %v3834_v3 = vunpack.i.h.s16 %v3770_v30  ;;  %v3836_v56 = vunpack.i.h.s16 %v3774_v0  ;;  %v5853_v38 = vpack.i.b16 %v3770_v30, %v3832_v11  ;;  %v3522_v31 = vpop.permute.xlu0 %3521  ;;  %3958 = vst [vmem:[#allocation1 + $0x1] ss:$9 sm:$0xff] %v5852_v2 }
 0x824   : > { %v3655_v52 = vsel %vm1848_vm6, %v3641_v57, %v3522_v31 }
 0x825   : > { %v5854_v14 = vpack.i.b16 %v3774_v0, %v3834_v3  ;;  %v5855_v39 = vpack.i.b16 %v3778_v13, %v3836_v56  ;;  %3960 = vst [vmem:[#allocation1 + $0x2] ss:$9 sm:$0xff] %v5853_v38  ;;  %v3675_v54 = vrot.slane %v3655_v52, 7 }
 0x827   : > { %3962 = vst [vmem:[#allocation1 + $0x3] ss:$9 sm:$0xff] %v5854_v14  ;;  %v3780_v15 = vsel %vm530_vm1, %v3613_v29, %v3675_v54  ;;  %v3784_v8 = vsel %vm535_vm2, %v3613_v29, %v3675_v54  ;;  %v3788_v7 = vsel %vm539_vm3, %v3613_v29, %v3675_v54  ;;  %v3792_v18 = vsel %vm543_vm4, %v3613_v29, %v3675_v54 }
 0x828   : > { %3964 = vst [vmem:[#allocation1 + $0x4] ss:$9 sm:$0xff] %v5855_v39  ;;  %v3782_v36 = vsel %vm1950_vm10, %v3780_v15, %v3676_v60  ;;  %v3785_v37 = vsel %vm1955_vm9, %v3784_v8, %v3676_v60  ;;  %v3789_v27 = vsel %vm1960_vm11, %v3788_v7, %v3676_v60  ;;  %v3793_v32 = vsel %vm1965_vm12, %v3792_v18, %v3676_v60 }
 0x829   : > { %v3787_v24 = vrot.slane %v3785_v37, 1  ;;  %v3791_v55 = vrot.slane %v3789_v27, 2  ;;  %3966 = vst [vmem:[#allocation1 + $0x5] ss:$9 sm:$0xff] %v3782_v36  ;;  %v3795_v28 = vrot.slane %v3793_v32, 3  ;;  %vm5512_vm12 = vcmask 998400  }
 0x82b   : > { %3968 = vst [vmem:[#allocation1 + $0x6] ss:$9 sm:$0xff] %v3787_v24  ;;  %v3844_v49 = vunpack.i.l.s16 %v3795_v28 }
 0x82c   : > { %3970 = vst [vmem:[#allocation1 + $0x7] ss:$9 sm:$0xff] %v3791_v55 }
 0x833   : > { %v3971_v1 = vld [vmem:[#allocation1] sm:$0xff]  ;;  %v3972_v9 = vld [vmem:[#allocation1 + $0x9] sm:$0xff]  ;;  %v3973_v47 = vld [vmem:[#allocation1 + $0x12] sm:$0xff] }
 0x834   : > { %4121 = vmatmul.bf16.gmra.mxu3 %v3971_v1  ;;  %4149 = vmatmul.bf16.gmra.mxu1 %v3972_v9  ;;  %3975 = vst [vmem:[#allocation1] ss:$9 sm:$0xff] %v3844_v49 }
 0x835   : > { %5930 = vmatmul.msk.bf16.gmra.mxu2 %vm1811_vm5, %v3973_v47 }
 0x83b   : > { %v3976_v61 = vld [vmem:[#allocation1] sm:$0xff]  ;;  %v3977_v22 = vld [vmem:[#allocation1 + $0x9] sm:$0xff]  ;;  %v3978_v6 = vld [vmem:[#allocation1 + $0x12] sm:$0xff] }
 0x844   : > { %4126 = vmatmul.bf16.gmra.mxu3 %v3976_v61  ;;  %4154 = vmatmul.bf16.gmra.mxu1 %v3977_v22 }
 0x845   : > { %5931 = vmatmul.msk.bf16.gmra.mxu2 %vm1811_vm5, %v3978_v6 }
 0x888   : > { %v4140_v63 = vpop.f32.mrf.mxu1 }
 0x88e   : > { %v4112_v44 = vpop.f32.mrf.mxu3 }
 0x88f   : > { %v4113_v42 = vadd.f32 %v8745_v62, %v4112_v44  ;;  %v4168_v40 = vpop.f32.mrf.mxu2 }
 0x890   : > { %v4142_v51 = vpop.f32.mrf.mxu1 }
 0x891   : > { %v4141_v5 = vadd.f32 %v4140_v63, %v4113_v42 }
 0x893   : > { %v4169_v4 = vadd.f32 %v4168_v40, %v4141_v5 }
 0x895   : > { %v4187_v34 = vmax.f32 %v4169_v4, 0.0 }
 0x896   : > { %v4114_v16 = vpop.f32.mrf.mxu3 }
 0x897   : > { %v4194_v21 = vpack.c.bf16 %v4187_v34, %v4187_v34  ;;  %v4115_v59 = vadd.f32 %v8745_v62, %v4114_v16  ;;  %v4170_v50 = vpop.f32.mrf.mxu2 }
 0x898   : > { %v4145_v43 = vpop.f32.mrf.mxu1 }
 0x899   : > { %v4208_v35 = vrot.slane %v4194_v21, 3  ;;  %v4143_v17 = vadd.f32 %v4142_v51, %v4115_v59 }
 0x89b   : > { %v8750_v19 = vsel %vm530_vm1, %v4194_v21, %v4208_v35  ;;  %v4219_v45 = vsel %vm535_vm2, %v4194_v21, %v4208_v35  ;;  %v4222_v10 = vsel %vm539_vm3, %v4194_v21, %v4208_v35  ;;  %v4171_v33 = vadd.f32 %v4170_v50, %v4143_v17 }
 0x89c   : > { %v8754_v25 = vrot.slane %v4219_v45, 1  ;;  %v8756_v26 = vrot.slane %v4222_v10, 2  ;;  %4362 = vst [vmem:[#allocation1] ss:$9 sm:$0xff] %v8750_v19  ;;  %v8760_v53 = vsel %vm543_vm4, %v4194_v21, %v4208_v35 }
 0x89d   : > { %v4188_v46 = vmax.f32 %v4171_v33, 0.0  ;;  %v4227_v30 = vrot.slane %v8760_v53, 3 }
 0x89e   : > { %v4301_v41 = vunpack.i.l.s16 %v8756_v26  ;;  %4365 = vst [vmem:[#allocation1 + $0x1] ss:$9 sm:$0xff] %v8754_v25  ;;  %v4117_v58 = vpop.f32.mrf.mxu3 }
 0x89f   : > { %v4118_v48 = vadd.f32 %v8745_v62, %v4117_v58  ;;  %v4173_v23 = vpop.f32.mrf.mxu2  ;;  %v8766_v0 = vpack.c.bf16 %v4188_v46, %v4188_v46  ;;  %v4304_v57 = vunpack.i.h.s16 %v4227_v30 }
 0x8a0   : > { %4368 = vst [vmem:[#allocation1 + $0x2] ss:$9 sm:$0xff] %v4301_v41  ;;  %v4147_v29 = vpop.f32.mrf.mxu1 }
 0x8a1   : > { %v4146_v11 = vadd.f32 %v4145_v43, %v4118_v48  ;;  %v8769_v20 = vrot.slane %v8766_v0, 3 }
 0x8a3   : > { %v4174_v2 = vadd.f32 %v4173_v23, %v4146_v11  ;;  %v8776_v13 = vsel %vm530_vm1, %v8766_v0, %v8769_v20  ;;  %v4232_v3 = vsel %vm535_vm2, %v8766_v0, %v8769_v20  ;;  %v4238_v18 = vsel %vm543_vm4, %v8766_v0, %v8769_v20 }
 0x8a4   : > { %v8781_v56 = vrot.slane %v4232_v3, 1  ;;  %v4306_v38 = vunpack.i.h.s16 %v8776_v13  ;;  %v8787_v12 = vpack.i.b16 %v8776_v13, %v4304_v57  ;;  %v8808_v28 = vrot.slane %v4238_v18, 3 }
 0x8a5   : > { %v4189_v14 = vmax.f32 %v4174_v2, 0.0 }
 0x8a6   : > { %v4119_v31 = vpop.f32.mrf.mxu3  ;;  %v8791_v54 = vunpack.i.h.s16 %v8781_v56  ;;  %v8794_v60 = vpack.i.b16 %v8781_v56, %v4306_v38 }
 0x8a7   : > { %v8784_v52 = vld [vmem:[#allocation1] sm:$0xff]  ;;  %v4120_v39 = vadd.f32 %v8745_v62, %v4119_v31  ;;  %v4196_v15 = vpack.c.bf16 %v4189_v14, %v4189_v14  ;;  %v4175_v7 = vpop.f32.mrf.mxu2 }
 0x8a8   : > { %4371 = vst [vmem:[#allocation1] ss:$9 sm:$0xff] %v8787_v12 }
 0x8a9   : > { %v4148_v8 = vadd.f32 %v4147_v29, %v4120_v39  ;;  %4375 = vst [vmem:[#allocation1 + $0x2] ss:$9 sm:$0xff] %v8791_v54  ;;  %v4210_v36 = vrot.slane %v4196_v15, 3 }
 0x8aa   : > { %4373 = vst [vmem:[#allocation1 + $0x1] ss:$9 sm:$0xff] %v8794_v60 }
 0x8ab   : > { %v4176_v37 = vadd.f32 %v4175_v7, %v4148_v8  ;;  %v4245_v27 = vsel %vm535_vm2, %v4196_v15, %v4210_v36  ;;  %v8806_v32 = vsel %vm539_vm3, %v4196_v15, %v4210_v36  ;;  %v8819_v61 = vsel %vm530_vm1, %v4196_v15, %v4210_v36 }
 0x8ac   : > { %v8803_v24 = vrot.slane %v4245_v27, 1  ;;  %v4250_v22 = vrot.slane %v8806_v32, 2  ;;  %v4251_v6 = vsel %vm543_vm4, %v4196_v15, %v4210_v36 }
 0x8ad   : > { %v4190_v55 = vmax.f32 %v4176_v37, 0.0  ;;  %v8828_v44 = vrot.slane %v4251_v6, 3 }
 0x8ae   : > { %v8811_v49 = vunpack.i.l.s16 %v8803_v24  ;;  %v4318_v42 = vunpack.i.h.s16 %v4250_v22 }
 0x8af   : > { %v8813_v1 = vpack.c.bf16 %v4190_v55, %v4190_v55  ;;  %v4320_v16 = vunpack.i.h.s16 %v8828_v44 }
 0x8b0   : > { %v8840_v21 = vpack.i.b16 %v8828_v44, %v4318_v42 }
 0x8b1   : > { %v4150_v9 = vpop.f32.mrf.mxu1  ;;  %v8815_v47 = vld [vmem:[#allocation1] sm:$0xff]  ;;  %v8826_v63 = vrot.slane %v8813_v1, 3 }
 0x8b2   : > { %4378 = vst [vmem:[#allocation1] ss:$9 sm:$0xff] %v8808_v28 }
 0x8b3   : > { %4380 = vst [vmem:[#allocation1 + $0x1] ss:$9 sm:$0xff] %v8819_v61  ;;  %v8835_v4 = vsel %vm530_vm1, %v8813_v1, %v8826_v63  ;;  %v4261_v58 = vsel %vm539_vm3, %v8813_v1, %v8826_v63  ;;  %v4264_v11 = vsel %vm543_vm4, %v8813_v1, %v8826_v63 }
 0x8b4   : > { %4382 = vst [vmem:[#allocation1 + $0x2] ss:$9 sm:$0xff] %v8811_v49  ;;  %v8845_v35 = vpack.i.b16 %v8835_v4, %v4320_v16  ;;  %v8849_v17 = vunpack.i.h.s16 %v8835_v4  ;;  %v8860_v57 = vrot.slane %v4261_v58, 2  ;;  %v8874_v29 = vrot.slane %v4264_v11, 3 }
 0x8b7   : > { %v4122_v40 = vpop.f32.mrf.mxu3 }
 0x8b8   : > { %v4178_v5 = vpop.f32.mrf.mxu2  ;;  %v4123_v34 = vadd.f32 %v8745_v62, %v4122_v40  ;;  %v4300_v40 = vunpack.i.h.s16 %v8754_v25 }
 0x8b9   : > { %v4152_v51 = vpop.f32.mrf.mxu1 }
 0x8ba   : > { %v4151_v59 = vadd.f32 %v4150_v9, %v4123_v34  ;;  %v4298_v9 = vunpack.i.h.s16 %v8750_v19 }
 0x8bb   : > { %v8842_v50 = vld [vmem:[#allocation1] sm:$0xff] }
 0x8bc   : > { %4385 = vst [vmem:[#allocation1] ss:$9 sm:$0xff] %v8840_v21  ;;  %v4179_v45 = vadd.f32 %v4178_v5, %v4151_v59  ;;  %v5936_v34 = vpack.i.b16 %v8754_v25, %v4298_v9  ;;  %v5937_v59 = vpack.i.b16 %v8756_v26, %v4300_v40 }
 0x8bd   : > { %4387 = vst [vmem:[#allocation1 + $0x1] ss:$9 sm:$0xff] %v8845_v35 }
 0x8be   : > { %4389 = vst [vmem:[#allocation1 + $0x2] ss:$9 sm:$0xff] %v8849_v17  ;;  %v4191_v10 = vmax.f32 %v4179_v45, 0.0 }
 0x8bf   : > { %v4124_v33 = vpop.f32.mrf.mxu3 }
 0x8c0   : > { %v4125_v41 = vadd.f32 %v8745_v62, %v4124_v33  ;;  %v4180_v43 = vpop.f32.mrf.mxu2  ;;  %v4198_v46 = vpack.c.bf16 %v4191_v10, %v4191_v10  ;;  %v4302_v33 = vunpack.i.h.s16 %v8756_v26 }
 0x8c1   : > { %v4155_v48 = vpop.f32.mrf.mxu1 }
 0x8c2   : > { %v4153_v23 = vadd.f32 %v4152_v51, %v4125_v41  ;;  %v4212_v2 = vrot.slane %v4198_v46, 3  ;;  %v4235_v41 = vsel %vm539_vm3, %v8766_v0, %v8769_v20 }
 0x8c4   : > { %v4181_v3 = vadd.f32 %v4180_v43, %v4153_v23  ;;  %v8863_v38 = vsel %vm530_vm1, %v4198_v46, %v4212_v2  ;;  %v8866_v31 = vsel %vm535_vm2, %v4198_v46, %v4212_v2  ;;  %v8869_v14 = vsel %vm539_vm3, %v4198_v46, %v4212_v2 }
 0x8c5   : > { %v8872_v39 = vsel %vm543_vm4, %v4198_v46, %v4212_v2  ;;  %v8877_v15 = vunpack.i.l.s16 %v8863_v38  ;;  %v8879_v8 = vld [vmem:[#allocation1] sm:$0xff]  ;;  %v8917_v43 = vrot.slane %v4235_v41, 2  ;;  %v4312_v23 = vunpack.i.h.s16 %v8808_v28 }
 0x8c6   : > { %v4192_v7 = vmax.f32 %v4181_v3, 0.0  ;;  %4392 = vst [vmem:[#allocation1] ss:$9 sm:$0xff] %v8860_v57  ;;  %v8934_v2 = vunpack.i.h.s16 %v8803_v24  ;;  %v4258_v3 = vsel %vm535_vm2, %v8813_v1, %v8826_v63  ;;  %v4273_v32 = vrot.slane %v8866_v31, 1 }
 0x8c7   : > { %v4127_v36 = vpop.f32.mrf.mxu3  ;;  %4394 = vst [vmem:[#allocation1 + $0x1] ss:$9 sm:$0xff] %v8874_v29  ;;  %v4309_v46 = vunpack.i.l.s16 %v8917_v43  ;;  %v8928_v0 = vpack.i.b16 %v8819_v61, %v4312_v23 }
 0x8c8   : > { %v4183_v37 = vpop.f32.mrf.mxu2  ;;  %v8883_v27 = vpack.c.bf16 %v4192_v7, %v4192_v7  ;;  %v4128_v18 = vadd.f32 %v8745_v62, %v4127_v36  ;;  %4396 = vst [vmem:[#allocation1 + $0x2] ss:$9 sm:$0xff] %v8877_v15  ;;  %v4260_v7 = vrot.slane %v4258_v3, 1  ;;  %v9000_v41 = vunpack.i.l.s16 %v4273_v32 }
 0x8c9   : > { %v4157_v55 = vpop.f32.mrf.mxu1  ;;  %v4332_v23 = vunpack.i.h.s16 %v4273_v32  ;;  %v9027_v3 = vrot.slane %v8872_v39, 3 }
 0x8ca   : > { %v8889_v6 = vrot.slane %v8883_v27, 3  ;;  %v4156_v42 = vadd.f32 %v4155_v48, %v4128_v18  ;;  %v4314_v48 = vunpack.i.h.s16 %v8819_v61  ;;  %v4326_v18 = vunpack.i.h.s16 %v8860_v57 }
 0x8cb   : > { %v4328_v55 = vunpack.i.h.s16 %v8874_v29  ;;  %v8989_v53 = vpack.i.b16 %v4260_v7, %v8849_v17 }
 0x8cc   : > { %v8895_v5 = vsel %vm535_vm2, %v8883_v27, %v8889_v6  ;;  %v8900_v62 = vsel %vm539_vm3, %v8883_v27, %v8889_v6  ;;  %v8905_v19 = vsel %vm543_vm4, %v8883_v27, %v8889_v6  ;;  %v8908_v51 = vadd.f32 %v4183_v37, %v4156_v42 }
 0x8cd   : > { %v8931_v20 = vpack.i.b16 %v8803_v24, %v4314_v48  ;;  %v8943_v37 = vunpack.i.l.s16 %v4260_v7  ;;  %v8952_v9 = vpack.i.b16 %v8874_v29, %v4326_v18  ;;  %v8955_v1 = vpack.i.b16 %v8863_v38, %v4328_v55 }
 0x8ce   : > { %v8958_v42 = vunpack.i.h.s16 %v8863_v38  ;;  %vm5502_vm4 = vcmask 1022976  }
 0x8cf   : > { %v4129_v16 = vpop.f32.mrf.mxu3  ;;  %v8911_v10 = vld [vmem:[#allocation1] sm:$0xff] }
 0x8d0   : > { %v4185_v45 = vpop.f32.mrf.mxu2  ;;  %4414 = vst [vmem:[#allocation1] ss:$9 sm:$0xff] %v5936_v34  ;;  %v4303_v34 = vunpack.i.l.s16 %v4227_v30  ;;  %v8972_v16 = vpack.i.b16 %v8917_v43, %v8791_v54 }
 0x8d1   : > { %4417 = vst [vmem:[#allocation1 + $0x1] ss:$9 sm:$0xff] %v5937_v59  ;;  %v4310_v45 = vunpack.i.h.s16 %v8917_v43 }
 0x8d2   : > { %4420 = vst [vmem:[#allocation1 + $0x2] ss:$9 sm:$0xff] %v4302_v33  ;;  %v8991_v33 = vunpack.i.h.s16 %v4260_v7 }
 0x8d9   : > { %v4421_v58 = vld [vmem:[#allocation1] sm:$0xff] }
 0x8da   : > { %4455 = vrot.lane.b32.xlu0 %v4421_v58, %s6149_s25  ;;  %4424 = vst [vmem:[#allocation1] ss:$9 sm:$0xff] %v8776_v13 }
 0x8db   : > { %4426 = vst [vmem:[#allocation1 + $0x1] ss:$9 sm:$0xff] %v8781_v56 }
 0x8dc   : > { %4428 = vst [vmem:[#allocation1 + $0x2] ss:$9 sm:$0xff] %v4309_v46 }
 0x8e3   : > { %v4429_v11 = vld [vmem:[#allocation1] sm:$0xff] }
 0x8e4   : > { %4457 = vrot.lane.b32.xlu2 %v4429_v11, %s6149_s25  ;;  %4432 = vst [vmem:[#allocation1] ss:$9 sm:$0xff] %v8928_v0 }
 0x8e5   : > { %4434 = vst [vmem:[#allocation1 + $0x1] ss:$9 sm:$0xff] %v8931_v20 }
 0x8e6   : > { %4436 = vst [vmem:[#allocation1 + $0x2] ss:$9 sm:$0xff] %v8934_v2 }
 0x8ed   : > { %v4437_v36 = vld [vmem:[#allocation1] sm:$0xff] }
 0x8ee   : > { %4459 = vrot.lane.b32.xlu1 %v4437_v36, %s6149_s25  ;;  %4440 = vst [vmem:[#allocation1] ss:$9 sm:$0xff] %v8828_v44 }
 0x8ef   : > { %4442 = vst [vmem:[#allocation1 + $0x1] ss:$9 sm:$0xff] %v8835_v4 }
 0x8f0   : > { %4444 = vst [vmem:[#allocation1 + $0x2] ss:$9 sm:$0xff] %v8943_v37 }
 0x8f7   : > { %v4445_v63 = vld [vmem:[#allocation1] sm:$0xff] }
 0x8f8   : > { %4461 = vrot.lane.b32.xlu0 %v4445_v63, %s6149_s25  ;;  %4448 = vst [vmem:[#allocation1] ss:$9 sm:$0xff] %v8952_v9 }
 0x8f9   : > { %4450 = vst [vmem:[#allocation1 + $0x1] ss:$9 sm:$0xff] %v8955_v1 }
 0x8fa   : > { %4452 = vst [vmem:[#allocation1 + $0x2] ss:$9 sm:$0xff] %v8958_v42 }
 0x901   : > { %v8964_v40 = vld [vmem:[#allocation1] sm:$0xff] }
 0x902   : > { %4475 = vst [vmem:[#allocation1] ss:$9 sm:$0xff] %v8754_v25 }
 0x903   : > { %4478 = vst [vmem:[#allocation1 + $0x1] ss:$9 sm:$0xff] %v8756_v26  ;;  %v8982_v26 = vunpack.i.l.s16 %v4250_v22 }
 0x904   : > { %4481 = vst [vmem:[#allocation1 + $0x2] ss:$9 sm:$0xff] %v4303_v34 }
 0x90b   : > { %v4482_v59 = vld [vmem:[#allocation1] sm:$0xff] }
 0x90c   : > { %4512 = vrot.lane.b32.xlu0 %v4482_v59, %s6150_s26  ;;  %4484 = vst [vmem:[#allocation1] ss:$9 sm:$0xff] %v8794_v60 }
 0x90d   : > { %4486 = vst [vmem:[#allocation1 + $0x1] ss:$9 sm:$0xff] %v8972_v16 }
 0x90e   : > { %4488 = vst [vmem:[#allocation1 + $0x2] ss:$9 sm:$0xff] %v4310_v45 }
 0x915   : > { %v4489_v25 = vld [vmem:[#allocation1] sm:$0xff] }
 0x916   : > { %4514 = vrot.lane.b32.xlu0 %v4489_v25, %s6150_s26  ;;  %4491 = vst [vmem:[#allocation1] ss:$9 sm:$0xff] %v8819_v61 }
 0x917   : > { %4493 = vst [vmem:[#allocation1 + $0x1] ss:$9 sm:$0xff] %v8803_v24 }
 0x918   : > { %4495 = vst [vmem:[#allocation1 + $0x2] ss:$9 sm:$0xff] %v8982_v26 }
 0x91f   : > { %v4496_v30 = vld [vmem:[#allocation1] sm:$0xff] }
 0x920   : > { %4516 = vrot.lane.b32.xlu1 %v4496_v30, %s6150_s26  ;;  %4498 = vst [vmem:[#allocation1] ss:$9 sm:$0xff] %v8845_v35 }
 0x921   : > { %4500 = vst [vmem:[#allocation1 + $0x1] ss:$9 sm:$0xff] %v8989_v53 }
 0x922   : > { %4502 = vst [vmem:[#allocation1 + $0x2] ss:$9 sm:$0xff] %v8991_v33 }
 0x929   : > { %v8998_v22 = vld [vmem:[#allocation1] sm:$0xff] }
 0x92a   : > { %4505 = vst [vmem:[#allocation1] ss:$9 sm:$0xff] %v8874_v29 }
 0x92b   : > { %4507 = vst [vmem:[#allocation1 + $0x1] ss:$9 sm:$0xff] %v8863_v38 }
 0x92c   : > { %4509 = vst [vmem:[#allocation1 + $0x2] ss:$9 sm:$0xff] %v9000_v41 }
 0x933   : > { %v9005_v58 = vld [vmem:[#allocation1] sm:$0xff] }
 0x934   : > { %4525 = vst [vmem:[#allocation1] ss:$9 sm:$0xff] %v8787_v12 }
 0x935   : > { %4527 = vst [vmem:[#allocation1 + $0x1] ss:$9 sm:$0xff] %v8794_v60 }
 0x936   : > { %4529 = vst [vmem:[#allocation1 + $0x2] ss:$9 sm:$0xff] %v8791_v54  ;;  %v9021_v54 = vrot.slane %v8869_v14, 2  ;;  %v9038_v14 = vunpack.i.h.s16 %v9027_v3 }
 0x938   : > { %v4334_v11 = vunpack.i.h.s16 %v9021_v54  ;;  %v9030_v7 = vpack.i.b16 %v9021_v54, %v4332_v23 }
 0x93a   : > { %v9033_v36 = vpack.i.b16 %v9027_v3, %v4334_v11 }
 0x93d   : > { %v4530_v48 = vld [vmem:[#allocation1] sm:$0xff] }
 0x93e   : > { %4555 = vrot.lane.b32.xlu1 %v4530_v48, %s6151_s27  ;;  %4532 = vst [vmem:[#allocation1] ss:$9 sm:$0xff] %v8808_v28 }
 0x93f   : > { %4533 = vst [vmem:[#allocation1 + $0x1] ss:$9 sm:$0xff] %v8819_v61 }
 0x940   : > { %4534 = vst [vmem:[#allocation1 + $0x2] ss:$9 sm:$0xff] %v8811_v49 }
 0x947   : > { %v4535_v31 = vld [vmem:[#allocation1] sm:$0xff] }
 0x948   : > { %4557 = vrot.lane.b32.xlu2 %v4535_v31, %s6151_s27  ;;  %4537 = vst [vmem:[#allocation1] ss:$9 sm:$0xff] %v8840_v21  ;;  %v6075_v31 = vld [vmem:[%s9424_s7 + $0x18] sm:$0xff] }
 0x949   : > { %4538 = vst [vmem:[#allocation1 + $0x1] ss:$9 sm:$0xff] %v8845_v35 }
 0x94a   : > { %4539 = vst [vmem:[#allocation1 + $0x2] ss:$9 sm:$0xff] %v8849_v17 }
 0x951   : > { %v4540_v12 = vld [vmem:[#allocation1] sm:$0xff] }
 0x952   : > { %4559 = vrot.lane.b32.xlu2 %v4540_v12, %s6151_s27  ;;  %4542 = vst [vmem:[#allocation1] ss:$9 sm:$0xff] %v8860_v57 }
 0x953   : > { %4543 = vst [vmem:[#allocation1 + $0x1] ss:$9 sm:$0xff] %v8874_v29 }
 0x954   : > { %4544 = vst [vmem:[#allocation1 + $0x2] ss:$9 sm:$0xff] %v8877_v15 }
 0x95b   : > { %v9035_v18 = vld [vmem:[#allocation1] sm:$0xff] }
 0x95c   : > { %4548 = vst [vmem:[#allocation1] ss:$9 sm:$0xff] %v9030_v7 }
 0x95d   : > { %4550 = vst [vmem:[#allocation1 + $0x1] ss:$9 sm:$0xff] %v9033_v36 }
 0x95e   : > { %4552 = vst [vmem:[#allocation1 + $0x2] ss:$9 sm:$0xff] %v9038_v14 }
 0x965   : > { %v9043_v55 = vld [vmem:[#allocation1] sm:$0xff] }
 0x966   : > { %4568 = vst [vmem:[#allocation1] ss:$9 sm:$0xff] %v8776_v13 }
 0x967   : > { %4570 = vst [vmem:[#allocation1 + $0x1] ss:$9 sm:$0xff] %v8781_v56  ;;  %v9067_v56 = vsel %vm530_vm1, %v8883_v27, %v8889_v6 }
 0x968   : > { %4572 = vst [vmem:[#allocation1 + $0x2] ss:$9 sm:$0xff] %v4309_v46  ;;  %v4337_v34 = vunpack.i.l.s16 %v9067_v56  ;;  %v9096_v43 = vpack.i.b16 %v9067_v56, %v9038_v14 }
 0x96f   : > { %v9049_v39 = vld [vmem:[#allocation1] sm:$0xff] }
 0x970   : > { %4574 = vst [vmem:[#allocation1] ss:$9 sm:$0xff] %v8928_v0 }
 0x971   : > { %4575 = vst [vmem:[#allocation1 + $0x1] ss:$9 sm:$0xff] %v8931_v20 }
 0x972   : > { %4576 = vst [vmem:[#allocation1 + $0x2] ss:$9 sm:$0xff] %v8934_v2 }
 0x979   : > { %v9054_v63 = vld [vmem:[#allocation1] sm:$0xff] }
 0x97a   : > { %4578 = vst [vmem:[#allocation1] ss:$9 sm:$0xff] %v8828_v44 }
 0x97b   : > { %4579 = vst [vmem:[#allocation1 + $0x1] ss:$9 sm:$0xff] %v8835_v4 }
 0x97c   : > { %4580 = vst [vmem:[#allocation1 + $0x2] ss:$9 sm:$0xff] %v8943_v37 }
 0x983   : > { %v9059_v13 = vld [vmem:[#allocation1] sm:$0xff] }
 0x984   : > { %4582 = vst [vmem:[#allocation1] ss:$9 sm:$0xff] %v8952_v9 }
 0x985   : > { %4583 = vst [vmem:[#allocation1 + $0x1] ss:$9 sm:$0xff] %v8955_v1 }
 0x986   : > { %4584 = vst [vmem:[#allocation1 + $0x2] ss:$9 sm:$0xff] %v8958_v42 }
 0x98d   : > { %v9069_v46 = vld [vmem:[#allocation1] sm:$0xff] }
 0x98e   : > { %4587 = vst [vmem:[#allocation1] ss:$9 sm:$0xff] %v9021_v54 }
 0x98f   : > { %4589 = vst [vmem:[#allocation1 + $0x1] ss:$9 sm:$0xff] %v9027_v3 }
 0x990   : > { %4591 = vst [vmem:[#allocation1 + $0x2] ss:$9 sm:$0xff] %v4337_v34 }
 0x997   : > { %v9076_v59 = vld [vmem:[#allocation1] sm:$0xff] }
 0x998   : > { %4595 = vst [vmem:[#allocation1] ss:$9 sm:$0xff] %v8794_v60 }
 0x999   : > { %4597 = vst [vmem:[#allocation1 + $0x1] ss:$9 sm:$0xff] %v8972_v16 }
 0x99a   : > { %4599 = vst [vmem:[#allocation1 + $0x2] ss:$9 sm:$0xff] %v4310_v45  ;;  %v4338_v45 = vunpack.i.h.s16 %v9067_v56  ;;  %v6074_v56 = vld [vmem:[%s9424_s7 + $0x10] sm:$0xff] }
 0x9a1   : > { %v4600_v27 = vld [vmem:[#allocation1] sm:$0xff] }
 0x9a2   : > { %4624 = vrot.lane.b32.xlu0 %v4600_v27, %s6149_s25  ;;  %4602 = vst [vmem:[#allocation1] ss:$9 sm:$0xff] %v8819_v61 }
 0x9a3   : > { %4603 = vst [vmem:[#allocation1 + $0x1] ss:$9 sm:$0xff] %v8803_v24 }
 0x9a4   : > { %4604 = vst [vmem:[#allocation1 + $0x2] ss:$9 sm:$0xff] %v8982_v26 }
 0x9ab   : > { %v4605_v6 = vld [vmem:[#allocation1] sm:$0xff] }
 0x9ac   : > { %4626 = vrot.lane.b32.xlu0 %v4605_v6, %s6149_s25  ;;  %4607 = vst [vmem:[#allocation1] ss:$9 sm:$0xff] %v8845_v35  ;;  %v6087_v6 = vld [vmem:[%s9424_s7 + $0x78] sm:$0xff] }
 0x9ad   : > { %4608 = vst [vmem:[#allocation1 + $0x1] ss:$9 sm:$0xff] %v8989_v53  ;;  %5143 = vmatpush.bf16.msra.mxu3 %v6087_v6 }
 0x9ae   : > { %4609 = vst [vmem:[#allocation1 + $0x2] ss:$9 sm:$0xff] %v8991_v33 }
 0x9b5   : > { %v4610_v60 = vld [vmem:[#allocation1] sm:$0xff] }
 0x9b6   : > { %4628 = vrot.lane.b32.xlu1 %v4610_v60, %s6149_s25  ;;  %4612 = vst [vmem:[#allocation1] ss:$9 sm:$0xff] %v8874_v29 }
 0x9b7   : > { %4613 = vst [vmem:[#allocation1 + $0x1] ss:$9 sm:$0xff] %v8863_v38 }
 0x9b8   : > { %4614 = vst [vmem:[#allocation1 + $0x2] ss:$9 sm:$0xff] %v9000_v41 }
 0x9bf   : > { %v4615_v16 = vld [vmem:[#allocation1] sm:$0xff] }
 0x9c0   : > { %4630 = vrot.lane.b32.xlu0 %v4615_v16, %s6149_s25  ;;  %4617 = vst [vmem:[#allocation1] ss:$9 sm:$0xff] %v9033_v36  ;;  %v6086_v16 = vld [vmem:[%s9424_s7 + $0x70] sm:$0xff] }
 0x9c1   : > { %4619 = vst [vmem:[#allocation1 + $0x1] ss:$9 sm:$0xff] %v9096_v43  ;;  %5144 = vmatpush.bf16.msra.mxu3 %v6086_v16 }
 0x9c2   : > { %4621 = vst [vmem:[#allocation1 + $0x2] ss:$9 sm:$0xff] %v4338_v45 }
 0x9c9   : > { %v9104_v25 = vld [vmem:[#allocation1] sm:$0xff] }
 0x9ca   : > { %4637 = vst [vmem:[#allocation1] ss:$9 sm:$0xff] %v8808_v28 }
 0x9cb   : > { %4639 = vst [vmem:[#allocation1 + $0x1] ss:$9 sm:$0xff] %v8819_v61 }
 0x9cc   : > { %4641 = vst [vmem:[#allocation1 + $0x2] ss:$9 sm:$0xff] %v8811_v49  ;;  %v9122_v49 = vrot.slane %v8905_v19, 3 }
 0x9d3   : > { %v4642_v30 = vld [vmem:[#allocation1] sm:$0xff] }
 0x9d4   : > { %4667 = vrot.lane.b32.xlu1 %v4642_v30, %s6150_s26  ;;  %4644 = vst [vmem:[#allocation1] ss:$9 sm:$0xff] %v8840_v21  ;;  %v4286_v21 = vrot.slane %v8895_v5, 1 }
 0x9d5   : > { %4645 = vst [vmem:[#allocation1 + $0x1] ss:$9 sm:$0xff] %v8845_v35 }
 0x9d6   : > { %4646 = vst [vmem:[#allocation1 + $0x2] ss:$9 sm:$0xff] %v8849_v17  ;;  %v9126_v17 = vrot.slane %v8900_v62, 2  ;;  %v6079_v62 = vld [vmem:[%s9424_s7 + $0x38] sm:$0xff] }
 0x9d7   : > { %5124 = vmatpush.bf16.msrb.mxu0 %v6079_v62 }
 0x9dd   : > { %v4647_v32 = vld [vmem:[#allocation1] sm:$0xff] }
 0x9de   : > { %4669 = vrot.lane.b32.xlu1 %v4647_v32, %s6150_s26  ;;  %4649 = vst [vmem:[#allocation1] ss:$9 sm:$0xff] %v8860_v57 }
 0x9df   : > { %4650 = vst [vmem:[#allocation1 + $0x1] ss:$9 sm:$0xff] %v8874_v29 }
 0x9e0   : > { %4651 = vst [vmem:[#allocation1 + $0x2] ss:$9 sm:$0xff] %v8877_v15  ;;  %v4343_v15 = vunpack.i.l.s16 %v9122_v49 }
 0x9e7   : > { %v4652_v28 = vld [vmem:[#allocation1] sm:$0xff] }
 0x9e8   : > { %4671 = vrot.lane.b32.xlu2 %v4652_v28, %s6150_s26  ;;  %4654 = vst [vmem:[#allocation1] ss:$9 sm:$0xff] %v9030_v7 }
 0x9e9   : > { %4655 = vst [vmem:[#allocation1 + $0x1] ss:$9 sm:$0xff] %v9033_v36 }
 0x9ea   : > { %4656 = vst [vmem:[#allocation1 + $0x2] ss:$9 sm:$0xff] %v9038_v14 }
 0x9f1   : > { %v4657_v57 = vld [vmem:[#allocation1] sm:$0xff] }
 0x9f2   : > { %4673 = vrot.lane.b32.xlu2 %v4657_v57, %s6150_s26  ;;  %4660 = vst [vmem:[#allocation1] ss:$9 sm:$0xff] %v4286_v21 }
 0x9f3   : > { %4662 = vst [vmem:[#allocation1 + $0x1] ss:$9 sm:$0xff] %v9126_v17 }
 0x9f4   : > { %4664 = vst [vmem:[#allocation1 + $0x2] ss:$9 sm:$0xff] %v4343_v15  ;;  %v6085_v15 = vld [vmem:[%s9424_s7 + $0x68] sm:$0xff] }
 0x9f5   : > { %5145 = vmatpush.bf16.msra.mxu3 %v6085_v15 }
 0x9fb   : > { %v4665_v48 = vld [vmem:[#allocation1] sm:$0xff] }
 0x9fc   : > { %4680 = vst [vmem:[#allocation1] ss:$9 sm:$0xff] %v8928_v0  ;;  %v6077_v0 = vld [vmem:[%s9424_s7 + $0x28] sm:$0xff] }
 0x9fd   : > { %4682 = vst [vmem:[#allocation1 + $0x1] ss:$9 sm:$0xff] %v8931_v20  ;;  %v4340_v20 = vunpack.i.h.s16 %v4286_v21 }
 0x9fe   : > { %4684 = vst [vmem:[#allocation1 + $0x2] ss:$9 sm:$0xff] %v8934_v2  ;;  %v4342_v2 = vunpack.i.h.s16 %v9126_v17 }
 0xa05   : > { %v4685_v5 = vld [vmem:[#allocation1] sm:$0xff] }
 0xa06   : > { %4710 = vrot.lane.b32.xlu1 %v4685_v5, %s6151_s27  ;;  %4687 = vst [vmem:[#allocation1] ss:$9 sm:$0xff] %v8828_v44 }
 0xa07   : > { %4688 = vst [vmem:[#allocation1 + $0x1] ss:$9 sm:$0xff] %v8835_v4  ;;  %v6078_v4 = vld [vmem:[%s9424_s7 + $0x30] sm:$0xff] }
 0xa08   : > { %4689 = vst [vmem:[#allocation1 + $0x2] ss:$9 sm:$0xff] %v8943_v37  ;;  %5125 = vmatpush.bf16.msrb.mxu0 %v6078_v4  ;;  %v5947_v37 = vpack.i.b16 %v9126_v17, %v4340_v20 }
 0xa0c   : > { %5126 = vmatpush.bf16.msrb.mxu0 %v6077_v0 }
 0xa0e   : > { %4518 = vrot.lane.b32.xlu1 %v8998_v22, %s6150_s26 }
 0xa0f   : > { %v4690_v19 = vld [vmem:[#allocation1] sm:$0xff] }
 0xa10   : > { %4712 = vrot.lane.b32.xlu2 %v4690_v19, %s6151_s27  ;;  %4692 = vst [vmem:[#allocation1] ss:$9 sm:$0xff] %v8952_v9  ;;  %v5948_v9 = vpack.i.b16 %v9122_v49, %v4342_v2 }
 0xa11   : > { %4693 = vst [vmem:[#allocation1 + $0x1] ss:$9 sm:$0xff] %v8955_v1 }
 0xa12   : > { %4694 = vst [vmem:[#allocation1 + $0x2] ss:$9 sm:$0xff] %v8958_v42  ;;  %v4344_v42 = vunpack.i.h.s16 %v9122_v49 }
 0xa16   : > { %4675 = vrot.lane.b32.xlu1 %v4665_v48, %s6150_s26 }
 0xa19   : > { %v4695_v44 = vld [vmem:[#allocation1] sm:$0xff] }
 0xa1a   : > { %4714 = vrot.lane.b32.xlu2 %v4695_v44, %s6151_s27  ;;  %4697 = vst [vmem:[#allocation1] ss:$9 sm:$0xff] %v9021_v54 }
 0xa1b   : > { %4698 = vst [vmem:[#allocation1 + $0x1] ss:$9 sm:$0xff] %v9027_v3 }
 0xa1c   : > { %4699 = vst [vmem:[#allocation1 + $0x2] ss:$9 sm:$0xff] %v4337_v34 }
 0xa1e   : > { %4520 = vrot.lane.b32.xlu1 %v9005_v58, %s6150_s26  ;;  %v6076_v58 = vld [vmem:[%s9424_s7 + $0x20] sm:$0xff]  ;;  %s6160_s26 = smov 47  }
 0xa1f   : > { %5127 = vmatpush.bf16.msrb.mxu0 %v6076_v58 }
 0xa22   : > { %4561 = vrot.lane.b32.xlu2 %v9035_v18, %s6151_s27 }
 0xa23   : > { %v4700_v1 = vld [vmem:[#allocation1] sm:$0xff]  ;;  %5128 = vmatpush.bf16.msrb.mxu0 %v6075_v31 }
 0xa24   : > { %4716 = vrot.lane.b32.xlu0 %v4700_v1, %s6151_s27  ;;  %4703 = vst [vmem:[#allocation1] ss:$9 sm:$0xff] %v5947_v37 }
 0xa25   : > { %4705 = vst [vmem:[#allocation1 + $0x1] ss:$9 sm:$0xff] %v5948_v9 }
 0xa26   : > { %4707 = vst [vmem:[#allocation1 + $0x2] ss:$9 sm:$0xff] %v4344_v42 }
 0xa27   : > { %5129 = vmatpush.bf16.msrb.mxu0 %v6074_v56 }
 0xa2a   : > { %4463 = vrot.lane.b32.xlu2 %v8964_v40, %s6149_s25 }
 0xa2c   : > { %4632 = vrot.lane.b32.xlu0 %v9104_v25, %s6149_s25  ;;  %s6164_s25 = smov 116  }
 0xa2d   : > { %v4708_v22 = vld [vmem:[#allocation1] sm:$0xff] }
 0xa2e   : > { %4722 = vst [vmem:[#allocation1] ss:$9 sm:$0xff] %v8819_v61  ;;  %v9191_v61 = vpop.permute.xlu1 %4459 }
 0xa2f   : > { %4724 = vst [vmem:[#allocation1 + $0x1] ss:$9 sm:$0xff] %v8803_v24  ;;  %v9188_v24 = vpop.permute.xlu0 %4455 }
 0xa30   : > { %4726 = vst [vmem:[#allocation1 + $0x2] ss:$9 sm:$0xff] %v8982_v26  ;;  %v4458_v26 = vpop.permute.xlu2 %4457 }
 0xa32   : > { %4563 = vrot.lane.b32.xlu2 %v9043_v55, %s6151_s27 }
 0xa34   : > { %4718 = vrot.lane.b32.xlu0 %v4708_v22, %s6151_s27  ;;  %s6165_s27 = smov 19  }
 0xa36   : > { %v9198_v23 = vpop.permute.xlu1 %4516 }
 0xa37   : > { %v9184_v40 = vld [vmem:[#allocation1] sm:$0xff]  ;;  %v9193_v54 = vpop.permute.xlu0 %4461 }
 0xa38   : > { %4729 = vst [vmem:[#allocation1] ss:$9 sm:$0xff] %v8845_v35  ;;  %v4558_v35 = vpop.permute.xlu2 %4557 }
 0xa39   : > { %4730 = vst [vmem:[#allocation1 + $0x1] ss:$9 sm:$0xff] %v8989_v53  ;;  %v4193_v53 = vmax.f32 %v8908_v51, 0.0 }
 0xa3a   : > { %4731 = vst [vmem:[#allocation1 + $0x2] ss:$9 sm:$0xff] %v8991_v33 }
 0xa3b   : > { %v4200_v33 = vpack.c.bf16 %v4193_v53, %v4193_v53 }
 0xa3e   : > { %v9206_v7 = vpop.permute.xlu1 %4555 }
 0xa3f   : > { %v9201_v11 = vpop.permute.xlu0 %4512 }
 0xa41   : > { %v4732_v12 = vld [vmem:[#allocation1] sm:$0xff] }
 0xa42   : > { %4734 = vst [vmem:[#allocation1] ss:$9 sm:$0xff] %v8874_v29  ;;  %v4560_v29 = vpop.permute.xlu2 %4559  ;;  %v4819_v5 = vrot.slane %v4732_v12, 6  ;;  %v4756_v12 = vsel %vm1811_vm5, %v8842_v50, %v9191_v61 }
 0xa43   : > { %4735 = vst [vmem:[#allocation1 + $0x1] ss:$9 sm:$0xff] %v8863_v38  ;;  %v4214_v38 = vrot.slane %v4200_v33, 3  ;;  %v4766_v53 = vsel %vm392_vm0, %v4756_v12, %v9198_v23  ;;  %v4752_v23 = vsel %vm1811_vm5, %v8784_v52, %v9188_v24 }
 0xa44   : > { %4736 = vst [vmem:[#allocation1 + $0x2] ss:$9 sm:$0xff] %v9000_v41 }
 0xa45   : > { %v4295_v41 = vsel %vm530_vm1, %v4200_v33, %v4214_v38 }
 0xa46   : > { %v4629_v51 = vpop.permute.xlu1 %4628  ;;  %v4345_v55 = vunpack.i.l.s16 %v4295_v41 }
 0xa47   : > { %v4515_v18 = vpop.permute.xlu0 %4514  ;;  %v4786_v42 = vsel %vm1811_vm5, %v9059_v13, %v4629_v51  ;;  %v4776_v13 = vsel %vm1848_vm6, %v4766_v53, %v4560_v29 }
 0xa4b   : > { %v9203_v3 = vld [vmem:[#allocation1] sm:$0xff] }
 0xa4c   : > { %4739 = vst [vmem:[#allocation1] ss:$9 sm:$0xff] %v9033_v36  ;;  %v4672_v36 = vpop.permute.xlu2 %4671  ;;  %v4821_v41 = vrot.slane %v9203_v3, 6 }
 0xa4d   : > { %4740 = vst [vmem:[#allocation1 + $0x1] ss:$9 sm:$0xff] %v9096_v43  ;;  %v6073_v43 = vld [vmem:[%s9424_s7 + $0x8] sm:$0xff]  ;;  %v4796_v58 = vsel %vm392_vm0, %v4786_v42, %v4672_v36 }
 0xa4e   : > { %4741 = vst [vmem:[#allocation1 + $0x2] ss:$9 sm:$0xff] %v4338_v45  ;;  %v4668_v27 = vpop.permute.xlu1 %4667  ;;  %5130 = vmatpush.bf16.msrb.mxu0 %v6073_v43 }
 0xa4f   : > { %v4625_v34 = vpop.permute.xlu0 %4624 }
 0xa50   : > { %v4782_v38 = vsel %vm1811_vm5, %v9049_v39, %v4625_v34  ;;  %v4762_v39 = vsel %vm392_vm0, %v4752_v23, %v9201_v11 }
 0xa51   : > { %v4772_v34 = vsel %vm1848_vm6, %v4762_v39, %v9206_v7  ;;  %v6072_v7 = vld [vmem:[%s9424_s7] sm:$0xff] }
 0xa52   : > { %5131 = vmatpush.bf16.msrb.mxu0 %v6072_v7 }
 0xa54   : > { %v9222_v60 = vpop.permute.xlu2 %4673 }
 0xa55   : > { %v9212_v14 = vld [vmem:[#allocation1] sm:$0xff] }
 0xa56   : > { %4744 = vst [vmem:[#allocation1] ss:$9 sm:$0xff] %v9126_v17  ;;  %v4670_v25 = vpop.permute.xlu1 %4669 }
 0xa57   : > { %4746 = vst [vmem:[#allocation1 + $0x1] ss:$9 sm:$0xff] %v9122_v49  ;;  %v4627_v45 = vpop.permute.xlu0 %4626  ;;  %v4754_v49 = vsel %vm1811_vm5, %v8815_v47, %v4458_v26  ;;  %v6084_v47 = vld [vmem:[%s9424_s7 + $0x60] sm:$0xff] }
 0xa58   : > { %4748 = vst [vmem:[#allocation1 + $0x2] ss:$9 sm:$0xff] %v4345_v55  ;;  %v4784_v30 = vsel %vm1811_vm5, %v9054_v63, %v4627_v45  ;;  %v4764_v17 = vsel %vm392_vm0, %v4754_v49, %v4515_v18  ;;  %5146 = vmatpush.bf16.msra.mxu3 %v6084_v47  ;;  %v4792_v18 = vsel %vm392_vm0, %v4782_v38, %v4668_v27  ;;  %v4817_v27 = vrot.slane %v9184_v40, 6  ;;  %v6083_v40 = vld [vmem:[%s9424_s7 + $0x58] sm:$0xff]  ;;  %v6080_v49 = vld [vmem:[%s9424_s7 + $0x40] sm:$0xff] }
 0xa59   : > { %v4794_v32 = vsel %vm392_vm0, %v4784_v30, %v4670_v25  ;;  %v4774_v48 = vsel %vm1848_vm6, %v4764_v17, %v4558_v35 }
 0xa5c   : > { %5147 = vmatpush.bf16.msra.mxu3 %v6083_v40 }
 0xa5f   : > { %v9252_v22 = vld [vmem:[#allocation1] sm:$0xff] }
 0xa6a   : > { %v4713_v28 = vpop.permute.xlu2 %4712 }
 0xa6b   : > { %v4804_v21 = vsel %vm1848_vm6, %v4794_v32, %v4713_v28  ;;  %v6082_v32 = vld [vmem:[%s9424_s7 + $0x50] sm:$0xff]  ;;  %v6081_v28 = vld [vmem:[%s9424_s7 + $0x48] sm:$0xff] }
 0xa6c   : > { %v4818_v57 = vrot.slane %v4804_v21, 7  ;;  %5148 = vmatpush.bf16.msra.mxu3 %v6082_v32  ;;  %v4631_v21 = vpop.permute.xlu0 %4630 }
 0xa6e   : > { %v4840_v63 = vsel %vm530_vm1, %v4774_v48, %v4818_v57  ;;  %v4844_v62 = vsel %vm535_vm2, %v4774_v48, %v4818_v57  ;;  %v4848_v19 = vsel %vm539_vm3, %v4774_v48, %v4818_v57  ;;  %v6089_v57 = vld [vmem:[%s9424_s7 + $0x88] sm:$0xff] }
 0xa6f   : > { %v4842_v44 = vsel %vm1950_vm10, %v4840_v63, %v4819_v5  ;;  %v4845_v4 = vsel %vm1955_vm9, %v4844_v62, %v4819_v5  ;;  %v4849_v0 = vsel %vm1960_vm11, %v4848_v19, %v4819_v5  ;;  %5168 = vmatpush.bf16.msra.mxu0 %v6089_v57  ;;  %v4758_v5 = vsel %vm1811_vm5, %v8879_v8, %v9193_v54 }
 0xa70   : > { %v4847_v20 = vrot.slane %v4845_v4, 1  ;;  %v4897_v2 = vunpack.i.h.s16 %v4842_v44  ;;  %v4851_v37 = vrot.slane %v4849_v0, 2  ;;  %5149 = vmatpush.bf16.msra.mxu3 %v6081_v28  ;;  %v4788_v63 = vsel %vm1811_vm5, %v9069_v46, %v4631_v21  ;;  %v6139_v21 = vld [vmem:[%s9425_s8] ss:$0 sm:$0xff] }
 0xa71   : > { %v4798_v62 = vsel %vm392_vm0, %v4788_v63, %v9222_v60  ;;  %v4823_v46 = vrot.slane %v9212_v14, 6 }
 0xa72   : > { %v4899_v9 = vunpack.i.h.s16 %v4847_v20  ;;  %v5950_v1 = vpack.i.b16 %v4847_v20, %v4897_v2  ;;  %v6088_v20 = vld [vmem:[%s9424_s7 + $0x80] sm:$0xff] }
 0xa73   : > { %5169 = vmatpush.bf16.msra.mxu0 %v6088_v20 }
 0xa74   : > { %v5951_v31 = vpack.i.b16 %v4851_v37, %v4899_v9  ;;  %v4715_v26 = vpop.permute.xlu2 %4714  ;;  %4979 = vst [vmem:[#allocation1 + $0x3] ss:$9 sm:$0xff] %v5950_v1  ;;  %5150 = vmatpush.bf16.msra.mxu3 %v6080_v49 }
 0xa75   : > { %v4806_v35 = vsel %vm1848_vm6, %v4796_v58, %v4715_v26 }
 0xa76   : > { %v4820_v33 = vrot.slane %v4806_v35, 7  ;;  %4982 = vst [vmem:[#allocation1 + $0x4] ss:$9 sm:$0xff] %v5951_v31 }
 0xa78   : > { %v4853_v51 = vsel %vm530_vm1, %v4776_v13, %v4820_v33  ;;  %v4857_v50 = vsel %vm535_vm2, %v4776_v13, %v4820_v33  ;;  %v4711_v61 = vpop.permute.xlu1 %4710  ;;  %v4861_v15 = vsel %vm539_vm3, %v4776_v13, %v4820_v33 }
 0xa79   : > { %v4855_v55 = vsel %vm1950_vm10, %v4853_v51, %v4821_v41  ;;  %v4858_v29 = vsel %vm1955_vm9, %v4857_v50, %v4821_v41  ;;  %v4802_v36 = vsel %vm1848_vm6, %v4792_v18, %v4711_v61 }
 0xa7a   : > { %v4860_v3 = vrot.slane %v4858_v29, 1  ;;  %v4816_v56 = vrot.slane %v4802_v36, 7  ;;  %4985 = vst [vmem:[#allocation1 + $0x5] ss:$9 sm:$0xff] %v4855_v55 }
 0xa7c   : > { %v4827_v6 = vsel %vm530_vm1, %v4772_v34, %v4816_v56  ;;  %v4831_v52 = vsel %vm535_vm2, %v4772_v34, %v4816_v56  ;;  %v4835_v24 = vsel %vm539_vm3, %v4772_v34, %v4816_v56  ;;  %4988 = vst [vmem:[#allocation1 + $0x6] ss:$9 sm:$0xff] %v4860_v3  ;;  %v4562_v48 = vpop.permute.xlu2 %4561 }
 0xa7d   : > { %v4829_v43 = vsel %vm1950_vm10, %v4827_v6, %v4817_v27  ;;  %v4832_v16 = vsel %vm1955_vm9, %v4831_v52, %v4817_v27  ;;  %v4836_v11 = vsel %vm1960_vm11, %v4835_v24, %v4817_v27 }
 0xa7e   : > { %v4834_v45 = vrot.slane %v4832_v16, 1  ;;  %v4838_v25 = vrot.slane %v4836_v11, 2  ;;  %4970 = vst [vmem:[#allocation1] ss:$9 sm:$0xff] %v4829_v43 }
 0xa80   : > { %v5949_v30 = vpack.i.b16 %v4842_v44, %v4838_v25  ;;  %4973 = vst [vmem:[#allocation1 + $0x1] ss:$9 sm:$0xff] %v4834_v45  ;;  %v4519_v17 = vpop.permute.xlu1 %4518  ;;  %v4862_v44 = vsel %vm1960_vm11, %v4861_v15, %v4821_v41 }
 0xa81   : > { %v4768_v19 = vsel %vm392_vm0, %v4758_v5, %v4519_v17  ;;  %v4864_v2 = vrot.slane %v4862_v44, 2 }
 0xa82   : > { %4976 = vst [vmem:[#allocation1 + $0x2] ss:$9 sm:$0xff] %v5949_v30  ;;  %v4778_v8 = vsel %vm1848_vm6, %v4768_v19, %v4562_v48 }
 0xa84   : > { %v4464_v26 = vpop.permute.xlu2 %4463 }
 0xa85   : > { %v4760_v18 = vsel %vm1811_vm5, %v8911_v10, %v4464_v26  ;;  %v4825_v10 = vrot.slane %v9252_v22, 6 }
 0xa88   : > { %v4676_v54 = vpop.permute.xlu1 %4675 }
 0xa90   : > { %v4521_v33 = vpop.permute.xlu1 %4520 }
 0xa91   : > { %v4770_v55 = vsel %vm392_vm0, %v4760_v18, %v4521_v33 }
 0xa96   : > { %v4717_v47 = vpop.permute.xlu0 %4716 }
 0xa97   : > { %v4808_v4 = vsel %vm1848_vm6, %v4798_v62, %v4717_v47 }
 0xa98   : > { %v4822_v0 = vrot.slane %v4808_v4, 7 }
 0xa9a   : > { %v4866_v60 = vsel %vm530_vm1, %v4778_v8, %v4822_v0  ;;  %v4870_v37 = vsel %vm535_vm2, %v4778_v8, %v4822_v0  ;;  %v4874_v31 = vsel %vm539_vm3, %v4778_v8, %v4822_v0 }
 0xa9b   : > { %v4868_v9 = vsel %vm1950_vm10, %v4866_v60, %v4823_v46  ;;  %v4871_v1 = vsel %vm1955_vm9, %v4870_v37, %v4823_v46  ;;  %v4875_v35 = vsel %vm1960_vm11, %v4874_v31, %v4823_v46  ;;  %v6152_v31 = vmov 1983009808  }
 0xa9c   : > { %v5952_v42 = vpack.i.b16 %v4868_v9, %v4864_v2  ;;  %v4873_v58 = vrot.slane %v4871_v1, 1  ;;  %v4907_v14 = vunpack.i.h.s16 %v4868_v9  ;;  %v4877_v13 = vrot.slane %v4875_v35, 2 }
 0xa9d   : > { %v5221_v26 = vunpack.c.l.s4 %v6152_v31 }
 0xa9e   : > { %v4633_v12 = vpop.permute.xlu0 %4632  ;;  %4991 = vst [vmem:[#allocation1 + $0x7] ss:$9 sm:$0xff] %v5952_v42  ;;  %v4909_v53 = vunpack.i.h.s16 %v4873_v58  ;;  %v5953_v41 = vpack.i.b16 %v4873_v58, %v4907_v14 }
 0xa9f   : > { %v4790_v38 = vsel %vm1811_vm5, %v9076_v59, %v4633_v12  ;;  %v4564_v59 = vpop.permute.xlu2 %4563  ;;  %v6153_v12 = vmov 1934713408   ;;  %v9345_v14 = vunpack.c.0.s8 %v5221_v26 }
 0xaa0   : > { %v5954_v51 = vpack.i.b16 %v4877_v13, %v4909_v53  ;;  %v4800_v29 = vsel %vm392_vm0, %v4790_v38, %v4676_v54  ;;  %v4780_v56 = vsel %vm1848_vm6, %v4770_v55, %v4564_v59  ;;  %v5231_v35 = vunpack.c.l.s4 %v6153_v12 }
 0xaa1   : > { %vm5498_vm0 = vcmask 613376  }
 0xaa2   : > { %v9347_v53 = vunpack.c.0.s8 %v5231_v35 }
 0xaa5   : > { %v4992_v50 = vld [vmem:[#allocation1] sm:$0xff]  ;;  %v4994_v61 = vld [vmem:[#allocation1 + $0x12] sm:$0xff]  ;;  %v4993_v23 = vld [vmem:[#allocation1 + $0x9] sm:$0xff] }
 0xaa6   : > { %v4719_v36 = vpop.permute.xlu0 %4718  ;;  %5132 = vmatmul.bf16.vlgmr.msrb.gmra.mxu0 %v4992_v50  ;;  %5151 = vmatmul.bf16.vlgmr.msra.gmra.mxu3 %v4993_v23  ;;  %4996 = vst [vmem:[#allocation1] ss:$9 sm:$0xff] %v5953_v41 }
 0xaa7   : > { %v4810_v39 = vsel %vm1848_vm6, %v4800_v29, %v4719_v36  ;;  %4998 = vst [vmem:[#allocation1 + $0x1] ss:$9 sm:$0xff] %v5954_v51  ;;  %vm5506_vm6 = vcmask 384000  }
 0xaa8   : > { %v4824_v3 = vrot.slane %v4810_v39, 7 }
 0xaaa   : > { %v4879_v34 = vsel %vm530_vm1, %v4780_v56, %v4824_v3  ;;  %v4883_v27 = vsel %vm535_vm2, %v4780_v56, %v4824_v3  ;;  %v4887_v6 = vsel %vm539_vm3, %v4780_v56, %v4824_v3  ;;  %vm5500_vm2 = vcmask 818176  }
 0xaab   : > { %v4881_v52 = vsel %vm1950_vm10, %v4879_v34, %v4825_v10  ;;  %v4884_v24 = vsel %vm1955_vm9, %v4883_v27, %v4825_v10  ;;  %v4888_v43 = vsel %vm1960_vm11, %v4887_v6, %v4825_v10  ;;  %vm5508_vm9 = vcmask 588800  }
 0xaac   : > { %v4886_v16 = vrot.slane %v4884_v24, 1  ;;  %v4890_v11 = vrot.slane %v4888_v43, 2  ;;  %5000 = vst [vmem:[#allocation1 + $0x2] ss:$9 sm:$0xff] %v4881_v52  ;;  %vm5510_vm11 = vcmask 793600  }
 0xaae   : > { %v4915_v45 = vunpack.i.l.s16 %v4890_v11  ;;  %5002 = vst [vmem:[#allocation1 + $0x3] ss:$9 sm:$0xff] %v4886_v16 }
 0xab0   : > { %5004 = vst [vmem:[#allocation1 + $0x4] ss:$9 sm:$0xff] %v4915_v45 }
 0xab7   : > { %v5005_v25 = vld [vmem:[#allocation1] sm:$0xff]  ;;  %v5006_v22 = vld [vmem:[#allocation1 + $0x9] sm:$0xff]  ;;  %v5007_v30 = vld [vmem:[#allocation1 + $0x12] sm:$0xff] }
 0xab8   : > { %5137 = vmatmul.bf16.gmra.mxu0 %v5005_v25  ;;  %5156 = vmatmul.bf16.gmra.mxu3 %v5006_v22 }
 0xac8   : > { %6027 = vmatmul.msk.bf16.vlgmr.msra.gmra.mxu0 %vm1811_vm5, %v4994_v61 }
 0xad8   : > { %6028 = vmatmul.msk.bf16.gmra.mxu0 %vm1811_vm5, %v5007_v30  ;;  %vm5504_vm5 = vcmask 179200  }
 0xb23   : > { %v5133_v40 = vpop.f32.mrf.mxu0 }
 0xb24   : > { %v5134_v17 = vadd.f32 %v6139_v21, %v5133_v40 }
 0xb29   : > { %v5152_v28 = vpop.f32.mrf.mxu3 }
 0xb2a   : > { %v5153_v57 = vadd.f32 %v5152_v28, %v5134_v17 }
 0xb2b   : > { %v5135_v7 = vpop.f32.mrf.mxu0 }
 0xb2c   : > { %v5136_v62 = vadd.f32 %v6139_v21, %v5135_v7 }
 0xb31   : > { %v5154_v5 = vpop.f32.mrf.mxu3 }
 0xb32   : > { %v5155_v19 = vadd.f32 %v5154_v5, %v5136_v62 }
 0xb35   : > { %v5138_v32 = vpop.f32.mrf.mxu0 }
 0xb36   : > { %v5139_v20 = vadd.f32 %v6139_v21, %v5138_v32 }
 0xb3b   : > { %v5157_v4 = vpop.f32.mrf.mxu3 }
 0xb3c   : > { %v5158_v8 = vadd.f32 %v5157_v4, %v5139_v20 }
 0xb3d   : > { %v5140_v49 = vpop.f32.mrf.mxu0 }
 0xb3e   : > { %v5141_v37 = vadd.f32 %v6139_v21, %v5140_v49 }
 0xb43   : > { %v5159_v60 = vpop.f32.mrf.mxu3 }
 0xb44   : > { %v5160_v9 = vadd.f32 %v5159_v60, %v5141_v37 }
 0xb45   : > { %v5171_v15 = vpop.f32.mrf.mxu0 }
 0xb46   : > { %v5172_v48 = vadd.f32 %v5171_v15, %v5153_v57 }
 0xb48   : > { %v5181_v63 = vmax.f32 %v5172_v48, 0.0 }
 0xb4a   : > { %5185 = vxpose.xlu0.b32.start [1/4] (short) (narrow) %v5181_v63, 32 }
 0xb4d   : > { %v5173_v47 = vpop.f32.mrf.mxu0 }
 0xb4e   : > { %v5174_v44 = vadd.f32 %v5173_v47, %v5155_v19 }
 0xb50   : > { %v5182_v0 = vmax.f32 %v5174_v44, 0.0 }
 0xb52   : > { %5186 = vxpose.xlu0.b32.cont [2/4] (short) (narrow) %v5182_v0, 32 }
 0xb55   : > { %v5176_v54 = vpop.f32.mrf.mxu0 }
 0xb56   : > { %v5177_v46 = vadd.f32 %v5176_v54, %v5158_v8 }
 0xb58   : > { %v5183_v2 = vmax.f32 %v5177_v46, 0.0 }
 0xb5a   : > { %5187 = vxpose.xlu0.b32.cont [3/4] (short) (narrow) %v5183_v2, 32 }
 0xb5d   : > { %v5178_v1 = vpop.f32.mrf.mxu0 }
 0xb5e   : > { %v5179_v42 = vadd.f32 %v5178_v1, %v5160_v9 }
 0xb60   : > { %v5184_v58 = vmax.f32 %v5179_v42, 0.0 }
 0xb62   : > { %5188 = vxpose.xlu0.b32.end [4/4] (short) (narrow) %v5184_v58, 32 }
 0xbee   : > { %v5201_v33 = vpop.trf.xlu0 }
 0xbef   : > { %v5223_v13 = vperm.slane %v5201_v33, %v9345_v14  ;;  %v5217_v38 = vrot.slane %v5201_v33, 4 }
 0xbf1   : > { %v5228_v41 = vrot.slane %v5223_v13, 4  ;;  %v9351_v18 = vperm.slane %v5223_v13, %v9347_v53  ;;  %v5219_v23 = vsel %vm5218_vm13, 0.0, %v5217_v38 }
 0xbf2   : > { %v5227_v29 = vperm.slane %v5219_v23, %v9345_v14 }
 0xbf3   : > { %v5248_v51 = vrot.slane %v9351_v18, 4  ;;  %v5229_v50 = vsel %vm5218_vm13, 0.0, %v5228_v41 }
 0xbf4   : > { %v5237_v61 = vperm.slane %v5229_v50, %v9347_v53  ;;  %v5243_v39 = vperm.slane %v5227_v29, %v9347_v53  ;;  %v5238_v59 = vrot.slane %v5227_v29, 4 }
 0xbf5   : > { %v5249_v55 = vsel %vm5218_vm13, 0.0, %v5248_v51 }
 0xbf6   : > { %5371 = vrot.lane.b32.xlu1 %v5249_v55, %s6154_s23  ;;  %5375 = vrot.lane.b32.xlu2 %v5237_v61, %s6155_s24  ;;  %v5250_v36 = vrot.slane %v5237_v61, 4  ;;  %v5252_v56 = vrot.slane %v5243_v39, 4  ;;  %v5239_v10 = vsel %vm5218_vm13, 0.0, %v5238_v59  ;;  %v5202_v34 = vpop.trf.xlu0  ;;  %s6173_s23 = smov 91   ;;  %s6174_s24 = smov 13  }
 0xbf7   : > { %v5247_v27 = vperm.slane %v5239_v10, %v9347_v53  ;;  %v5261_v52 = vperm.slane %v5202_v34, %v9345_v14  ;;  %v5256_v7 = vrot.slane %v5202_v34, 4 }
 0xbf8   : > { %v5251_v3 = vsel %vm5218_vm13, 0.0, %v5250_v36  ;;  %v5253_v6 = vsel %vm5218_vm13, 0.0, %v5252_v56 }
 0xbf9   : > { %v5254_v24 = vrot.slane %v5247_v27, 4  ;;  %v5271_v43 = vperm.slane %v5261_v52, %v9347_v53  ;;  %v5266_v11 = vrot.slane %v5261_v52, 4  ;;  %v5257_v21 = vsel %vm5218_vm13, 0.0, %v5256_v7 }
 0xbfa   : > { %v5265_v57 = vperm.slane %v5257_v21, %v9345_v14 }
 0xbfb   : > { %v5255_v25 = vsel %vm5218_vm13, 0.0, %v5254_v24  ;;  %v5286_v22 = vrot.slane %v5271_v43, 4  ;;  %v5267_v30 = vsel %vm5218_vm13, 0.0, %v5266_v11 }
 0xbfc   : > { %v5275_v32 = vperm.slane %v5267_v30, %v9347_v53  ;;  %v5281_v48 = vperm.slane %v5265_v57, %v9347_v53  ;;  %v5276_v5 = vrot.slane %v5265_v57, 4 }
 0xbfd   : > { %v5287_v49 = vsel %vm5218_vm13, 0.0, %v5286_v22 }
 0xbfe   : > { %5379 = vrot.lane.b32.xlu1 %v5251_v3, %s6156_s28  ;;  %5383 = vrot.lane.b32.xlu2 %v5243_v39, %s6157_s29  ;;  %v5203_v16 = vpop.trf.xlu0  ;;  %v5288_v15 = vrot.slane %v5275_v32, 4  ;;  %v5290_v62 = vrot.slane %v5281_v48, 4  ;;  %v5277_v19 = vsel %vm5218_vm13, 0.0, %v5276_v5  ;;  %s6175_s28 = smov 38   ;;  %s6176_s29 = smov 63  }
 0xbff   : > { %v5294_v45 = vrot.slane %v5203_v16, 4  ;;  %v5285_v47 = vperm.slane %v5277_v19, %v9347_v53  ;;  %v5299_v4 = vperm.slane %v5203_v16, %v9345_v14 }
 0xc00   : > { %v5289_v63 = vsel %vm5218_vm13, 0.0, %v5288_v15  ;;  %v5291_v44 = vsel %vm5218_vm13, 0.0, %v5290_v62 }
 0xc01   : > { %v5295_v40 = vsel %vm5218_vm13, 0.0, %v5294_v45  ;;  %v5292_v0 = vrot.slane %v5285_v47, 4  ;;  %v5309_v20 = vperm.slane %v5299_v4, %v9347_v53  ;;  %v5304_v8 = vrot.slane %v5299_v4, 4 }
 0xc02   : > { %v5303_v28 = vperm.slane %v5295_v40, %v9345_v14 }
 0xc03   : > { %v5293_v54 = vsel %vm5218_vm13, 0.0, %v5292_v0  ;;  %v5305_v46 = vsel %vm5218_vm13, 0.0, %v5304_v8  ;;  %v5324_v2 = vrot.slane %v5309_v20, 4 }
 0xc04   : > { %v5319_v17 = vperm.slane %v5303_v28, %v9347_v53  ;;  %v5313_v60 = vperm.slane %v5305_v46, %v9347_v53  ;;  %v5314_v9 = vrot.slane %v5303_v28, 4 }
 0xc05   : > { %v5325_v37 = vsel %vm5218_vm13, 0.0, %v5324_v2 }
 0xc06   : > { %5387 = vrot.lane.b32.xlu1 %v5253_v6, %s6158_s11  ;;  %5391 = vrot.lane.b32.xlu2 %v5247_v27, %s6159_s12  ;;  %v5326_v1 = vrot.slane %v5313_v60, 4  ;;  %v5328_v42 = vrot.slane %v5319_v17, 4  ;;  %v5315_v58 = vsel %vm5218_vm13, 0.0, %v5314_v9  ;;  %v5204_v31 = vpop.trf.xlu0  ;;  %s6177_s11 = smov 88   ;;  %s6178_s12 = smov 113  }
 0xc07   : > { %5447 = vrot.lane.b32.xlu0 %v5319_v17, %s6164_s25  ;;  %v5323_v35 = vperm.slane %v5315_v58, %v9347_v53  ;;  %v5337_v33 = vperm.slane %v5204_v31, %v9345_v14  ;;  %v5332_v61 = vrot.slane %v5204_v31, 4  ;;  %s6183_s25 = smov 110  }
 0xc08   : > { %v5327_v26 = vsel %vm5218_vm13, 0.0, %v5326_v1  ;;  %v5329_v12 = vsel %vm5218_vm13, 0.0, %v5328_v42 }
 0xc09   : > { %v5330_v13 = vrot.slane %v5323_v35, 4  ;;  %v5347_v38 = vperm.slane %v5337_v33, %v9347_v53  ;;  %v5342_v51 = vrot.slane %v5337_v33, 4  ;;  %v5333_v36 = vsel %vm5218_vm13, 0.0, %v5332_v61 }
 0xc0a   : > { %v5341_v59 = vperm.slane %v5333_v36, %v9345_v14 }
 0xc0b   : > { %v5331_v41 = vsel %vm5218_vm13, 0.0, %v5330_v13  ;;  %v5362_v50 = vrot.slane %v5347_v38, 4  ;;  %v5343_v23 = vsel %vm5218_vm13, 0.0, %v5342_v51 }
 0xc0c   : > { %v5351_v29 = vperm.slane %v5343_v23, %v9347_v53  ;;  %v5357_v56 = vperm.slane %v5341_v59, %v9347_v53  ;;  %v5352_v34 = vrot.slane %v5341_v59, 4 }
 0xc0d   : > { %v5363_v55 = vsel %vm5218_vm13, 0.0, %v5362_v50 }
 0xc0e   : > { %5395 = vrot.lane.b32.xlu1 %v5255_v25, %s6160_s26  ;;  %5399 = vrot.lane.b32.xlu2 %v5271_v43, %s6161_s13  ;;  %v5364_v3 = vrot.slane %v5351_v29, 4  ;;  %s6179_s26 = smov 10   ;;  %s6180_s13 = smov 35   ;;  %v5366_v6 = vrot.slane %v5357_v56, 4  ;;  %v5353_v52 = vsel %vm5218_vm13, 0.0, %v5352_v34 }
 0xc0f   : > { %v5361_v43 = vperm.slane %v5353_v52, %v9347_v53 }
 0xc10   : > { %v5365_v10 = vsel %vm5218_vm13, 0.0, %v5364_v3  ;;  %v5367_v24 = vsel %vm5218_vm13, 0.0, %v5366_v6 }
 0xc11   : > { %v5368_v16 = vrot.slane %v5361_v43, 4 }
 0xc13   : > { %v5369_v11 = vsel %vm5218_vm13, 0.0, %v5368_v16  ;;  %vm5514_vm13 = vcmask 154624   ;;  %v5577_v16 = vlaneseq }
 0xc16   : > { %5403 = vrot.lane.b32.xlu1 %v5287_v49, %s6162_s14  ;;  %5407 = vrot.lane.b32.xlu2 %v5275_v32, %s6163_s15  ;;  %s6181_s14 = smov 60   ;;  %s6182_s15 = smov 85  }
 0xc1e   : > { %5411 = vrot.lane.b32.xlu1 %v5289_v63, %s6165_s27  ;;  %5415 = vrot.lane.b32.xlu2 %v5281_v48, %s6166_s16  ;;  %s6184_s27 = smov 7   ;;  %s6090_s16 = smul.u32 7, %s9906_s10 }
 0xc26   : > { %5419 = vrot.lane.b32.xlu1 %v5291_v44, %s6167_s17  ;;  %5423 = vrot.lane.b32.xlu2 %v5285_v47, %s6168_s18 }
 0xc2e   : > { %5427 = vrot.lane.b32.xlu1 %v5293_v54, %s6169_s19  ;;  %5431 = vrot.lane.b32.xlu2 %v5309_v20, %s6170_s20  ;;  %s330_s19 = scalar_lea.vmem %s9426_s9, %s6090_s16 }
 0xc36   : > { %5435 = vrot.lane.b32.xlu2 %v5325_v37, %s6171_s21  ;;  %5439 = vrot.lane.b32.xlu1 %v5313_v60, %s6172_s22 }
 0xc3e   : > { %5443 = vrot.lane.b32.xlu2 %v5327_v26, %s6173_s23  ;;  %5451 = vrot.lane.b32.xlu1 %v5329_v12, %s6174_s24 }
 0xc46   : > { %5455 = vrot.lane.b32.xlu1 %v5323_v35, %s6175_s28  ;;  %5459 = vrot.lane.b32.xlu2 %v5331_v41, %s6176_s29 }
 0xc4e   : > { %5463 = vrot.lane.b32.xlu1 %v5347_v38, %s6177_s11  ;;  %5467 = vrot.lane.b32.xlu2 %v5363_v55, %s6178_s12 }
 0xc50   : > { %v5376_v39 = vpop.permute.xlu2 %5375 }
 0xc56   : > { %5471 = vrot.lane.b32.xlu1 %v5351_v29, %s6179_s26  ;;  %5475 = vrot.lane.b32.xlu2 %v5365_v10, %s6180_s13 }
 0xc58   : > { %v5384_v27 = vpop.permute.xlu2 %5383 }
 0xc5e   : > { %5479 = vrot.lane.b32.xlu1 %v5357_v56, %s6181_s14  ;;  %5483 = vrot.lane.b32.xlu2 %v5367_v24, %s6182_s15 }
 0xc60   : > { %v5392_v14 = vpop.permute.xlu2 %5391 }
 0xc66   : > { %5487 = vrot.lane.b32.xlu1 %v5361_v43, %s6183_s25  ;;  %5491 = vrot.lane.b32.xlu2 %v5369_v11, %s6184_s27 }
 0xc68   : > { %v5372_v45 = vpop.permute.xlu1 %5371  ;;  %v5400_v22 = vpop.permute.xlu2 %5399 }
 0xc69   : > { %v5495_v25 = vsel %vm5494_vm14, %v9351_v18, %v5372_v45  ;;  %vm5516_vm14 = vcmask 359424  }
 0xc6a   : > { %v5497_v30 = vsel %vm5496_vm15, %v5495_v25, %v5376_v39  ;;  %vm5518_vm15 = vcmask 564224  }
 0xc70   : > { %v5380_v53 = vpop.permute.xlu1 %5379  ;;  %v5408_v32 = vpop.permute.xlu2 %5407 }
 0xc71   : > { %v5499_v40 = vsel %vm5498_vm0, %v5497_v30, %v5380_v53  ;;  %vm5524_vm0 = vcmask 130048  }
 0xc72   : > { %v5501_v7 = vsel %vm5500_vm2, %v5499_v40, %v5384_v27  ;;  %vm5520_vm2 = vcmask 769024  }
 0xc78   : > { %v5388_v28 = vpop.permute.xlu1 %5387  ;;  %v5416_v17 = vpop.permute.xlu2 %5415 }
 0xc79   : > { %v5503_v49 = vsel %vm5502_vm4, %v5501_v7, %v5388_v28  ;;  %v5505_v21 = vsel %vm5504_vm5, %v5388_v28, %v5392_v14  ;;  %vm5526_vm4 = vcmask 334848   ;;  %vm5522_vm5 = vcmask 973824   ;;  %v5448_v12 = vpop.permute.xlu0 %5447 }
 0xc80   : > { %v5396_v57 = vpop.permute.xlu1 %5395  ;;  %v5424_v18 = vpop.permute.xlu2 %5423 }
 0xc81   : > { %v5507_v15 = vsel %vm5506_vm6, %v5505_v21, %v5396_v57  ;;  %vm5528_vm6 = vcmask 539648  }
 0xc82   : > { %v5509_v48 = vsel %vm5508_vm9, %v5507_v15, %v5400_v22  ;;  %vm5530_vm9 = vcmask 744448  }
 0xc88   : > { %v5404_v5 = vpop.permute.xlu1 %5403  ;;  %v5432_v0 = vpop.permute.xlu2 %5431 }
 0xc89   : > { %v5511_v63 = vsel %vm5510_vm11, %v5509_v48, %v5404_v5  ;;  %vm5534_vm11 = vcmask 105472  }
 0xc8a   : > { %v5513_v62 = vsel %vm5512_vm12, %v5511_v63, %v5408_v32  ;;  %vm5536_vm12 = vcmask 310272  }
 0xc8b   : > { %v5563_v19 = vrot.slane %v5513_v62, 7 }
 0xc8d   : > { %v5569_v47 = vsel %vm530_vm1, %v5503_v49, %v5563_v19  ;;  %vm5532_vm1 = vcmask 949248  }
 0xc90   : > { %v5412_v44 = vpop.permute.xlu1 %5411  ;;  %v5436_v54 = vpop.permute.xlu2 %5435 }
 0xc91   : > { %v5515_v4 = vsel %vm5514_vm13, %v5408_v32, %v5412_v44  ;;  %vm5544_vm13 = vcmask 80896  }
 0xc92   : > { %v5517_v20 = vsel %vm5516_vm14, %v5515_v4, %v5416_v17  ;;  %vm5538_vm14 = vcmask 515072  }
 0xc98   : > { %v5420_v8 = vpop.permute.xlu1 %5419  ;;  %v5444_v37 = vpop.permute.xlu2 %5443 }
 0xc99   : > { %v5519_v2 = vsel %vm5518_vm15, %v5517_v20, %v5420_v8  ;;  %vm5540_vm15 = vcmask 719872  }
 0xc9a   : > { %v5521_v9 = vsel %vm5520_vm2, %v5519_v2, %v5424_v18  ;;  %vm5550_vm2 = vcmask 695296  }
 0xca0   : > { %v5428_v46 = vpop.permute.xlu1 %5427  ;;  %v5460_v51 = vpop.permute.xlu2 %5459 }
 0xca1   : > { %v5525_v60 = vsel %vm5524_vm0, %v5428_v46, %v5432_v0  ;;  %v5523_v58 = vsel %vm5522_vm5, %v5521_v9, %v5428_v46  ;;  %vm5542_vm0 = vcmask 924672   ;;  %vm5554_vm5 = vcmask 56320  }
 0xca2   : > { %v5527_v1 = vsel %vm5526_vm4, %v5525_v60, %v5436_v54  ;;  %v5564_v33 = vrot.slane %v5523_v58, 6  ;;  %vm5552_vm4 = vcmask 900096  }
 0xca8   : > { %v5440_v42 = vpop.permute.xlu1 %5439  ;;  %v5468_v23 = vpop.permute.xlu2 %5467 }
 0xca9   : > { %v5529_v31 = vsel %vm5528_vm6, %v5527_v1, %v5440_v42  ;;  %vm5574_vm6 = vcmask 1043456  }
 0xcaa   : > { %v5531_v26 = vsel %vm5530_vm9, %v5529_v31, %v5444_v37  ;;  %vm5579_vm9 = vcmp.lt.s32.totalorder %v5577_v16, 800 }
 0xcab   : > { %v5533_v35 = vsel %vm5532_vm1, %v5531_v26, %v5448_v12 }
 0xcac   : > { %v5565_v13 = vrot.slane %v5533_v35, 5 }
 0xcae   : > { %v5570_v38 = vsel %vm539_vm3, %v5564_v33, %v5565_v13  ;;  %vm5546_vm3 = vcmask 285696  }
 0xcaf   : > { %v5571_v41 = vsel %vm1950_vm10, %v5569_v47, %v5570_v38  ;;  %vm5548_vm10 = vcmask 490496  }
 0xcb0   : > { %v5452_v50 = vpop.permute.xlu1 %5451  ;;  %v5476_v29 = vpop.permute.xlu2 %5475 }
 0xcb1   : > { %v5535_v59 = vsel %vm5534_vm11, %v5448_v12, %v5452_v50 }
 0xcb8   : > { %v5456_v61 = vpop.permute.xlu1 %5455  ;;  %v5484_v39 = vpop.permute.xlu2 %5483 }
 0xcb9   : > { %v5537_v3 = vsel %vm5536_vm12, %v5535_v59, %v5456_v61 }
 0xcba   : > { %v5539_v34 = vsel %vm5538_vm14, %v5537_v3, %v5460_v51 }
 0xcc0   : > { %v5464_v55 = vpop.permute.xlu1 %5463  ;;  %v5492_v43 = vpop.permute.xlu2 %5491 }
 0xcc1   : > { %v5541_v27 = vsel %vm5540_vm15, %v5539_v34, %v5464_v55 }
 0xcc2   : > { %v5543_v24 = vsel %vm5542_vm0, %v5541_v27, %v5468_v23 }
 0xcc3   : > { %v5566_v22 = vrot.slane %v5543_v24, 4 }
 0xcc8   : > { %v5472_v36 = vpop.permute.xlu1 %5471 }
 0xcc9   : > { %v5545_v10 = vsel %vm5544_vm13, %v5468_v23, %v5472_v36 }
 0xcca   : > { %v5547_v6 = vsel %vm5546_vm3, %v5545_v10, %v5476_v29 }
 0xcd0   : > { %v5480_v56 = vpop.permute.xlu1 %5479 }
 0xcd1   : > { %v5549_v52 = vsel %vm5548_vm10, %v5547_v6, %v5480_v56 }
 0xcd2   : > { %v5551_v14 = vsel %vm5550_vm2, %v5549_v52, %v5484_v39 }
 0xcd8   : > { %v5488_v11 = vpop.permute.xlu1 %5487 }
 0xcd9   : > { %v5553_v45 = vsel %vm5552_vm4, %v5551_v14, %v5488_v11  ;;  %v5555_v25 = vsel %vm5554_vm5, %v5488_v11, %v5492_v43 }
 0xcda   : > { %v5567_v30 = vrot.slane %v5553_v45, 3  ;;  %v5568_v53 = vrot.slane %v5555_v25, 2 }
 0xcdc   : > { %v5572_v40 = vsel %vm1969_vm7, %v5566_v22, %v5567_v30 }
 0xcdd   : > { %v5573_v7 = vsel %vm1971_vm8, %v5572_v40, %v5568_v53 }
 0xcde   : > { %v5575_v32 = vsel %vm5574_vm6, %v5571_v41, %v5573_v7 }
 0xcdf   : > { %5581 = vst.msk [vmem:[%s330_s19] sm:$0x7f] %vm5579_vm9, %v5575_v32 }
 0xce0 PF: > { %s19_s30 = sadd.s32 1, %s6147_s30  }
 0xce1   : > { %p16_p4 = scmp.ge.s32.totalorder %s19_s30, 4  }
 0xce3   :  { %18 = sbr.rel (!%p16_p4) target bundleno = 1 (0x1), region = 188 }

</bundles_post_ra>
